<compile_context>
chip_gen: v6e
topology: v6e:2x2x1
jax: 0.10.0
libtpu: 0.0.40
codegen_flags: <defaults>
</compile_context>

<pallas_src>
import functools

import jax
import jax.numpy as jnp
from jax import lax
from jax.experimental import pallas as pl
from jax.experimental.pallas import tpu as pltpu


def _fused_stack_kernel(x_ref, w_in_ref, b_in_ref, w1_ref, b1_ref, w2_ref,
                        b2_ref, mask_ref, o_ref, act_ref, tmp_ref, *, H, W):
    """Grid = (batch, residual_block).  One residual block per grid step; the
    running activation stays resident in VMEM (act_ref) across the block axis."""
    Wp = W + 2
    span = (H - 1) * Wp + W                # flat range covering all H*W pixels
    OFF = ((Wp + 1 + 127) // 128) * 128    # lane-aligned slab start
    base = OFF - (Wp + 1)                  # buffer index of padded position (0,0)
    Cout = act_ref.shape[0]
    Lbuf = act_ref.shape[1]
    i = pl.program_id(1)                   # residual-block index ("arbitrary")

    mask = mask_ref[...]                   # (1, span): 1 on real pixels, 0 on halo cols

    def conv3x3(tap, wsel, b):
        # 3x3 "SAME" conv = 9 accumulated (Cout, C)@(C, span) MXU dots over
        # shifted contiguous slices of the padded-flat channel-major activation.
        acc = None
        for dy in range(3):
            for dx in range(3):
                t = dy * 3 + dx
                d = jnp.dot(wsel(t), tap(dy * Wp + dx),
                            preferred_element_type=jnp.float32)
                acc = d if acc is None else acc + d
        return acc + b                     # bias (Cout, 1) broadcasts over lanes

    # ---- once per batch element: halo zeroing + conv_in + LeakyReLU(0.2) ----
    @pl.when(i == 0)
    def _():
        # Halo-only zeroing: the head/tail regions are read by the stencil taps
        # but never overwritten by the slab stores; in-row halo columns are kept
        # zero by the mask multiply below.
        act_ref[:, :OFF] = jnp.zeros((Cout, OFF), act_ref.dtype)
        act_ref[:, OFF + span:] = jnp.zeros((Cout, Lbuf - OFF - span), act_ref.dtype)
        tmp_ref[:, :OFF] = jnp.zeros((Cout, OFF), tmp_ref.dtype)
        tmp_ref[:, OFF + span:] = jnp.zeros((Cout, Lbuf - OFF - span), tmp_ref.dtype)

        y = conv3x3(lambda s: x_ref[0, :, s:s + span],
                    lambda t: w_in_ref[t], b_in_ref[...])
        y = jnp.where(y >= 0.0, y, 0.2 * y)                  # LeakyReLU(0.2)
        act_ref[:, OFF:OFF + span] = (y * mask).astype(act_ref.dtype)

    # ---- residual block i: Conv3x3 -> ReLU -> Conv3x3 -> +identity (res_scale=1)
    t1 = conv3x3(lambda s: act_ref[:, base + s:base + s + span],
                 lambda t: w1_ref[0, t], b1_ref[0])
    t1 = jnp.maximum(t1, 0.0)
    tmp_ref[:, OFF:OFF + span] = (t1 * mask).astype(tmp_ref.dtype)

    t2 = conv3x3(lambda s: tmp_ref[:, base + s:base + s + span],
                 lambda t: w2_ref[0, t], b2_ref[0])
    h_new = act_ref[:, OFF:OFF + span].astype(jnp.float32) + t2
    act_ref[:, OFF:OFF + span] = (h_new * mask).astype(act_ref.dtype)

    # ---- lane-dense writeback of the final slab (halo cols sliced off in wrapper)
    @pl.when(i == pl.num_programs(1) - 1)
    def _():
        o_ref[0] = h_new.astype(o_ref.dtype)


def _to_tap_major(w_oihw):
    """PyTorch OIHW (Cout, Cin, 3, 3) -> (9, Cout, Cin); tap index = dy*3 + dx."""
    cout, cin = w_oihw.shape[0], w_oihw.shape[1]
    return jnp.transpose(w_oihw, (2, 3, 0, 1)).reshape(9, cout, cin)


def residual_blocks_with_in_conv(x_nchw, params, *, compute_dtype=jnp.float32):
    """Forward pass equivalent to ResidualBlocksWithInConv (res_scale = 1)."""
    N, Cin, H, W = x_nchw.shape
    Cout = params["conv_in_w"].shape[0]
    num_block = len(params["blocks"])
    assert num_block >= 1

    Wp = W + 2
    Lp = (H + 2) * Wp
    span = (H - 1) * Wp + W
    OFF = ((Wp + 1 + 127) // 128) * 128
    Lbuf = OFF - (Wp + 1) + Lp
    Cin_p = ((Cin + 7) // 8) * 8          # pad K of conv_in to a sublane multiple

    # Input: NCHW -> zero-padded, channel-major, flattened (lane-dense) layout.
    xp = jnp.pad(x_nchw, ((0, 0), (0, 0), (1, 1), (1, 1))).reshape(N, Cin, Lp)
    if Cin_p != Cin:
        xp = jnp.pad(xp, ((0, 0), (0, Cin_p - Cin), (0, 0)))
    xp = xp.astype(compute_dtype)

    w_in = _to_tap_major(params["conv_in_w"])
    if Cin_p != Cin:
        w_in = jnp.pad(w_in, ((0, 0), (0, 0), (0, Cin_p - Cin)))
    w_in = w_in.astype(compute_dtype)
    b_in = params["conv_in_b"].reshape(Cout, 1).astype(jnp.float32)

    w1 = jnp.stack([_to_tap_major(b["w1"]) for b in params["blocks"]]).astype(compute_dtype)
    b1 = jnp.stack([b["b1"].reshape(Cout, 1) for b in params["blocks"]]).astype(jnp.float32)
    w2 = jnp.stack([_to_tap_major(b["w2"]) for b in params["blocks"]]).astype(compute_dtype)
    b2 = jnp.stack([b["b2"].reshape(Cout, 1) for b in params["blocks"]]).astype(jnp.float32)

    # 1 on real pixels, 0 on the in-row halo columns of the flat slab.
    mask = (jnp.arange(span) % Wp < W).astype(jnp.float32).reshape(1, span)

    kernel = functools.partial(_fused_stack_kernel, H=H, W=W)

    # TODO(synk): for v7x with N == 1, split H across the two TensorCores (needs
    # per-layer halo exchange); for very large H*W add an H-tile grid axis so the
    # flat activation buffers stay within v7x's 64 MiB VMEM.
    out_slab = pl.pallas_call(
        kernel,
        out_shape=jax.ShapeDtypeStruct((N, Cout, span), x_nchw.dtype),
        grid=(N, num_block),
        in_specs=[
            pl.BlockSpec((1, Cin_p, Lp), lambda n, i: (n, 0, 0)),          # x (per batch)
            pl.BlockSpec((9, Cout, Cin_p), lambda n, i: (0, 0, 0)),        # conv_in w (resident)
            pl.BlockSpec((Cout, 1), lambda n, i: (0, 0)),                  # conv_in b
            pl.BlockSpec((1, 9, Cout, Cout), lambda n, i: (i, 0, 0, 0)),   # block-i w1 (streamed)
            pl.BlockSpec((1, Cout, 1), lambda n, i: (i, 0, 0)),            # block-i b1
            pl.BlockSpec((1, 9, Cout, Cout), lambda n, i: (i, 0, 0, 0)),   # block-i w2 (streamed)
            pl.BlockSpec((1, Cout, 1), lambda n, i: (i, 0, 0)),            # block-i b2
            pl.BlockSpec((1, span), lambda n, i: (0, 0)),                  # halo-col mask
        ],
        out_specs=pl.BlockSpec((1, Cout, span), lambda n, i: (n, 0, 0)),
        scratch_shapes=[
            pltpu.VMEM((Cout, Lbuf), compute_dtype),   # running activation (padded flat)
            pltpu.VMEM((Cout, Lbuf), compute_dtype),   # intermediate ReLU activation
        ],
        compiler_params=pltpu.CompilerParams(
            dimension_semantics=("parallel", "arbitrary")),
    )(xp, w_in, b_in, w1, b1, w2, b2, mask)

    # Flat slab (k = h*Wp + w) -> NCHW; pure pad/reshape/slice in XLA.
    out = jnp.pad(out_slab, ((0, 0), (0, 0), (0, H * Wp - span)))
    return out.reshape(N, Cout, H, Wp)[:, :, :, :W]


def init_params(key, num_in_ch, num_out_ch, num_block):
    """Deterministic synthetic parameters in PyTorch OIHW convention."""
    keys = jax.random.split(key, 2 + 4 * num_block)

    def w_init(k, cout, cin):
        fan_in = 3 * 3 * cin
        return (jax.random.normal(k, (cout, cin, 3, 3), jnp.float32)
                / jnp.sqrt(fan_in))

    def b_init(k, cout):
        return 0.01 * jax.random.normal(k, (cout,), jnp.float32)

    params = {
        "conv_in_w": w_init(keys[0], num_out_ch, num_in_ch),
        "conv_in_b": b_init(keys[1], num_out_ch),
        "blocks": [],
    }
    for i in range(num_block):
        k0, k1, k2, k3 = keys[2 + 4 * i: 6 + 4 * i]
        params["blocks"].append({
            "w1": w_init(k0, num_out_ch, num_out_ch),
            "b1": b_init(k1, num_out_ch),
            "w2": w_init(k2, num_out_ch, num_out_ch),
            "b2": b_init(k3, num_out_ch),
        })
    return params


# --- pure-JAX reference (NCHW / OIHW, like the PyTorch module) ----------------
def _ref_conv(x, w, b):
    y = lax.conv_general_dilated(
        x, w, window_strides=(1, 1), padding="SAME",
        dimension_numbers=("NCHW", "OIHW", "NCHW"))
    return y + b[None, :, None, None]


def _ref_forward(x, params):
    h = _ref_conv(x, params["conv_in_w"], params["conv_in_b"])
    h = jnp.where(h >= 0.0, h, 0.2 * h)                      # LeakyReLU(0.2)
    for blk in params["blocks"]:
        t = jnp.maximum(_ref_conv(h, blk["w1"], blk["b1"]), 0.0)
        h = h + _ref_conv(t, blk["w2"], blk["b2"])
    return h


if __name__ == "__main__":
    # Small shapes consistent with the module: batch=2, num_in_ch=4,
    # num_out_ch=32, spatial=16x16, num_block=2.
    N, C_IN, H, W = 2, 4, 16, 16
    C_OUT, NUM_BLOCK = 32, 2

    key = jax.random.PRNGKey(0)
    k_x, k_p = jax.random.split(key)

    x = jax.random.normal(k_x, (N, C_IN, H, W), jnp.float32)     # NCHW, like PyTorch
    params = init_params(k_p, C_IN, C_OUT, NUM_BLOCK)

    ref = jax.block_until_ready(_ref_forward(x, params))

    # f32 path (exact PyTorch semantics).
    out = jax.block_until_ready(residual_blocks_with_in_conv(x, params))
    assert out.shape == (N, C_OUT, H, W)
    assert jnp.allclose(out, ref, atol=3e-4, rtol=3e-4)

    # bf16 MXU path (recommended for v6e/v7x): same kernel, reduced-precision
    # matmul operands, f32 accumulation.  Looser tolerance by construction.
    out_bf16 = jax.block_until_ready(
        residual_blocks_with_in_conv(x, params, compute_dtype=jnp.bfloat16))
    rel_err = float(jnp.max(jnp.abs(out_bf16 - ref)) / jnp.max(jnp.abs(ref)))
    assert rel_err < 0.1, rel_err

    print("KERNEL_OK")
</pallas_src>

<mosaic_0001>
module attributes {stable_mosaic.version = 11 : i64} {
  func.func @_fused_stack_kernel(%arg0: i32, %arg1: i32, %arg2: memref<1x8x324xf32, #tpu.memory_space<vmem>>, %arg3: memref<9x32x8xf32, #tpu.memory_space<vmem>>, %arg4: memref<32x1xf32, #tpu.memory_space<vmem>>, %arg5: memref<1x9x32x32xf32, #tpu.memory_space<vmem>>, %arg6: memref<1x32x1xf32, #tpu.memory_space<vmem>>, %arg7: memref<1x9x32x32xf32, #tpu.memory_space<vmem>>, %arg8: memref<1x32x1xf32, #tpu.memory_space<vmem>>, %arg9: memref<1x286xf32, #tpu.memory_space<vmem>>, %arg10: memref<1x32x286xf32, #tpu.memory_space<vmem>>, %arg11: memref<32x433xf32, #tpu.memory_space<vmem>>, %arg12: memref<32x433xf32, #tpu.memory_space<vmem>>) attributes {dimension_semantics = [#tpu.dimension_semantics<parallel>, #tpu.dimension_semantics<arbitrary>], iteration_bounds = array<i64: 2, 2>, scalar_prefetch = 0 : i64, scratch_operands = 2 : i64, tpu.core_type = #tpu.core_type<tc>, window_params = [{transform_indices = @transform_0, window_bounds = array<i64: 1, 8, 324>}, {pipeline_mode = #tpu.pipeline_mode<synchronous>, transform_indices = @transform_1, window_bounds = array<i64: 9, 32, 8>}, {pipeline_mode = #tpu.pipeline_mode<synchronous>, transform_indices = @transform_2, window_bounds = array<i64: 32, 1>}, {transform_indices = @transform_3, window_bounds = array<i64: 1, 9, 32, 32>}, {transform_indices = @transform_4, window_bounds = array<i64: 1, 32, 1>}, {transform_indices = @transform_5, window_bounds = array<i64: 1, 9, 32, 32>}, {transform_indices = @transform_6, window_bounds = array<i64: 1, 32, 1>}, {pipeline_mode = #tpu.pipeline_mode<synchronous>, transform_indices = @transform_7, window_bounds = array<i64: 1, 286>}, {transform_indices = @transform_8, window_bounds = array<i64: 1, 32, 286>}]} {
    %c0 = arith.constant 0 : index
    %c0_0 = arith.constant 0 : index
    %0 = vector.load %arg9[%c0, %c0_0] : memref<1x286xf32, #tpu.memory_space<vmem>>, vector<1x286xf32>
    %c0_i32 = arith.constant 0 : i32
    %1 = arith.cmpi eq, %arg1, %c0_i32 : i32
    %2 = arith.extui %1 : i1 to i32
    %c0_i32_1 = arith.constant 0 : i32
    %3 = arith.cmpi ne, %2, %c0_i32_1 : i32
    scf.if %3 {
      %cst_124 = arith.constant 0.000000e+00 : f32
      %113 = vector.broadcast %cst_124 : f32 to vector<32x128xf32>
      %c0_125 = arith.constant 0 : index
      %c0_126 = arith.constant 0 : index
      %114 = vector.load %arg11[%c0_125, %c0_126] : memref<32x433xf32, #tpu.memory_space<vmem>>, vector<32x128xf32>
      tpu.vector_store %arg11[%c0_125, %c0_126], %113 {strides = array<i32>} : memref<32x433xf32, #tpu.memory_space<vmem>>, vector<32x128xf32>,
      %cst_127 = arith.constant 0.000000e+00 : f32
      %115 = vector.broadcast %cst_127 : f32 to vector<32x19xf32>
      %c0_128 = arith.constant 0 : index
      %c414 = arith.constant 414 : index
      %116 = vector.load %arg11[%c0_128, %c414] : memref<32x433xf32, #tpu.memory_space<vmem>>, vector<32x19xf32>
      tpu.vector_store %arg11[%c0_128, %c414], %115 {strides = array<i32>} : memref<32x433xf32, #tpu.memory_space<vmem>>, vector<32x19xf32>,
      %cst_129 = arith.constant 0.000000e+00 : f32
      %117 = vector.broadcast %cst_129 : f32 to vector<32x128xf32>
      %c0_130 = arith.constant 0 : index
      %c0_131 = arith.constant 0 : index
      %118 = vector.load %arg12[%c0_130, %c0_131] : memref<32x433xf32, #tpu.memory_space<vmem>>, vector<32x128xf32>
      tpu.vector_store %arg12[%c0_130, %c0_131], %117 {strides = array<i32>} : memref<32x433xf32, #tpu.memory_space<vmem>>, vector<32x128xf32>,
      %cst_132 = arith.constant 0.000000e+00 : f32
      %119 = vector.broadcast %cst_132 : f32 to vector<32x19xf32>
      %c0_133 = arith.constant 0 : index
      %c414_134 = arith.constant 414 : index
      %120 = vector.load %arg12[%c0_133, %c414_134] : memref<32x433xf32, #tpu.memory_space<vmem>>, vector<32x19xf32>
      tpu.vector_store %arg12[%c0_133, %c414_134], %119 {strides = array<i32>} : memref<32x433xf32, #tpu.memory_space<vmem>>, vector<32x19xf32>,
      %c0_135 = arith.constant 0 : index
      %c0_136 = arith.constant 0 : index
      %121 = vector.load %arg4[%c0_135, %c0_136] : memref<32x1xf32, #tpu.memory_space<vmem>>, vector<32x1xf32>
      %c0_137 = arith.constant 0 : index
      %c0_138 = arith.constant 0 : index
      %c0_139 = arith.constant 0 : index
      %122 = vector.load %arg3[%c0_137, %c0_138, %c0_139] : memref<9x32x8xf32, #tpu.memory_space<vmem>>, vector<1x32x8xf32>
      %123 = vector.shape_cast %122 : vector<1x32x8xf32> to vector<32x8xf32>
      %c0_140 = arith.constant 0 : index
      %c0_141 = arith.constant 0 : index
      %c0_142 = arith.constant 0 : index
      %124 = vector.load %arg2[%c0_140, %c0_141, %c0_142] : memref<1x8x324xf32, #tpu.memory_space<vmem>>, vector<1x8x286xf32>
      %125 = vector.shape_cast %124 : vector<1x8x286xf32> to vector<8x286xf32>
      %cst_143 = arith.constant dense<0.000000e+00> : vector<32x286xf32>
      %126 = tpu.matmul %123, %125, %cst_143 {dimension_numbers = #tpu.dot_dimension_numbers<[1], [0], [0], [1], [0, 0, 1, 1], [], []>} : vector<32x8xf32>, vector<8x286xf32>, vector<32x286xf32> -> vector<32x286xf32>
      %c1_144 = arith.constant 1 : index
      %c0_145 = arith.constant 0 : index
      %c0_146 = arith.constant 0 : index
      %127 = vector.load %arg3[%c1_144, %c0_145, %c0_146] : memref<9x32x8xf32, #tpu.memory_space<vmem>>, vector<1x32x8xf32>
      %128 = vector.shape_cast %127 : vector<1x32x8xf32> to vector<32x8xf32>
      %c0_147 = arith.constant 0 : index
      %c0_148 = arith.constant 0 : index
      %c1_149 = arith.constant 1 : index
      %129 = vector.load %arg2[%c0_147, %c0_148, %c1_149] : memref<1x8x324xf32, #tpu.memory_space<vmem>>, vector<1x8x286xf32>
      %130 = vector.shape_cast %129 : vector<1x8x286xf32> to vector<8x286xf32>
      %cst_150 = arith.constant dense<0.000000e+00> : vector<32x286xf32>
      %131 = tpu.matmul %128, %130, %cst_150 {dimension_numbers = #tpu.dot_dimension_numbers<[1], [0], [0], [1], [0, 0, 1, 1], [], []>} : vector<32x8xf32>, vector<8x286xf32>, vector<32x286xf32> -> vector<32x286xf32>
      %132 = arith.addf %126, %131 : vector<32x286xf32>
      %c2_151 = arith.constant 2 : index
      %c0_152 = arith.constant 0 : index
      %c0_153 = arith.constant 0 : index
      %133 = vector.load %arg3[%c2_151, %c0_152, %c0_153] : memref<9x32x8xf32, #tpu.memory_space<vmem>>, vector<1x32x8xf32>
      %134 = vector.shape_cast %133 : vector<1x32x8xf32> to vector<32x8xf32>
      %c0_154 = arith.constant 0 : index
      %c0_155 = arith.constant 0 : index
      %c2_156 = arith.constant 2 : index
      %135 = vector.load %arg2[%c0_154, %c0_155, %c2_156] : memref<1x8x324xf32, #tpu.memory_space<vmem>>, vector<1x8x286xf32>
      %136 = vector.shape_cast %135 : vector<1x8x286xf32> to vector<8x286xf32>
      %cst_157 = arith.constant dense<0.000000e+00> : vector<32x286xf32>
      %137 = tpu.matmul %134, %136, %cst_157 {dimension_numbers = #tpu.dot_dimension_numbers<[1], [0], [0], [1], [0, 0, 1, 1], [], []>} : vector<32x8xf32>, vector<8x286xf32>, vector<32x286xf32> -> vector<32x286xf32>
      %138 = arith.addf %132, %137 : vector<32x286xf32>
      %c3_158 = arith.constant 3 : index
      %c0_159 = arith.constant 0 : index
      %c0_160 = arith.constant 0 : index
      %139 = vector.load %arg3[%c3_158, %c0_159, %c0_160] : memref<9x32x8xf32, #tpu.memory_space<vmem>>, vector<1x32x8xf32>
      %140 = vector.shape_cast %139 : vector<1x32x8xf32> to vector<32x8xf32>
      %c0_161 = arith.constant 0 : index
      %c0_162 = arith.constant 0 : index
      %c18 = arith.constant 18 : index
      %141 = vector.load %arg2[%c0_161, %c0_162, %c18] : memref<1x8x324xf32, #tpu.memory_space<vmem>>, vector<1x8x286xf32>
      %142 = vector.shape_cast %141 : vector<1x8x286xf32> to vector<8x286xf32>
      %cst_163 = arith.constant dense<0.000000e+00> : vector<32x286xf32>
      %143 = tpu.matmul %140, %142, %cst_163 {dimension_numbers = #tpu.dot_dimension_numbers<[1], [0], [0], [1], [0, 0, 1, 1], [], []>} : vector<32x8xf32>, vector<8x286xf32>, vector<32x286xf32> -> vector<32x286xf32>
      %144 = arith.addf %138, %143 : vector<32x286xf32>
      %c4_164 = arith.constant 4 : index
      %c0_165 = arith.constant 0 : index
      %c0_166 = arith.constant 0 : index
      %145 = vector.load %arg3[%c4_164, %c0_165, %c0_166] : memref<9x32x8xf32, #tpu.memory_space<vmem>>, vector<1x32x8xf32>
      %146 = vector.shape_cast %145 : vector<1x32x8xf32> to vector<32x8xf32>
      %c0_167 = arith.constant 0 : index
      %c0_168 = arith.constant 0 : index
      %c19 = arith.constant 19 : index
      %147 = vector.load %arg2[%c0_167, %c0_168, %c19] : memref<1x8x324xf32, #tpu.memory_space<vmem>>, vector<1x8x286xf32>
      %148 = vector.shape_cast %147 : vector<1x8x286xf32> to vector<8x286xf32>
      %cst_169 = arith.constant dense<0.000000e+00> : vector<32x286xf32>
      %149 = tpu.matmul %146, %148, %cst_169 {dimension_numbers = #tpu.dot_dimension_numbers<[1], [0], [0], [1], [0, 0, 1, 1], [], []>} : vector<32x8xf32>, vector<8x286xf32>, vector<32x286xf32> -> vector<32x286xf32>
      %150 = arith.addf %144, %149 : vector<32x286xf32>
      %c5_170 = arith.constant 5 : index
      %c0_171 = arith.constant 0 : index
      %c0_172 = arith.constant 0 : index
      %151 = vector.load %arg3[%c5_170, %c0_171, %c0_172] : memref<9x32x8xf32, #tpu.memory_space<vmem>>, vector<1x32x8xf32>
      %152 = vector.shape_cast %151 : vector<1x32x8xf32> to vector<32x8xf32>
      %c0_173 = arith.constant 0 : index
      %c0_174 = arith.constant 0 : index
      %c20 = arith.constant 20 : index
      %153 = vector.load %arg2[%c0_173, %c0_174, %c20] : memref<1x8x324xf32, #tpu.memory_space<vmem>>, vector<1x8x286xf32>
      %154 = vector.shape_cast %153 : vector<1x8x286xf32> to vector<8x286xf32>
      %cst_175 = arith.constant dense<0.000000e+00> : vector<32x286xf32>
      %155 = tpu.matmul %152, %154, %cst_175 {dimension_numbers = #tpu.dot_dimension_numbers<[1], [0], [0], [1], [0, 0, 1, 1], [], []>} : vector<32x8xf32>, vector<8x286xf32>, vector<32x286xf32> -> vector<32x286xf32>
      %156 = arith.addf %150, %155 : vector<32x286xf32>
      %c6_176 = arith.constant 6 : index
      %c0_177 = arith.constant 0 : index
      %c0_178 = arith.constant 0 : index
      %157 = vector.load %arg3[%c6_176, %c0_177, %c0_178] : memref<9x32x8xf32, #tpu.memory_space<vmem>>, vector<1x32x8xf32>
      %158 = vector.shape_cast %157 : vector<1x32x8xf32> to vector<32x8xf32>
      %c0_179 = arith.constant 0 : index
      %c0_180 = arith.constant 0 : index
      %c36 = arith.constant 36 : index
      %159 = vector.load %arg2[%c0_179, %c0_180, %c36] : memref<1x8x324xf32, #tpu.memory_space<vmem>>, vector<1x8x286xf32>
      %160 = vector.shape_cast %159 : vector<1x8x286xf32> to vector<8x286xf32>
      %cst_181 = arith.constant dense<0.000000e+00> : vector<32x286xf32>
      %161 = tpu.matmul %158, %160, %cst_181 {dimension_numbers = #tpu.dot_dimension_numbers<[1], [0], [0], [1], [0, 0, 1, 1], [], []>} : vector<32x8xf32>, vector<8x286xf32>, vector<32x286xf32> -> vector<32x286xf32>
      %162 = arith.addf %156, %161 : vector<32x286xf32>
      %c7_182 = arith.constant 7 : index
      %c0_183 = arith.constant 0 : index
      %c0_184 = arith.constant 0 : index
      %163 = vector.load %arg3[%c7_182, %c0_183, %c0_184] : memref<9x32x8xf32, #tpu.memory_space<vmem>>, vector<1x32x8xf32>
      %164 = vector.shape_cast %163 : vector<1x32x8xf32> to vector<32x8xf32>
      %c0_185 = arith.constant 0 : index
      %c0_186 = arith.constant 0 : index
      %c37 = arith.constant 37 : index
      %165 = vector.load %arg2[%c0_185, %c0_186, %c37] : memref<1x8x324xf32, #tpu.memory_space<vmem>>, vector<1x8x286xf32>
      %166 = vector.shape_cast %165 : vector<1x8x286xf32> to vector<8x286xf32>
      %cst_187 = arith.constant dense<0.000000e+00> : vector<32x286xf32>
      %167 = tpu.matmul %164, %166, %cst_187 {dimension_numbers = #tpu.dot_dimension_numbers<[1], [0], [0], [1], [0, 0, 1, 1], [], []>} : vector<32x8xf32>, vector<8x286xf32>, vector<32x286xf32> -> vector<32x286xf32>
      %168 = arith.addf %162, %167 : vector<32x286xf32>
      %c8_188 = arith.constant 8 : index
      %c0_189 = arith.constant 0 : index
      %c0_190 = arith.constant 0 : index
      %169 = vector.load %arg3[%c8_188, %c0_189, %c0_190] : memref<9x32x8xf32, #tpu.memory_space<vmem>>, vector<1x32x8xf32>
      %170 = vector.shape_cast %169 : vector<1x32x8xf32> to vector<32x8xf32>
      %c0_191 = arith.constant 0 : index
      %c0_192 = arith.constant 0 : index
      %c38 = arith.constant 38 : index
      %171 = vector.load %arg2[%c0_191, %c0_192, %c38] : memref<1x8x324xf32, #tpu.memory_space<vmem>>, vector<1x8x286xf32>
      %172 = vector.shape_cast %171 : vector<1x8x286xf32> to vector<8x286xf32>
      %cst_193 = arith.constant dense<0.000000e+00> : vector<32x286xf32>
      %173 = tpu.matmul %170, %172, %cst_193 {dimension_numbers = #tpu.dot_dimension_numbers<[1], [0], [0], [1], [0, 0, 1, 1], [], []>} : vector<32x8xf32>, vector<8x286xf32>, vector<32x286xf32> -> vector<32x286xf32>
      %174 = arith.addf %168, %173 : vector<32x286xf32>
      %175 = vector.broadcast %121 : vector<32x1xf32> to vector<32x286xf32>
      %176 = arith.addf %174, %175 : vector<32x286xf32>
      %cst_194 = arith.constant 0.000000e+00 : f32
      %177 = vector.broadcast %cst_194 : f32 to vector<32x286xf32>
      %178 = arith.cmpf oge, %176, %177 : vector<32x286xf32>
      %cst_195 = arith.constant 2.000000e-01 : f32
      %179 = vector.broadcast %cst_195 : f32 to vector<32x286xf32>
      %180 = arith.mulf %179, %176 : vector<32x286xf32>
      %181 = arith.select %178, %176, %180 : vector<32x286xi1>, vector<32x286xf32>
      %182 = vector.broadcast %0 : vector<1x286xf32> to vector<32x286xf32>
      %183 = arith.mulf %181, %182 : vector<32x286xf32>
      %c0_196 = arith.constant 0 : index
      %c128_197 = arith.constant 128 : index
      %184 = vector.load %arg11[%c0_196, %c128_197] : memref<32x433xf32, #tpu.memory_space<vmem>>, vector<32x286xf32>
      tpu.vector_store %arg11[%c0_196, %c128_197], %183 {strides = array<i32>} : memref<32x433xf32, #tpu.memory_space<vmem>>, vector<32x286xf32>,
    } else {
    }
    %c0_2 = arith.constant 0 : index
    %c0_3 = arith.constant 0 : index
    %c0_4 = arith.constant 0 : index
    %4 = vector.load %arg6[%c0_2, %c0_3, %c0_4] : memref<1x32x1xf32, #tpu.memory_space<vmem>>, vector<1x32x1xf32>
    %5 = vector.shape_cast %4 : vector<1x32x1xf32> to vector<32x1xf32>
    %c0_5 = arith.constant 0 : index
    %c0_6 = arith.constant 0 : index
    %c0_7 = arith.constant 0 : index
    %c0_8 = arith.constant 0 : index
    %6 = vector.load %arg5[%c0_5, %c0_6, %c0_7, %c0_8] : memref<1x9x32x32xf32, #tpu.memory_space<vmem>>, vector<1x1x32x32xf32>
    %7 = vector.shape_cast %6 : vector<1x1x32x32xf32> to vector<32x32xf32>
    %c0_9 = arith.constant 0 : index
    %c109 = arith.constant 109 : index
    %8 = vector.load %arg11[%c0_9, %c109] : memref<32x433xf32, #tpu.memory_space<vmem>>, vector<32x286xf32>
    %cst = arith.constant dense<0.000000e+00> : vector<32x286xf32>
    %9 = tpu.matmul %7, %8, %cst {dimension_numbers = #tpu.dot_dimension_numbers<[1], [0], [0], [1], [0, 0, 1, 1], [], []>} : vector<32x32xf32>, vector<32x286xf32>, vector<32x286xf32> -> vector<32x286xf32>
    %c0_10 = arith.constant 0 : index
    %c1 = arith.constant 1 : index
    %c0_11 = arith.constant 0 : index
    %c0_12 = arith.constant 0 : index
    %10 = vector.load %arg5[%c0_10, %c1, %c0_11, %c0_12] : memref<1x9x32x32xf32, #tpu.memory_space<vmem>>, vector<1x1x32x32xf32>
    %11 = vector.shape_cast %10 : vector<1x1x32x32xf32> to vector<32x32xf32>
    %c0_13 = arith.constant 0 : index
    %c110 = arith.constant 110 : index
    %12 = vector.load %arg11[%c0_13, %c110] : memref<32x433xf32, #tpu.memory_space<vmem>>, vector<32x286xf32>
    %cst_14 = arith.constant dense<0.000000e+00> : vector<32x286xf32>
    %13 = tpu.matmul %11, %12, %cst_14 {dimension_numbers = #tpu.dot_dimension_numbers<[1], [0], [0], [1], [0, 0, 1, 1], [], []>} : vector<32x32xf32>, vector<32x286xf32>, vector<32x286xf32> -> vector<32x286xf32>
    %14 = arith.addf %9, %13 : vector<32x286xf32>
    %c0_15 = arith.constant 0 : index
    %c2 = arith.constant 2 : index
    %c0_16 = arith.constant 0 : index
    %c0_17 = arith.constant 0 : index
    %15 = vector.load %arg5[%c0_15, %c2, %c0_16, %c0_17] : memref<1x9x32x32xf32, #tpu.memory_space<vmem>>, vector<1x1x32x32xf32>
    %16 = vector.shape_cast %15 : vector<1x1x32x32xf32> to vector<32x32xf32>
    %c0_18 = arith.constant 0 : index
    %c111 = arith.constant 111 : index
    %17 = vector.load %arg11[%c0_18, %c111] : memref<32x433xf32, #tpu.memory_space<vmem>>, vector<32x286xf32>
    %cst_19 = arith.constant dense<0.000000e+00> : vector<32x286xf32>
    %18 = tpu.matmul %16, %17, %cst_19 {dimension_numbers = #tpu.dot_dimension_numbers<[1], [0], [0], [1], [0, 0, 1, 1], [], []>} : vector<32x32xf32>, vector<32x286xf32>, vector<32x286xf32> -> vector<32x286xf32>
    %19 = arith.addf %14, %18 : vector<32x286xf32>
    %c0_20 = arith.constant 0 : index
    %c3 = arith.constant 3 : index
    %c0_21 = arith.constant 0 : index
    %c0_22 = arith.constant 0 : index
    %20 = vector.load %arg5[%c0_20, %c3, %c0_21, %c0_22] : memref<1x9x32x32xf32, #tpu.memory_space<vmem>>, vector<1x1x32x32xf32>
    %21 = vector.shape_cast %20 : vector<1x1x32x32xf32> to vector<32x32xf32>
    %c0_23 = arith.constant 0 : index
    %c127 = arith.constant 127 : index
    %22 = vector.load %arg11[%c0_23, %c127] : memref<32x433xf32, #tpu.memory_space<vmem>>, vector<32x286xf32>
    %cst_24 = arith.constant dense<0.000000e+00> : vector<32x286xf32>
    %23 = tpu.matmul %21, %22, %cst_24 {dimension_numbers = #tpu.dot_dimension_numbers<[1], [0], [0], [1], [0, 0, 1, 1], [], []>} : vector<32x32xf32>, vector<32x286xf32>, vector<32x286xf32> -> vector<32x286xf32>
    %24 = arith.addf %19, %23 : vector<32x286xf32>
    %c0_25 = arith.constant 0 : index
    %c4 = arith.constant 4 : index
    %c0_26 = arith.constant 0 : index
    %c0_27 = arith.constant 0 : index
    %25 = vector.load %arg5[%c0_25, %c4, %c0_26, %c0_27] : memref<1x9x32x32xf32, #tpu.memory_space<vmem>>, vector<1x1x32x32xf32>
    %26 = vector.shape_cast %25 : vector<1x1x32x32xf32> to vector<32x32xf32>
    %c0_28 = arith.constant 0 : index
    %c128 = arith.constant 128 : index
    %27 = vector.load %arg11[%c0_28, %c128] : memref<32x433xf32, #tpu.memory_space<vmem>>, vector<32x286xf32>
    %cst_29 = arith.constant dense<0.000000e+00> : vector<32x286xf32>
    %28 = tpu.matmul %26, %27, %cst_29 {dimension_numbers = #tpu.dot_dimension_numbers<[1], [0], [0], [1], [0, 0, 1, 1], [], []>} : vector<32x32xf32>, vector<32x286xf32>, vector<32x286xf32> -> vector<32x286xf32>
    %29 = arith.addf %24, %28 : vector<32x286xf32>
    %c0_30 = arith.constant 0 : index
    %c5 = arith.constant 5 : index
    %c0_31 = arith.constant 0 : index
    %c0_32 = arith.constant 0 : index
    %30 = vector.load %arg5[%c0_30, %c5, %c0_31, %c0_32] : memref<1x9x32x32xf32, #tpu.memory_space<vmem>>, vector<1x1x32x32xf32>
    %31 = vector.shape_cast %30 : vector<1x1x32x32xf32> to vector<32x32xf32>
    %c0_33 = arith.constant 0 : index
    %c129 = arith.constant 129 : index
    %32 = vector.load %arg11[%c0_33, %c129] : memref<32x433xf32, #tpu.memory_space<vmem>>, vector<32x286xf32>
    %cst_34 = arith.constant dense<0.000000e+00> : vector<32x286xf32>
    %33 = tpu.matmul %31, %32, %cst_34 {dimension_numbers = #tpu.dot_dimension_numbers<[1], [0], [0], [1], [0, 0, 1, 1], [], []>} : vector<32x32xf32>, vector<32x286xf32>, vector<32x286xf32> -> vector<32x286xf32>
    %34 = arith.addf %29, %33 : vector<32x286xf32>
    %c0_35 = arith.constant 0 : index
    %c6 = arith.constant 6 : index
    %c0_36 = arith.constant 0 : index
    %c0_37 = arith.constant 0 : index
    %35 = vector.load %arg5[%c0_35, %c6, %c0_36, %c0_37] : memref<1x9x32x32xf32, #tpu.memory_space<vmem>>, vector<1x1x32x32xf32>
    %36 = vector.shape_cast %35 : vector<1x1x32x32xf32> to vector<32x32xf32>
    %c0_38 = arith.constant 0 : index
    %c145 = arith.constant 145 : index
    %37 = vector.load %arg11[%c0_38, %c145] : memref<32x433xf32, #tpu.memory_space<vmem>>, vector<32x286xf32>
    %cst_39 = arith.constant dense<0.000000e+00> : vector<32x286xf32>
    %38 = tpu.matmul %36, %37, %cst_39 {dimension_numbers = #tpu.dot_dimension_numbers<[1], [0], [0], [1], [0, 0, 1, 1], [], []>} : vector<32x32xf32>, vector<32x286xf32>, vector<32x286xf32> -> vector<32x286xf32>
    %39 = arith.addf %34, %38 : vector<32x286xf32>
    %c0_40 = arith.constant 0 : index
    %c7 = arith.constant 7 : index
    %c0_41 = arith.constant 0 : index
    %c0_42 = arith.constant 0 : index
    %40 = vector.load %arg5[%c0_40, %c7, %c0_41, %c0_42] : memref<1x9x32x32xf32, #tpu.memory_space<vmem>>, vector<1x1x32x32xf32>
    %41 = vector.shape_cast %40 : vector<1x1x32x32xf32> to vector<32x32xf32>
    %c0_43 = arith.constant 0 : index
    %c146 = arith.constant 146 : index
    %42 = vector.load %arg11[%c0_43, %c146] : memref<32x433xf32, #tpu.memory_space<vmem>>, vector<32x286xf32>
    %cst_44 = arith.constant dense<0.000000e+00> : vector<32x286xf32>
    %43 = tpu.matmul %41, %42, %cst_44 {dimension_numbers = #tpu.dot_dimension_numbers<[1], [0], [0], [1], [0, 0, 1, 1], [], []>} : vector<32x32xf32>, vector<32x286xf32>, vector<32x286xf32> -> vector<32x286xf32>
    %44 = arith.addf %39, %43 : vector<32x286xf32>
    %c0_45 = arith.constant 0 : index
    %c8 = arith.constant 8 : index
    %c0_46 = arith.constant 0 : index
    %c0_47 = arith.constant 0 : index
    %45 = vector.load %arg5[%c0_45, %c8, %c0_46, %c0_47] : memref<1x9x32x32xf32, #tpu.memory_space<vmem>>, vector<1x1x32x32xf32>
    %46 = vector.shape_cast %45 : vector<1x1x32x32xf32> to vector<32x32xf32>
    %c0_48 = arith.constant 0 : index
    %c147 = arith.constant 147 : index
    %47 = vector.load %arg11[%c0_48, %c147] : memref<32x433xf32, #tpu.memory_space<vmem>>, vector<32x286xf32>
    %cst_49 = arith.constant dense<0.000000e+00> : vector<32x286xf32>
    %48 = tpu.matmul %46, %47, %cst_49 {dimension_numbers = #tpu.dot_dimension_numbers<[1], [0], [0], [1], [0, 0, 1, 1], [], []>} : vector<32x32xf32>, vector<32x286xf32>, vector<32x286xf32> -> vector<32x286xf32>
    %49 = arith.addf %44, %48 : vector<32x286xf32>
    %50 = vector.broadcast %5 : vector<32x1xf32> to vector<32x286xf32>
    %51 = arith.addf %49, %50 : vector<32x286xf32>
    %cst_50 = arith.constant 0.000000e+00 : f32
    %52 = vector.broadcast %cst_50 : f32 to vector<32x286xf32>
    %53 = arith.maximumf %51, %52 : vector<32x286xf32>
    %54 = vector.broadcast %0 : vector<1x286xf32> to vector<32x286xf32>
    %55 = arith.mulf %53, %54 : vector<32x286xf32>
    %c0_51 = arith.constant 0 : index
    %c128_52 = arith.constant 128 : index
    %56 = vector.load %arg12[%c0_51, %c128_52] : memref<32x433xf32, #tpu.memory_space<vmem>>, vector<32x286xf32>
    tpu.vector_store %arg12[%c0_51, %c128_52], %55 {strides = array<i32>} : memref<32x433xf32, #tpu.memory_space<vmem>>, vector<32x286xf32>,
    %c0_53 = arith.constant 0 : index
    %c0_54 = arith.constant 0 : index
    %c0_55 = arith.constant 0 : index
    %57 = vector.load %arg8[%c0_53, %c0_54, %c0_55] : memref<1x32x1xf32, #tpu.memory_space<vmem>>, vector<1x32x1xf32>
    %58 = vector.shape_cast %57 : vector<1x32x1xf32> to vector<32x1xf32>
    %c0_56 = arith.constant 0 : index
    %c0_57 = arith.constant 0 : index
    %c0_58 = arith.constant 0 : index
    %c0_59 = arith.constant 0 : index
    %59 = vector.load %arg7[%c0_56, %c0_57, %c0_58, %c0_59] : memref<1x9x32x32xf32, #tpu.memory_space<vmem>>, vector<1x1x32x32xf32>
    %60 = vector.shape_cast %59 : vector<1x1x32x32xf32> to vector<32x32xf32>
    %c0_60 = arith.constant 0 : index
    %c109_61 = arith.constant 109 : index
    %61 = vector.load %arg12[%c0_60, %c109_61] : memref<32x433xf32, #tpu.memory_space<vmem>>, vector<32x286xf32>
    %cst_62 = arith.constant dense<0.000000e+00> : vector<32x286xf32>
    %62 = tpu.matmul %60, %61, %cst_62 {dimension_numbers = #tpu.dot_dimension_numbers<[1], [0], [0], [1], [0, 0, 1, 1], [], []>} : vector<32x32xf32>, vector<32x286xf32>, vector<32x286xf32> -> vector<32x286xf32>
    %c0_63 = arith.constant 0 : index
    %c1_64 = arith.constant 1 : index
    %c0_65 = arith.constant 0 : index
    %c0_66 = arith.constant 0 : index
    %63 = vector.load %arg7[%c0_63, %c1_64, %c0_65, %c0_66] : memref<1x9x32x32xf32, #tpu.memory_space<vmem>>, vector<1x1x32x32xf32>
    %64 = vector.shape_cast %63 : vector<1x1x32x32xf32> to vector<32x32xf32>
    %c0_67 = arith.constant 0 : index
    %c110_68 = arith.constant 110 : index
    %65 = vector.load %arg12[%c0_67, %c110_68] : memref<32x433xf32, #tpu.memory_space<vmem>>, vector<32x286xf32>
    %cst_69 = arith.constant dense<0.000000e+00> : vector<32x286xf32>
    %66 = tpu.matmul %64, %65, %cst_69 {dimension_numbers = #tpu.dot_dimension_numbers<[1], [0], [0], [1], [0, 0, 1, 1], [], []>} : vector<32x32xf32>, vector<32x286xf32>, vector<32x286xf32> -> vector<32x286xf32>
    %67 = arith.addf %62, %66 : vector<32x286xf32>
    %c0_70 = arith.constant 0 : index
    %c2_71 = arith.constant 2 : index
    %c0_72 = arith.constant 0 : index
    %c0_73 = arith.constant 0 : index
    %68 = vector.load %arg7[%c0_70, %c2_71, %c0_72, %c0_73] : memref<1x9x32x32xf32, #tpu.memory_space<vmem>>, vector<1x1x32x32xf32>
    %69 = vector.shape_cast %68 : vector<1x1x32x32xf32> to vector<32x32xf32>
    %c0_74 = arith.constant 0 : index
    %c111_75 = arith.constant 111 : index
    %70 = vector.load %arg12[%c0_74, %c111_75] : memref<32x433xf32, #tpu.memory_space<vmem>>, vector<32x286xf32>
    %cst_76 = arith.constant dense<0.000000e+00> : vector<32x286xf32>
    %71 = tpu.matmul %69, %70, %cst_76 {dimension_numbers = #tpu.dot_dimension_numbers<[1], [0], [0], [1], [0, 0, 1, 1], [], []>} : vector<32x32xf32>, vector<32x286xf32>, vector<32x286xf32> -> vector<32x286xf32>
    %72 = arith.addf %67, %71 : vector<32x286xf32>
    %c0_77 = arith.constant 0 : index
    %c3_78 = arith.constant 3 : index
    %c0_79 = arith.constant 0 : index
    %c0_80 = arith.constant 0 : index
    %73 = vector.load %arg7[%c0_77, %c3_78, %c0_79, %c0_80] : memref<1x9x32x32xf32, #tpu.memory_space<vmem>>, vector<1x1x32x32xf32>
    %74 = vector.shape_cast %73 : vector<1x1x32x32xf32> to vector<32x32xf32>
    %c0_81 = arith.constant 0 : index
    %c127_82 = arith.constant 127 : index
    %75 = vector.load %arg12[%c0_81, %c127_82] : memref<32x433xf32, #tpu.memory_space<vmem>>, vector<32x286xf32>
    %cst_83 = arith.constant dense<0.000000e+00> : vector<32x286xf32>
    %76 = tpu.matmul %74, %75, %cst_83 {dimension_numbers = #tpu.dot_dimension_numbers<[1], [0], [0], [1], [0, 0, 1, 1], [], []>} : vector<32x32xf32>, vector<32x286xf32>, vector<32x286xf32> -> vector<32x286xf32>
    %77 = arith.addf %72, %76 : vector<32x286xf32>
    %c0_84 = arith.constant 0 : index
    %c4_85 = arith.constant 4 : index
    %c0_86 = arith.constant 0 : index
    %c0_87 = arith.constant 0 : index
    %78 = vector.load %arg7[%c0_84, %c4_85, %c0_86, %c0_87] : memref<1x9x32x32xf32, #tpu.memory_space<vmem>>, vector<1x1x32x32xf32>
    %79 = vector.shape_cast %78 : vector<1x1x32x32xf32> to vector<32x32xf32>
    %c0_88 = arith.constant 0 : index
    %c128_89 = arith.constant 128 : index
    %80 = vector.load %arg12[%c0_88, %c128_89] : memref<32x433xf32, #tpu.memory_space<vmem>>, vector<32x286xf32>
    %cst_90 = arith.constant dense<0.000000e+00> : vector<32x286xf32>
    %81 = tpu.matmul %79, %80, %cst_90 {dimension_numbers = #tpu.dot_dimension_numbers<[1], [0], [0], [1], [0, 0, 1, 1], [], []>} : vector<32x32xf32>, vector<32x286xf32>, vector<32x286xf32> -> vector<32x286xf32>
    %82 = arith.addf %77, %81 : vector<32x286xf32>
    %c0_91 = arith.constant 0 : index
    %c5_92 = arith.constant 5 : index
    %c0_93 = arith.constant 0 : index
    %c0_94 = arith.constant 0 : index
    %83 = vector.load %arg7[%c0_91, %c5_92, %c0_93, %c0_94] : memref<1x9x32x32xf32, #tpu.memory_space<vmem>>, vector<1x1x32x32xf32>
    %84 = vector.shape_cast %83 : vector<1x1x32x32xf32> to vector<32x32xf32>
    %c0_95 = arith.constant 0 : index
    %c129_96 = arith.constant 129 : index
    %85 = vector.load %arg12[%c0_95, %c129_96] : memref<32x433xf32, #tpu.memory_space<vmem>>, vector<32x286xf32>
    %cst_97 = arith.constant dense<0.000000e+00> : vector<32x286xf32>
    %86 = tpu.matmul %84, %85, %cst_97 {dimension_numbers = #tpu.dot_dimension_numbers<[1], [0], [0], [1], [0, 0, 1, 1], [], []>} : vector<32x32xf32>, vector<32x286xf32>, vector<32x286xf32> -> vector<32x286xf32>
    %87 = arith.addf %82, %86 : vector<32x286xf32>
    %c0_98 = arith.constant 0 : index
    %c6_99 = arith.constant 6 : index
    %c0_100 = arith.constant 0 : index
    %c0_101 = arith.constant 0 : index
    %88 = vector.load %arg7[%c0_98, %c6_99, %c0_100, %c0_101] : memref<1x9x32x32xf32, #tpu.memory_space<vmem>>, vector<1x1x32x32xf32>
    %89 = vector.shape_cast %88 : vector<1x1x32x32xf32> to vector<32x32xf32>
    %c0_102 = arith.constant 0 : index
    %c145_103 = arith.constant 145 : index
    %90 = vector.load %arg12[%c0_102, %c145_103] : memref<32x433xf32, #tpu.memory_space<vmem>>, vector<32x286xf32>
    %cst_104 = arith.constant dense<0.000000e+00> : vector<32x286xf32>
    %91 = tpu.matmul %89, %90, %cst_104 {dimension_numbers = #tpu.dot_dimension_numbers<[1], [0], [0], [1], [0, 0, 1, 1], [], []>} : vector<32x32xf32>, vector<32x286xf32>, vector<32x286xf32> -> vector<32x286xf32>
    %92 = arith.addf %87, %91 : vector<32x286xf32>
    %c0_105 = arith.constant 0 : index
    %c7_106 = arith.constant 7 : index
    %c0_107 = arith.constant 0 : index
    %c0_108 = arith.constant 0 : index
    %93 = vector.load %arg7[%c0_105, %c7_106, %c0_107, %c0_108] : memref<1x9x32x32xf32, #tpu.memory_space<vmem>>, vector<1x1x32x32xf32>
    %94 = vector.shape_cast %93 : vector<1x1x32x32xf32> to vector<32x32xf32>
    %c0_109 = arith.constant 0 : index
    %c146_110 = arith.constant 146 : index
    %95 = vector.load %arg12[%c0_109, %c146_110] : memref<32x433xf32, #tpu.memory_space<vmem>>, vector<32x286xf32>
    %cst_111 = arith.constant dense<0.000000e+00> : vector<32x286xf32>
    %96 = tpu.matmul %94, %95, %cst_111 {dimension_numbers = #tpu.dot_dimension_numbers<[1], [0], [0], [1], [0, 0, 1, 1], [], []>} : vector<32x32xf32>, vector<32x286xf32>, vector<32x286xf32> -> vector<32x286xf32>
    %97 = arith.addf %92, %96 : vector<32x286xf32>
    %c0_112 = arith.constant 0 : index
    %c8_113 = arith.constant 8 : index
    %c0_114 = arith.constant 0 : index
    %c0_115 = arith.constant 0 : index
    %98 = vector.load %arg7[%c0_112, %c8_113, %c0_114, %c0_115] : memref<1x9x32x32xf32, #tpu.memory_space<vmem>>, vector<1x1x32x32xf32>
    %99 = vector.shape_cast %98 : vector<1x1x32x32xf32> to vector<32x32xf32>
    %c0_116 = arith.constant 0 : index
    %c147_117 = arith.constant 147 : index
    %100 = vector.load %arg12[%c0_116, %c147_117] : memref<32x433xf32, #tpu.memory_space<vmem>>, vector<32x286xf32>
    %cst_118 = arith.constant dense<0.000000e+00> : vector<32x286xf32>
    %101 = tpu.matmul %99, %100, %cst_118 {dimension_numbers = #tpu.dot_dimension_numbers<[1], [0], [0], [1], [0, 0, 1, 1], [], []>} : vector<32x32xf32>, vector<32x286xf32>, vector<32x286xf32> -> vector<32x286xf32>
    %102 = arith.addf %97, %101 : vector<32x286xf32>
    %103 = vector.broadcast %58 : vector<32x1xf32> to vector<32x286xf32>
    %104 = arith.addf %102, %103 : vector<32x286xf32>
    %c0_119 = arith.constant 0 : index
    %c128_120 = arith.constant 128 : index
    %105 = vector.load %arg11[%c0_119, %c128_120] : memref<32x433xf32, #tpu.memory_space<vmem>>, vector<32x286xf32>
    %106 = arith.addf %105, %104 : vector<32x286xf32>
    %107 = vector.broadcast %0 : vector<1x286xf32> to vector<32x286xf32>
    %108 = arith.mulf %106, %107 : vector<32x286xf32>
    %c0_121 = arith.constant 0 : index
    %c128_122 = arith.constant 128 : index
    %109 = vector.load %arg11[%c0_121, %c128_122] : memref<32x433xf32, #tpu.memory_space<vmem>>, vector<32x286xf32>
    tpu.vector_store %arg11[%c0_121, %c128_122], %108 {strides = array<i32>} : memref<32x433xf32, #tpu.memory_space<vmem>>, vector<32x286xf32>,
    %c1_i32 = arith.constant 1 : i32
    %110 = arith.cmpi eq, %arg1, %c1_i32 : i32
    %111 = arith.extui %110 : i1 to i32
    %c0_i32_123 = arith.constant 0 : i32
    %112 = arith.cmpi ne, %111, %c0_i32_123 : i32
    scf.if %112 {
      %c0_124 = arith.constant 0 : index
      %c0_125 = arith.constant 0 : index
      %c0_126 = arith.constant 0 : index
      %113 = vector.load %arg10[%c0_124, %c0_125, %c0_126] : memref<1x32x286xf32, #tpu.memory_space<vmem>>, vector<1x32x286xf32>
      %114 = vector.shape_cast %113 : vector<1x32x286xf32> to vector<32x286xf32>
      %115 = vector.shape_cast %106 : vector<32x286xf32> to vector<1x32x286xf32>
      tpu.vector_store %arg10[%c0_124, %c0_125, %c0_126], %115 {strides = array<i32>} : memref<1x32x286xf32, #tpu.memory_space<vmem>>, vector<1x32x286xf32>,
    } else {
    }
    return
  }
  func.func @transform_0(%arg0: i32, %arg1: i32) -> (i32, i32, i32) {
    %c0_i32 = arith.constant 0 : i32
    %c0_i32_0 = arith.constant 0 : i32
    %c0_i32_1 = arith.constant 0 : i32
    return %arg0, %c0_i32, %c0_i32_0 : i32, i32, i32
  }
  func.func @transform_1(%arg0: i32, %arg1: i32) -> (i32, i32, i32) {
    %c0_i32 = arith.constant 0 : i32
    %c0_i32_0 = arith.constant 0 : i32
    %c0_i32_1 = arith.constant 0 : i32
    %c0_i32_2 = arith.constant 0 : i32
    return %c0_i32, %c0_i32_0, %c0_i32_1 : i32, i32, i32
  }
  func.func @transform_2(%arg0: i32, %arg1: i32) -> (i32, i32) {
    %c0_i32 = arith.constant 0 : i32
    %c0_i32_0 = arith.constant 0 : i32
    %c0_i32_1 = arith.constant 0 : i32
    return %c0_i32, %c0_i32_0 : i32, i32
  }
  func.func @transform_3(%arg0: i32, %arg1: i32) -> (i32, i32, i32, i32) {
    %c0_i32 = arith.constant 0 : i32
    %c0_i32_0 = arith.constant 0 : i32
    %c0_i32_1 = arith.constant 0 : i32
    %c0_i32_2 = arith.constant 0 : i32
    return %arg1, %c0_i32, %c0_i32_0, %c0_i32_1 : i32, i32, i32, i32
  }
  func.func @transform_4(%arg0: i32, %arg1: i32) -> (i32, i32, i32) {
    %c0_i32 = arith.constant 0 : i32
    %c0_i32_0 = arith.constant 0 : i32
    %c0_i32_1 = arith.constant 0 : i32
    return %arg1, %c0_i32, %c0_i32_0 : i32, i32, i32
  }
  func.func @transform_5(%arg0: i32, %arg1: i32) -> (i32, i32, i32, i32) {
    %c0_i32 = arith.constant 0 : i32
    %c0_i32_0 = arith.constant 0 : i32
    %c0_i32_1 = arith.constant 0 : i32
    %c0_i32_2 = arith.constant 0 : i32
    return %arg1, %c0_i32, %c0_i32_0, %c0_i32_1 : i32, i32, i32, i32
  }
  func.func @transform_6(%arg0: i32, %arg1: i32) -> (i32, i32, i32) {
    %c0_i32 = arith.constant 0 : i32
    %c0_i32_0 = arith.constant 0 : i32
    %c0_i32_1 = arith.constant 0 : i32
    return %arg1, %c0_i32, %c0_i32_0 : i32, i32, i32
  }
  func.func @transform_7(%arg0: i32, %arg1: i32) -> (i32, i32) {
    %c0_i32 = arith.constant 0 : i32
    %c0_i32_0 = arith.constant 0 : i32
    %c0_i32_1 = arith.constant 0 : i32
    return %c0_i32, %c0_i32_0 : i32, i32
  }
  func.func @transform_8(%arg0: i32, %arg1: i32) -> (i32, i32, i32) {
    %c0_i32 = arith.constant 0 : i32
    %c0_i32_0 = arith.constant 0 : i32
    %c0_i32_1 = arith.constant 0 : i32
    return %arg0, %c0_i32, %c0_i32_0 : i32, i32, i32
  }
}

</mosaic_0001>

<bundles_post_ra>
// kernel: tpu_custom_call.1
= control target key start
LH: loop header
LB: loop body
LE: loop exit
PB: predicated region body
PF: predicated region fallthrough
CT: control target
= control target key end

     0   :  { %s11238_s0 = inlined_call_operand.vmem [shape: f32[2,8,324], index: 0, kind: input, shape index: {}]   ;;  %s11239_s1 = inlined_call_operand.vmem [shape: f32[9,32,8], index: 1, kind: input, shape index: {}]   ;;  %s11240_s2 = inlined_call_operand.vmem [shape: f32[32,1], index: 2, kind: input, shape index: {}]   ;;  %s11241_s3 = inlined_call_operand.hbm [shape: f32[2,9,32,32], index: 3, kind: input, shape index: {}]   ;;  %s11242_s4 = inlined_call_operand.vmem [shape: f32[2,32,1], index: 4, kind: input, shape index: {}]   ;;  %s11243_s5 = inlined_call_operand.hbm [shape: f32[2,9,32,32], index: 5, kind: input, shape index: {}]   ;;  %s11244_s6 = inlined_call_operand.vmem [shape: f32[2,32,1], index: 6, kind: input, shape index: {}]   ;;  %s11245_s7 = inlined_call_operand.vmem [shape: f32[1,286], index: 7, kind: input, shape index: {}]   ;;  %s11246_s8 = inlined_call_operand.hbm [shape: f32[2,32,286], index: 8, kind: output, shape index: {}]  }
   0x1   :  { %11288 = sst [smem:[#allocation62_spill]] %s11241_s3 }
   0x2   :  { %11289 = sst [smem:[#allocation63_spill]] %s11246_s8 }
   0x3   :  { %13 = vsyncpa [#allocation5], 0 }
   0x4   :  { %15 = vsyncpa [#allocation5 + $0x1], 0 }
   0x5   :  { %16 = vsyncpa [#allocation8], 0 }
   0x6   :  { %18 = vsyncpa [#allocation8 + $0x1], 0 }
   0x7   :  { %19 = vsyncpa [#allocation6], 0 }
   0x8   :  { %21 = vsyncpa [#allocation6 + $0x1], 0  ;;  %s8542_s27 = smov 0   ;;  %s8544_s28 = smov 0  }
   0x9   :  { %s8546_s29 = smov 0   ;;  %s8548_s30 = smov 0  }
   0xa   :  { %s8550_s9 = smov 0   ;;  %s8552_s10 = smov 0  }
   0xb   :  { %s8554_s11 = smov 0   ;;  %s8556_s12 = smov 0  }
   0xc   :  { %s8558_s13 = smov 0   ;;  %s8560_s14 = smov 0  }
   0xd   :  { %s8562_s15 = smov 0  }
   0xe LB: > { %11290 = sst [smem:[#allocation13_spill]] %s8428_s27  ;;  %s7299_s16 = sadd.s32 4294967295, %s8468_s15   ;;  %s8468_s15 = sphi %s8562_s15, %s27_s15   ;;  %s8464_s14 = sphi %s8560_s14, %s11480_s14   ;;  %s8460_s13 = sphi %s8558_s13, %s11474_s13   ;;  %s8456_s12 = sphi %s8556_s12, %s11473_s12   ;;  %s8452_s11 = sphi %s8554_s11, %s11472_s11   ;;  %s8448_s10 = sphi %s8552_s10, %s11471_s10   ;;  %s8444_s9 = sphi %s8550_s9, %s11479_s9   ;;  %s8440_s30 = sphi %s8548_s30, %s11478_s30   ;;  %s8436_s29 = sphi %s8546_s29, %s11469_s29   ;;  %s8432_s28 = sphi %s8544_s28, %s11477_s28   ;;  %s8428_s27 = sphi %s8542_s27, %s11476_s27  }
   0xf   : > { %11291 = sst [smem:[#allocation14_spill]] %s8436_s29  ;;  %s7300_s17 = sadd.s32 4294967294, %s8468_s15  }
  0x10   : > { %11292 = sst [smem:[#allocation15_spill]] %s8448_s10  ;;  %s36_s18 = sadd.s32 1, %s8460_s13 }
  0x11   : > { %11293 = sst [smem:[#allocation16_spill]] %s8460_s13  ;;  %s39_s19 = sadd.s32 1, %s8464_s14 }
  0x12   : > { %11294 = sst [smem:[#allocation17_spill]] %s8464_s14  ;;  %p37_p0 = scmp.ge.s32.totalorder %s36_s18, 2 }
  0x13   : > { %s114_s20 = sadd.s32 1, %s8448_s10  ;;  %p121_p1 = scmp.ne.s32.totalorder %s8448_s10, %s8444_s9 }
  0x14   : > { %p122_p2 = scmp.eq.s32.totalorder %s8468_s15, 0  ;;  %s11482_s18 = smov (%p37_p0, %s36_s18), 0 }
  0x15   : > { %11295 = sst [smem:[#allocation18_spill]] %s11482_s18  ;;  %s11484_s19 = smov (!%p37_p0, %s39_s19), %s8464_s14 }
  0x16   : > { %s111_s21 = ssub.s32 %s8460_s13, %s11482_s18  ;;  %p8608_p3 = por %p122_p2, %p121_p1 }
  0x17   : > { %p41_p4 = scmp.ge.s32.totalorder %s11484_s19, 2  ;;  %p112_p5 = scmp.eq.s32.totalorder %s111_s21, 0 }
  0x18   : > { %p127_p6 = scmp.ne.s32.totalorder %s8444_s9, %s8440_s30  ;;  %p128_p7 = scmp.eq.s32.totalorder %s7299_s16, 0 }
  0x19   : > { %s11486_s19 = smov (%p41_p4, %s11484_s19), 0  ;;  %s239_s26 = sadd.s32 1, %s8436_s29 }
  0x1a   : > { %11297 = sst [smem:[#allocation19_spill]] %s11486_s19  ;;  %p8618_p8 = por %p128_p7, %p127_p6 }
  0x1b   : > { %s8616_s23 = scalar_select %p112_p5, %s8448_s10, %s114_s20  }
  0x1c   : > { %s236_s25 = ssub.s32 %s8464_s14, %s11486_s19  ;;  %p249_p10 = scmp.ne.s32.totalorder %s8436_s29, %s8432_s28 }
  0x1d   : > { %11298 = sst [smem:[#allocation20_spill]] %s8616_s23  ;;  %p237_p9 = scmp.eq.s32.totalorder %s236_s25, 0 }
  0x1e   : > { %p250_p11 = scmp.eq.s32.totalorder %s7299_s16, 3  ;;  %p255_p13 = scmp.ne.s32.totalorder %s8432_s28, %s8428_s27 }
  0x1f   : > { %s8628_s21 = scalar_select %p237_p9, %s8436_s29, %s239_s26  }
  0x20   : > { %p8630_p12 = por %p250_p11, %p249_p10  ;;  %p256_p0 = scmp.eq.s32.totalorder %s7300_s17, 3 }
  0x21   : > { %11300 = sst [smem:[#allocation21_spill]] %s8628_s21  ;;  %p8170_p1 = scmp.lt.s32.totalorder %s8468_s15, 4 }
  0x22   : > { %s8638_s20 = sand.u32 1, %s8448_s10   ;;  %p8640_p2 = por %p256_p0, %p255_p13 }
  0x23   : > { %s8145_s25 = smul.u32 288, %s8638_s20  ;;  %p8647_p4 = pnand %p8170_p1, %p8608_p3 }
  0x24   : > { %s11302_s19 = scalar_select %p8640_p2, 1, 0 }
  0x25   : > { %s8146_s26 = smul.u32 4608, %s8460_s13  ;;  %s11305_s3 = sld [smem:[#allocation62_spill]] }
  0x26   : > { %11303 = sst [smem:[#allocation22_spill]] %s11302_s19  ;;  %s297_s23 = scalar_lea.vmem [#allocation4], %s8145_s25 }
  0x27   : > { %s304_s10 = sshll.u32 %s297_s23, 4  ;;  %s294_s21 = scalar_lea.sflag [#allocation5], %s8638_s20  ;;  %s305_s10 = int_to_ptr.vmem [resolvable:$true] %s304_s10 }
  0x28   : > { %p8290_p5 = pneg %p8647_p4  ;;  %s8301_s29 = scalar_lea.vmem %s305_s10, 4608 }
  0x29   : > { %p8302_p6 = scmp.ne.s32.totalorder %s305_s10, %s8301_s29  ;;  %s8470_s22 = smov [#allocation4]  }
  0x2a   : > { %s8306_s19 = sshll.u32 %s8470_s22, 4  ;;  %s8307_s19 = int_to_ptr.vmem [resolvable:$false] %s8306_s19 }
  0x2b   : > { %s303_s14 = scalar_lea.hbm %s11305_s3, %s8146_s26  ;;  %p8304_p3 = pnand %p8302_p6, %p8290_p5 }
  0x2c   : > { %s8308_s13 = scalar_lea.vmem %s8307_s19, 9216  ;;  %p8309_p9 = scmp.lt.s32.totalorder %s305_s10, %s8307_s19 }
  0x2d   : > { %p8305_p7 = pneg %p8304_p3  ;;  %p8310_p10 = scmp.lt.s32.totalorder %s8308_s13, %s8301_s29 }
  0x2f   : > { %p8311_p11 = por %p8310_p10, %p8309_p9 }
  0x31   : > { %p8312_p13 = pnand %p8311_p11, %p8305_p7 }
  0x33   : > { %8315 = shalt.err (!%p8312_p13)
}
  0x34   : > { %s8471_s18 = smov 128   ;;  %s8472_s23 = smov 8  }
  0x35   : > { %8162 = dma.hbm_to_vmem [thread:$0]  (!%p8647_p4), %s303_s14, 4608, %s305_s10, %s294_s21, %s8471_s18, %s8471_s18, %s8472_s23  }
  0x36   : > { %p7305_p0 = scmp.ge.s32.totalorder %s8468_s15, 1  ;;  %p349_p1 = scmp.lt.s32.totalorder %s8468_s15, 5 }
  0x37   : > { %s332_s19 = scalar_lea.hbm %s11243_s5, %s8146_s26  ;;  %s326_s22 = scalar_lea.vmem [#allocation7], %s8145_s25 }
  0x38   : > { %p8667_p6 = pnand %p7305_p0, %p349_p1  ;;  %s333_s3 = sshll.u32 %s326_s22, 4  ;;  %s334_s3 = int_to_ptr.vmem [resolvable:$true] %s333_s3 }
  0x39   : > { %s323_s27 = scalar_lea.sflag [#allocation8], %s8638_s20  ;;  %s8329_s8 = scalar_lea.vmem %s334_s3, 4608 }
  0x3a   : > { %p8330_p3 = scmp.ne.s32.totalorder %s334_s3, %s8329_s8  ;;  %s8473_s10 = smov [#allocation7]  }
  0x3b   : > { %s8334_s14 = sshll.u32 %s8473_s10, 4  ;;  %s8335_s14 = int_to_ptr.vmem [resolvable:$false] %s8334_s14 }
  0x3c   : > { %p8332_p7 = pnand %p8330_p3, %p8290_p5  ;;  %s8336_s21 = scalar_lea.vmem %s8335_s14, 9216 }
  0x3d   : > { %p8337_p10 = scmp.lt.s32.totalorder %s334_s3, %s8335_s14  ;;  %p8338_p11 = scmp.lt.s32.totalorder %s8336_s21, %s8329_s8 }
  0x3e   : > { %p8333_p9 = pneg %p8332_p7 }
  0x3f   : > { %p8339_p13 = por %p8338_p11, %p8337_p10 }
  0x41   : > { %p8340_p0 = pnand %p8339_p13, %p8333_p9 }
  0x43   : > { %8343 = shalt.err (!%p8340_p0)
}
  0x44   : > { %8165 = dma.hbm_to_vmem [thread:$0]  (!%p8647_p4), %s332_s19, 4608, %s334_s3, %s323_s27, %s8471_s18, %s8471_s18, %s8472_s23  }
  0x45   : > { %353 = sbr.rel (%p8667_p6) target bundleno = 1666 (0x682), region = 52 }
  0x4a   : > { %s355_s20 = sand.u32 1, %s8444_s9  }
  0x4b   : > { %s8149_s25 = smul.u32 288, %s355_s20  ;;  %s356_s26 = scalar_lea.sflag [#allocation5], %s355_s20 }
  0x4d   : > { %s8685_s29 = scalar_lea.vmem [#allocation4], %s8149_s25 }
  0x4e   : > { %8415 = dma.done.wait (%p8618_p8), %s356_s26, 4608  }
  0x4f   : > { %8417 = vsyncadd (%p8618_p8), %s356_s26, 4294962688  ;;  %s365_s8 = scalar_lea.sflag [#allocation8], %s355_s20  ;;  %s8691_s13 = scalar_lea.vmem [#allocation7], %s8149_s25 }
  0x50   : > { %8419 = dma.done.wait (%p8618_p8), %s365_s8, 4608  }
  0x51   : > { %8421 = vsyncadd (%p8618_p8), %s365_s8, 4294962688  ;;  %s11256_s3 = sand.u32 1, %s8432_s28   ;;  %p421_p4 = scmp.lt.s32.totalorder %s8456_s12, 1  ;;  %v8710_v0 = vld [vmem:[%s11245_s7] sm:$0x7] }
  0x52   : > { %s8150_s27 = smul.u32 96, %s11256_s3  ;;  %p426_p5 = scmp.lt.s32.totalorder %s8452_s11, 1 }
  0x53   : > { %s422_s16 = scalar_select %p421_p4, %s8456_s12, 1 }
  0x54   : > { %s427_s23 = scalar_select %p426_p5, %s8452_s11, 1 }
  0x55   : > { %s8151_s18 = smul.u32 24, %s422_s16  ;;  %s8722_s3 = scalar_lea.vmem [#allocation9], %s8150_s27 }
  0x56   : > { %s7628_s14 = sshll.u32 %s427_s23, 5  ;;  %p7311_p8 = scmp.ne.s32.totalorder %s8452_s11, 0 }
  0x57   : > { %s425_s22 = scalar_lea.vmem %s11238_s0, %s8151_s18  ;;  %s8715_s25 = scalar_lea.vmem %s11242_s4, %s7628_s14 }
  0x58   : > { %s8720_s16 = scalar_lea.vmem %s11244_s6, %s7628_s14  ;;  %440 = sbr.rel (%p7311_p8) target bundleno = 529 (0x211), region = 64 }
  0x5d   : > { %v8725_v1 = vld [vmem:[%s425_s22 + $0x8] sm:$0xff]  ;;  %v8727_v2 = vld [vmem:[%s425_s22] sm:$0xff]  ;;  %s8474_s18 = smov 127   ;;  %v8731_v3 = vld [vmem:[%s425_s22 + $0x10] sm:$0xff]  ;;  %v8475_v4 = vmov 0.0   ;;  %s8476_s27 = smov 126  }
  0x5e   : > { %479 = vrot.lane.b32.xlu0 %v8725_v1, %s8474_s18  ;;  %477 = vrot.lane.b32.xlu1 %v8727_v2, %s8474_s18  ;;  %441 = vst [vmem:[#allocation2] sm:$0xff] %v8475_v4  ;;  %442 = vst [vmem:[#allocation2 + $0x20] sm:$0xff] %v8475_v4  ;;  %s8477_s23 = smov 110   ;;  %s8478_s17 = smov 109   ;;  %v458_v5 = vld [vmem:[%s11240_s2] sm:$0xff]  ;;  %v459_v6 = vld [vmem:[%s11240_s2 + $0x8] sm:$0xff] }
  0x5f   : > { %443 = vst [vmem:[#allocation2 + $0x40] sm:$0xff] %v8475_v4  ;;  %444 = vst [vmem:[#allocation2 + $0x60] sm:$0xff] %v8475_v4  ;;  %566 = vmatprep.mubr.f32.mxu0 %v8475_v4  ;;  %584 = vmatprep.mubr.f32.mxu1 %v8475_v4  ;;  %s8479_s19 = smov 108   ;;  %s8480_s22 = smov 92   ;;  %v8483_v7 = vmov 0   ;;  %v460_v8 = vld [vmem:[%s11240_s2 + $0x10] sm:$0xff] }
  0x60   : > { %450 = vst [vmem:[#allocation3] sm:$0xff] %v8475_v4  ;;  %451 = vst [vmem:[#allocation3 + $0x20] sm:$0xff] %v8475_v4  ;;  %s8481_s24 = smov 91   ;;  %s8482_s10 = smov 90   ;;  %8284 = vset.pattern.permute.xlu0 %v8483_v7  ;;  %8285 = vset.pattern.permute.xlu1 %v8483_v7  ;;  %v461_v9 = vld [vmem:[%s11240_s2 + $0x18] sm:$0xff]  ;;  %vm483_vm0 = vcmask 1039360  }
  0x61   : > { %452 = vst [vmem:[#allocation3 + $0x40] sm:$0xff] %v8475_v4  ;;  %453 = vst [vmem:[#allocation3 + $0x60] sm:$0xff] %v8475_v4  ;;  %v7312_v14 = vld [vmem:[%s11239_s1 + $0x20] sm:$0xff]  ;;  %vm489_vm1 = vcmask 64512   ;;  %v7315_v15 = vld [vmem:[%s11239_s1 + $0x38] sm:$0xff]  ;;  %vm873_vm2 = vcmask 1031168  }
  0x62   : > { %481 = vrot.lane.b32.xlu0 %v8731_v3, %s8474_s18  ;;  %869 = vrot.lane.b32.xlu1 %v8725_v1, %s8476_s27  ;;  %v7313_v18 = vld [vmem:[%s11239_s1 + $0x28] sm:$0xff]  ;;  %v7314_v20 = vld [vmem:[%s11239_s1 + $0x30] sm:$0xff]  ;;  %vm1088_vm3 = vcmask 900096   ;;  %vm1303_vm4 = vcmask 891904   ;;  %vm1518_vm5 = vcmask 883712   ;;  %vm1733_vm6 = vcmask 752640  }
  0x63   : > { %v462_v23 = vld [vmem:[%s11239_s1] sm:$0xff]  ;;  %v463_v25 = vld [vmem:[%s11239_s1 + $0x8] sm:$0xff]  ;;  %v464_v28 = vld [vmem:[%s11239_s1 + $0x10] sm:$0xff]  ;;  %vm1948_vm7 = vcmask 744448   ;;  %vm2163_vm8 = vcmask 736256   ;;  %vm445_vm9 = vcmask 400624  }
  0x64   : > { %v465_v31 = vld [vmem:[%s11239_s1 + $0x18] sm:$0xff]  ;;  %v7332_v33 = vld [vmem:[%s11239_s1 + $0x40] sm:$0xff]  ;;  %v7333_v36 = vld [vmem:[%s11239_s1 + $0x48] sm:$0xff]  ;;  %447 = vst.msk [vmem:[#allocation2 + $0x38] sm:$0xff] %vm445_vm9, %v8475_v4  ;;  %vm2465_vm12 = vcmask 244736  }
  0x65   : > { %v7334_v37 = vld [vmem:[%s11239_s1 + $0x50] sm:$0xff]  ;;  %v7335_v40 = vld [vmem:[%s11239_s1 + $0x58] sm:$0xff]  ;;  %v7344_v41 = vld [vmem:[%s11239_s1 + $0x60] sm:$0xff]  ;;  %454 = vst.msk [vmem:[#allocation3 + $0x18] sm:$0xff] %vm445_vm9, %v8475_v4 }
  0x66   : > { %871 = vrot.lane.b32.xlu0 %v8731_v3, %s8476_s27  ;;  %867 = vrot.lane.b32.xlu1 %v8727_v2, %s8476_s27  ;;  %v7345_v43 = vld [vmem:[%s11239_s1 + $0x68] sm:$0xff]  ;;  %v7346_v46 = vld [vmem:[%s11239_s1 + $0x70] sm:$0xff]  ;;  %455 = vst.msk [vmem:[#allocation3 + $0x38] sm:$0xff] %vm445_vm9, %v8475_v4  ;;  %456 = vst.msk [vmem:[#allocation3 + $0x58] sm:$0xff] %vm445_vm9, %v8475_v4 }
  0x67   : > { %v7347_v49 = vld [vmem:[%s11239_s1 + $0x78] sm:$0xff]  ;;  %v7356_v51 = vld [vmem:[%s11239_s1 + $0x80] sm:$0xff]  ;;  %v7357_v54 = vld [vmem:[%s11239_s1 + $0x88] sm:$0xff]  ;;  %457 = vst.msk [vmem:[#allocation3 + $0x78] sm:$0xff] %vm445_vm9, %v8475_v4 }
  0x68   : > { %v7358_v55 = vld [vmem:[%s11239_s1 + $0x90] sm:$0xff]  ;;  %v7359_v58 = vld [vmem:[%s11239_s1 + $0x98] sm:$0xff]  ;;  %v7368_v59 = vld [vmem:[%s11239_s1 + $0xa0] sm:$0xff]  ;;  %446 = vst.msk [vmem:[#allocation2 + $0x18] sm:$0xff] %vm445_vm9, %v8475_v4 }
  0x69   : > { %v7369_v61 = vld [vmem:[%s11239_s1 + $0xa8] sm:$0xff]  ;;  %v7380_v7 = vld [vmem:[%s11239_s1 + $0xc0] sm:$0xff]  ;;  %448 = vst.msk [vmem:[#allocation2 + $0x58] sm:$0xff] %vm445_vm9, %v8475_v4  ;;  %449 = vst.msk [vmem:[#allocation2 + $0x78] sm:$0xff] %vm445_vm9, %v8475_v4 }
  0x6a   : > { %1086 = vrot.lane.b32.xlu1 %v8731_v3, %s8477_s23  ;;  %1084 = vrot.lane.b32.xlu0 %v8725_v1, %s8477_s23 }
  0x6e   : > { %1082 = vrot.lane.b32.xlu0 %v8727_v2, %s8477_s23  ;;  %1299 = vrot.lane.b32.xlu1 %v8725_v1, %s8478_s17 }
  0x72   : > { %1301 = vrot.lane.b32.xlu0 %v8731_v3, %s8478_s17  ;;  %1297 = vrot.lane.b32.xlu1 %v8727_v2, %s8478_s17 }
  0x76   : > { %1516 = vrot.lane.b32.xlu1 %v8731_v3, %s8479_s19  ;;  %1514 = vrot.lane.b32.xlu0 %v8725_v1, %s8479_s19 }
  0x7a   : > { %1512 = vrot.lane.b32.xlu0 %v8727_v2, %s8479_s19  ;;  %1729 = vrot.lane.b32.xlu1 %v8725_v1, %s8480_s22 }
  0x7e   : > { %1731 = vrot.lane.b32.xlu0 %v8731_v3, %s8480_s22  ;;  %1727 = vrot.lane.b32.xlu1 %v8727_v2, %s8480_s22 }
  0x82   : > { %1946 = vrot.lane.b32.xlu1 %v8731_v3, %s8481_s24  ;;  %1944 = vrot.lane.b32.xlu0 %v8725_v1, %s8481_s24 }
  0x86   : > { %1942 = vrot.lane.b32.xlu0 %v8727_v2, %s8481_s24  ;;  %2159 = vrot.lane.b32.xlu1 %v8725_v1, %s8482_s10 }
  0x8a   : > { %2161 = vrot.lane.b32.xlu0 %v8731_v3, %s8482_s10  ;;  %2157 = vrot.lane.b32.xlu1 %v8727_v2, %s8482_s10 }
  0x8e   : > { %2369 = vperm.xlu0 %8284, %v458_v5   ;;  %2374 = vperm.xlu1 %8285, %v459_v6   ;;  %v7371_v5 = vld [vmem:[%s11239_s1 + $0xb8] sm:$0xff] }
  0x92   : > { %2379 = vperm.xlu1 %8285, %v460_v8   ;;  %2384 = vperm.xlu0 %8284, %v461_v9  }
  0xd0   : > { %v480_v10 = vpop.permute.xlu0 %479  ;;  %v478_v11 = vpop.permute.xlu1 %477 }
  0xd1   : > { %v484_v16 = vsel %vm483_vm0, %v478_v11, %v480_v10  ;;  %v7382_v11 = vld [vmem:[%s11239_s1 + $0xd0] sm:$0xff] }
  0xd4   : > { %v482_v12 = vpop.permute.xlu0 %481  ;;  %v870_v17 = vpop.permute.xlu1 %869 }
  0xd5   : > { %v485_v13 = vsel %vm483_vm0, %v480_v10, %v482_v12  ;;  %v7381_v10 = vld [vmem:[%s11239_s1 + $0xc8] sm:$0xff] }
  0xd6   : > { %532 = vmatprep.subr.mxu0 %v485_v13  ;;  %8143 = vmatprep.subr.mxu1 %v485_v13  ;;  %v7383_v13 = vld [vmem:[%s11239_s1 + $0xd8] sm:$0xff] }
  0xd7   : > { %533 = vmatpush1.msra.mxu0 %v484_v16  ;;  %8144 = vmatpush1.msra.mxu1 %v484_v16  ;;  %v7393_v16 = vld [vmem:[%s11239_s1 + $0xe8] sm:$0xff] }
  0xd8   : > { %7316 = vmatmul.mubr.msk.f32.vlgmr.msra.gmra.mxu0 %vm489_vm1, %v7312_v14  ;;  %7319 = vmatmul.mubr.msk.f32.vlgmr.msra.gmra.mxu1 %vm489_vm1, %v7315_v15  ;;  %v872_v19 = vpop.permute.xlu0 %871  ;;  %v868_v22 = vpop.permute.xlu1 %867 }
  0xd9   : > { %7819 = vmatprep.subr.mxu1 %v482_v12  ;;  %7827 = vmatprep.subr.mxu0 %v8731_v3  ;;  %v875_v21 = vsel %vm873_vm2, %v870_v17, %v872_v19  ;;  %v874_v27 = vsel %vm873_vm2, %v868_v22, %v870_v17  ;;  %v7406_v22 = vld [vmem:[%s11239_s1 + $0x110] sm:$0xff] }
  0xda   : > { %7820 = vmatpush3.msra.mxu1 %v482_v12  ;;  %7828 = vmatpush3.msra.mxu0 %v8731_v3 }
  0xdb   : > { %572 = vmatprep.mubr.f32.mxu0 %v8475_v4  ;;  %7821 = vmatprep.mubr.msk.f32.mxu1 %vm489_vm1, %v7312_v14  ;;  %v7392_v14 = vld [vmem:[%s11239_s1 + $0xe0] sm:$0xff] }
  0xdc   : > { %7317 = vmatmul.mubr.msk.f32.gmra.mxu0 %vm489_vm1, %v7313_v18  ;;  %7822 = vmatmul.mubr.msk.f32.vlgmr.msra.gmra.mxu1 %vm489_vm1, %v7313_v18  ;;  %v1085_v24 = vpop.permute.xlu0 %1084  ;;  %v1087_v26 = vpop.permute.xlu1 %1086  ;;  %v7394_v18 = vld [vmem:[%s11239_s1 + $0xf0] sm:$0xff] }
  0xdd   : > { %718 = vmatprep.subr.mxu1 %v8725_v1  ;;  %578 = vmatprep.mubr.f32.mxu0 %v8475_v4  ;;  %v1090_v29 = vsel %vm1088_vm3, %v1085_v24, %v1087_v26  ;;  %v7370_v1 = vld [vmem:[%s11239_s1 + $0xb0] sm:$0xff] }
  0xde   : > { %719 = vmatpush1.msra.mxu1 %v8727_v2  ;;  %7824 = vmatprep.mubr.msk.f32.mxu1 %vm489_vm1, %v7314_v20 }
  0xdf   : > { %921 = vmatprep.subr.mxu0 %v875_v21  ;;  %7835 = vmatprep.subr.mxu1 %v872_v19  ;;  %v7405_v21 = vld [vmem:[%s11239_s1 + $0x108] sm:$0xff] }
  0xe0   : > { %7318 = vmatmul.mubr.msk.f32.gmra.mxu0 %vm489_vm1, %v7314_v20  ;;  %7825 = vmatmul.mubr.msk.f32.gmra.mxu1 %vm489_vm1, %v7315_v15  ;;  %v1083_v30 = vpop.permute.xlu0 %1082  ;;  %v1300_v34 = vpop.permute.xlu1 %1299  ;;  %v7404_v20 = vld [vmem:[%s11239_s1 + $0x100] sm:$0xff] }
  0xe1   : > { %752 = vmatprep.mubr.f32.mxu1 %v8475_v4  ;;  %7829 = vmatprep.mubr.msk.f32.mxu0 %vm489_vm1, %v462_v23  ;;  %v1089_v38 = vsel %vm1088_vm3, %v1083_v30, %v1085_v24 }
  0xe4   : > { %7324 = vmatmul.mubr.msk.f32.vlgmr.msra.gmra.mxu1 %vm489_vm1, %v462_v23  ;;  %7830 = vmatmul.mubr.msk.f32.vlgmr.msra.gmra.mxu0 %vm489_vm1, %v463_v25  ;;  %v1302_v32 = vpop.permute.xlu0 %1301  ;;  %v1298_v39 = vpop.permute.xlu1 %1297  ;;  %v7407_v23 = vld [vmem:[%s11239_s1 + $0x118] sm:$0xff] }
  0xe5   : > { %922 = vmatpush1.msra.mxu0 %v874_v27  ;;  %7836 = vmatpush3.msra.mxu1 %v872_v19  ;;  %v1305_v35 = vsel %vm1303_vm4, %v1300_v34, %v1302_v32  ;;  %v1304_v45 = vsel %vm1303_vm4, %v1298_v39, %v1300_v34  ;;  %v7395_v19 = vld [vmem:[%s11239_s1 + $0xf8] sm:$0xff] }
  0xe6   : > { %758 = vmatprep.mubr.f32.mxu1 %v8475_v4  ;;  %7832 = vmatprep.mubr.msk.f32.mxu0 %vm489_vm1, %v464_v28 }
  0xe7   : > { %7843 = vmatprep.subr.mxu0 %v1087_v26  ;;  %1136 = vmatprep.subr.mxu1 %v1090_v29 }
  0xe8   : > { %7325 = vmatmul.mubr.msk.f32.gmra.mxu1 %vm489_vm1, %v463_v25  ;;  %7833 = vmatmul.mubr.msk.f32.gmra.mxu0 %vm489_vm1, %v465_v31  ;;  %v1515_v42 = vpop.permute.xlu0 %1514  ;;  %v1517_v44 = vpop.permute.xlu1 %1516 }
  0xe9   : > { %764 = vmatprep.mubr.f32.mxu1 %v8475_v4  ;;  %955 = vmatprep.mubr.f32.mxu0 %v8475_v4  ;;  %v1520_v47 = vsel %vm1518_vm5, %v1515_v42, %v1517_v44 }
  0xec   : > { %7326 = vmatmul.mubr.msk.f32.gmra.mxu1 %vm489_vm1, %v464_v28  ;;  %7336 = vmatmul.mubr.msk.f32.vlgmr.msra.gmra.mxu0 %vm489_vm1, %v7332_v33  ;;  %v1513_v48 = vpop.permute.xlu0 %1512  ;;  %v1730_v52 = vpop.permute.xlu1 %1729 }
  0xed   : > { %7844 = vmatpush3.msra.mxu0 %v1087_v26  ;;  %770 = vmatprep.mubr.f32.mxu1 %v8475_v4  ;;  %v1519_v56 = vsel %vm1518_vm5, %v1513_v48, %v1515_v42 }
  0xee   : > { %961 = vmatprep.mubr.f32.mxu0 %v8475_v4  ;;  %1351 = vmatprep.subr.mxu0 %v1305_v35 }
  0xf0   : > { %7327 = vmatmul.mubr.msk.f32.gmra.mxu1 %vm489_vm1, %v465_v31  ;;  %7337 = vmatmul.mubr.msk.f32.gmra.mxu0 %vm489_vm1, %v7333_v36  ;;  %v1732_v50 = vpop.permute.xlu0 %1731  ;;  %v1728_v57 = vpop.permute.xlu1 %1727 }
  0xf1   : > { %967 = vmatprep.mubr.f32.mxu0 %v8475_v4  ;;  %7837 = vmatprep.mubr.msk.f32.mxu1 %vm489_vm1, %v7332_v33  ;;  %v1735_v53 = vsel %vm1733_vm6, %v1730_v52, %v1732_v50  ;;  %v1734_v63 = vsel %vm1733_vm6, %v1728_v57, %v1730_v52 }
  0xf4   : > { %7338 = vmatmul.mubr.msk.f32.gmra.mxu0 %vm489_vm1, %v7334_v37  ;;  %7838 = vmatmul.mubr.msk.f32.vlgmr.msra.gmra.mxu1 %vm489_vm1, %v7333_v36  ;;  %v1945_v60 = vpop.permute.xlu0 %1944  ;;  %v1947_v62 = vpop.permute.xlu1 %1946 }
  0xf5   : > { %1137 = vmatpush1.msra.mxu1 %v1089_v38  ;;  %973 = vmatprep.mubr.f32.mxu0 %v8475_v4  ;;  %v1950_v2 = vsel %vm1948_vm7, %v1945_v60, %v1947_v62 }
  0xf6   : > { %7840 = vmatprep.mubr.msk.f32.mxu1 %vm489_vm1, %v7334_v37  ;;  %7851 = vmatprep.subr.mxu1 %v1302_v32 }
  0xf8   : > { %7339 = vmatmul.mubr.msk.f32.gmra.mxu0 %vm489_vm1, %v7335_v40  ;;  %7841 = vmatmul.mubr.msk.f32.gmra.mxu1 %vm489_vm1, %v7335_v40  ;;  %v1943_v3 = vpop.permute.xlu0 %1942  ;;  %v2160_v8 = vpop.permute.xlu1 %2159 }
  0xf9   : > { %1170 = vmatprep.mubr.f32.mxu1 %v8475_v4  ;;  %7845 = vmatprep.mubr.msk.f32.mxu0 %vm489_vm1, %v7344_v41  ;;  %v1949_v12 = vsel %vm1948_vm7, %v1943_v3, %v1945_v60 }
  0xfc   : > { %7348 = vmatmul.mubr.msk.f32.vlgmr.msra.gmra.mxu1 %vm489_vm1, %v7344_v41  ;;  %7846 = vmatmul.mubr.msk.f32.vlgmr.msra.gmra.mxu0 %vm489_vm1, %v7345_v43  ;;  %v2162_v6 = vpop.permute.xlu0 %2161  ;;  %v2158_v15 = vpop.permute.xlu1 %2157 }
  0xfd   : > { %1352 = vmatpush1.msra.mxu0 %v1304_v45  ;;  %7852 = vmatpush3.msra.mxu1 %v1302_v32  ;;  %v2165_v9 = vsel %vm2163_vm8, %v2160_v8, %v2162_v6  ;;  %v2164_v17 = vsel %vm2163_vm8, %v2158_v15, %v2160_v8 }
  0xfe   : > { %1176 = vmatprep.mubr.f32.mxu1 %v8475_v4  ;;  %7848 = vmatprep.mubr.msk.f32.mxu0 %vm489_vm1, %v7346_v46 }
  0xff   : > { %7859 = vmatprep.subr.mxu0 %v1517_v44  ;;  %1566 = vmatprep.subr.mxu1 %v1520_v47 }
 0x100   : > { %7349 = vmatmul.mubr.msk.f32.gmra.mxu1 %vm489_vm1, %v7345_v43  ;;  %7849 = vmatmul.mubr.msk.f32.gmra.mxu0 %vm489_vm1, %v7347_v49 }
 0x101   : > { %1182 = vmatprep.mubr.f32.mxu1 %v8475_v4  ;;  %1385 = vmatprep.mubr.f32.mxu0 %v8475_v4 }
 0x104   : > { %7350 = vmatmul.mubr.msk.f32.gmra.mxu1 %vm489_vm1, %v7346_v46  ;;  %7360 = vmatmul.mubr.msk.f32.vlgmr.msra.gmra.mxu0 %vm489_vm1, %v7356_v51 }
 0x105   : > { %7860 = vmatpush3.msra.mxu0 %v1517_v44  ;;  %1188 = vmatprep.mubr.f32.mxu1 %v8475_v4 }
 0x106   : > { %1391 = vmatprep.mubr.f32.mxu0 %v8475_v4  ;;  %1781 = vmatprep.subr.mxu0 %v1735_v53 }
 0x108   : > { %7351 = vmatmul.mubr.msk.f32.gmra.mxu1 %vm489_vm1, %v7347_v49  ;;  %7361 = vmatmul.mubr.msk.f32.gmra.mxu0 %vm489_vm1, %v7357_v54 }
 0x109   : > { %1397 = vmatprep.mubr.f32.mxu0 %v8475_v4  ;;  %7853 = vmatprep.mubr.msk.f32.mxu1 %vm489_vm1, %v7356_v51 }
 0x10c   : > { %7362 = vmatmul.mubr.msk.f32.gmra.mxu0 %vm489_vm1, %v7358_v55  ;;  %7854 = vmatmul.mubr.msk.f32.vlgmr.msra.gmra.mxu1 %vm489_vm1, %v7357_v54 }
 0x10d   : > { %1567 = vmatpush1.msra.mxu1 %v1519_v56  ;;  %1403 = vmatprep.mubr.f32.mxu0 %v8475_v4 }
 0x10e   : > { %7856 = vmatprep.mubr.msk.f32.mxu1 %vm489_vm1, %v7358_v55  ;;  %7867 = vmatprep.subr.mxu1 %v1732_v50 }
 0x110   : > { %7363 = vmatmul.mubr.msk.f32.gmra.mxu0 %vm489_vm1, %v7359_v58  ;;  %7857 = vmatmul.mubr.msk.f32.gmra.mxu1 %vm489_vm1, %v7359_v58 }
 0x111   : > { %1600 = vmatprep.mubr.f32.mxu1 %v8475_v4  ;;  %7861 = vmatprep.mubr.msk.f32.mxu0 %vm489_vm1, %v7368_v59 }
 0x114   : > { %7372 = vmatmul.mubr.msk.f32.vlgmr.msra.gmra.mxu1 %vm489_vm1, %v7368_v59  ;;  %7862 = vmatmul.mubr.msk.f32.vlgmr.msra.gmra.mxu0 %vm489_vm1, %v7369_v61 }
 0x115   : > { %1782 = vmatpush1.msra.mxu0 %v1734_v63  ;;  %7868 = vmatpush3.msra.mxu1 %v1732_v50 }
 0x116   : > { %1606 = vmatprep.mubr.f32.mxu1 %v8475_v4  ;;  %7864 = vmatprep.mubr.msk.f32.mxu0 %vm489_vm1, %v7370_v1 }
 0x117   : > { %7875 = vmatprep.subr.mxu0 %v1947_v62  ;;  %1996 = vmatprep.subr.mxu1 %v1950_v2 }
 0x118   : > { %7373 = vmatmul.mubr.msk.f32.gmra.mxu1 %vm489_vm1, %v7369_v61  ;;  %7865 = vmatmul.mubr.msk.f32.gmra.mxu0 %vm489_vm1, %v7371_v5 }
 0x119   : > { %1612 = vmatprep.mubr.f32.mxu1 %v8475_v4  ;;  %1815 = vmatprep.mubr.f32.mxu0 %v8475_v4 }
 0x11c   : > { %7374 = vmatmul.mubr.msk.f32.gmra.mxu1 %vm489_vm1, %v7370_v1  ;;  %7384 = vmatmul.mubr.msk.f32.vlgmr.msra.gmra.mxu0 %vm489_vm1, %v7380_v7 }
 0x11d   : > { %7876 = vmatpush3.msra.mxu0 %v1947_v62  ;;  %1618 = vmatprep.mubr.f32.mxu1 %v8475_v4 }
 0x11e   : > { %1821 = vmatprep.mubr.f32.mxu0 %v8475_v4  ;;  %2211 = vmatprep.subr.mxu0 %v2165_v9 }
 0x120   : > { %7375 = vmatmul.mubr.msk.f32.gmra.mxu1 %vm489_vm1, %v7371_v5  ;;  %7385 = vmatmul.mubr.msk.f32.gmra.mxu0 %vm489_vm1, %v7381_v10 }
 0x121   : > { %1827 = vmatprep.mubr.f32.mxu0 %v8475_v4  ;;  %7869 = vmatprep.mubr.msk.f32.mxu1 %vm489_vm1, %v7380_v7 }
 0x124   : > { %7386 = vmatmul.mubr.msk.f32.gmra.mxu0 %vm489_vm1, %v7382_v11  ;;  %7870 = vmatmul.mubr.msk.f32.vlgmr.msra.gmra.mxu1 %vm489_vm1, %v7381_v10 }
 0x125   : > { %1997 = vmatpush1.msra.mxu1 %v1949_v12  ;;  %1833 = vmatprep.mubr.f32.mxu0 %v8475_v4 }
 0x126   : > { %7872 = vmatprep.mubr.msk.f32.mxu1 %vm489_vm1, %v7382_v11  ;;  %7883 = vmatprep.subr.mxu1 %v2162_v6 }
 0x128   : > { %7387 = vmatmul.mubr.msk.f32.gmra.mxu0 %vm489_vm1, %v7383_v13  ;;  %7873 = vmatmul.mubr.msk.f32.gmra.mxu1 %vm489_vm1, %v7383_v13 }
 0x129   : > { %2030 = vmatprep.mubr.f32.mxu1 %v8475_v4  ;;  %7877 = vmatprep.mubr.msk.f32.mxu0 %vm489_vm1, %v7392_v14 }
 0x12c   : > { %7396 = vmatmul.mubr.msk.f32.vlgmr.msra.gmra.mxu1 %vm489_vm1, %v7392_v14  ;;  %7878 = vmatmul.mubr.msk.f32.vlgmr.msra.gmra.mxu0 %vm489_vm1, %v7393_v16 }
 0x12d   : > { %2212 = vmatpush1.msra.mxu0 %v2164_v17  ;;  %7884 = vmatpush3.msra.mxu1 %v2162_v6 }
 0x12e   : > { %2036 = vmatprep.mubr.f32.mxu1 %v8475_v4  ;;  %7880 = vmatprep.mubr.msk.f32.mxu0 %vm489_vm1, %v7394_v18 }
 0x130   : > { %7397 = vmatmul.mubr.msk.f32.gmra.mxu1 %vm489_vm1, %v7393_v16  ;;  %7881 = vmatmul.mubr.msk.f32.gmra.mxu0 %vm489_vm1, %v7395_v19 }
 0x131   : > { %2042 = vmatprep.mubr.f32.mxu1 %v8475_v4  ;;  %2245 = vmatprep.mubr.f32.mxu0 %v8475_v4 }
 0x134   : > { %7398 = vmatmul.mubr.msk.f32.gmra.mxu1 %vm489_vm1, %v7394_v18  ;;  %7408 = vmatmul.mubr.msk.f32.vlgmr.msra.gmra.mxu0 %vm489_vm1, %v7404_v20 }
 0x135   : > { %2048 = vmatprep.mubr.f32.mxu1 %v8475_v4  ;;  %2251 = vmatprep.mubr.f32.mxu0 %v8475_v4 }
 0x138   : > { %7399 = vmatmul.mubr.msk.f32.gmra.mxu1 %vm489_vm1, %v7395_v19  ;;  %7409 = vmatmul.mubr.msk.f32.gmra.mxu0 %vm489_vm1, %v7405_v21 }
 0x139   : > { %2257 = vmatprep.mubr.f32.mxu0 %v8475_v4  ;;  %7885 = vmatprep.mubr.msk.f32.mxu1 %vm489_vm1, %v7404_v20 }
 0x13c   : > { %7410 = vmatmul.mubr.msk.f32.gmra.mxu0 %vm489_vm1, %v7406_v22  ;;  %7886 = vmatmul.mubr.msk.f32.vlgmr.msra.gmra.mxu1 %vm489_vm1, %v7405_v21 }
 0x13d   : > { %2263 = vmatprep.mubr.f32.mxu0 %v8475_v4  ;;  %7888 = vmatprep.mubr.msk.f32.mxu1 %vm489_vm1, %v7406_v22 }
 0x140   : > { %7411 = vmatmul.mubr.msk.f32.gmra.mxu0 %vm489_vm1, %v7407_v23  ;;  %7889 = vmatmul.mubr.msk.f32.gmra.mxu1 %vm489_vm1, %v7407_v23 }
 0x198   : > { %v568_v24 = vpop.f32.mrf.mxu0  ;;  %v586_v25 = vpop.f32.mrf.mxu1 }
 0x19a   : > { %v570_v26 = vpop.f32.mrf.mxu0  ;;  %v588_v27 = vpop.f32.mrf.mxu1 }
 0x19c   : > { %v574_v28 = vpop.f32.mrf.mxu0  ;;  %v7823_v29 = vpop.f32.mrf.mxu1 }
 0x19e   : > { %v576_v30 = vpop.f32.mrf.mxu0  ;;  %v657_v31 = vpop.f32.mrf.mxu1 }
 0x1a0   : > { %v580_v32 = vpop.f32.mrf.mxu0  ;;  %v7826_v33 = vpop.f32.mrf.mxu1 }
 0x1a2   : > { %v582_v34 = vpop.f32.mrf.mxu0  ;;  %v667_v35 = vpop.f32.mrf.mxu1 }
 0x1a4   : > { %v754_v36 = vpop.f32.mrf.mxu1  ;;  %v7831_v37 = vpop.f32.mrf.mxu0 }
 0x1a5   : > { %v9017_v38 = vadd.f32 %v754_v36, %v568_v24  ;;  %v9019_v39 = vadd.f32 %v7831_v37, %v7823_v29 }
 0x1a6   : > { %v756_v40 = vpop.f32.mrf.mxu1  ;;  %v843_v4 = vpop.f32.mrf.mxu0 }
 0x1a7   : > { %v9021_v41 = vadd.f32 %v756_v40, %v570_v26  ;;  %v9023_v42 = vadd.f32 %v843_v4, %v657_v31 }
 0x1a8   : > { %v760_v43 = vpop.f32.mrf.mxu1  ;;  %v7834_v44 = vpop.f32.mrf.mxu0 }
 0x1a9   : > { %v9025_v45 = vadd.f32 %v760_v43, %v574_v28  ;;  %v9027_v46 = vadd.f32 %v7834_v44, %v7826_v33 }
 0x1aa   : > { %v762_v47 = vpop.f32.mrf.mxu1  ;;  %v853_v48 = vpop.f32.mrf.mxu0 }
 0x1ab   : > { %v9029_v49 = vadd.f32 %v762_v47, %v576_v30  ;;  %v854_v50 = vadd.f32 %v853_v48, %v667_v35  ;;  %v2436_v47 = vlaneseq }
 0x1ac   : > { %v766_v51 = vpop.f32.mrf.mxu1  ;;  %v9031_v52 = vpop.f32.mrf.mxu0 }
 0x1ad   : > { %v9033_v53 = vadd.f32 %v766_v51, %v580_v32 }
 0x1ae   : > { %v768_v54 = vpop.f32.mrf.mxu1  ;;  %v9035_v55 = vpop.f32.mrf.mxu0 }
 0x1af   : > { %v9037_v56 = vadd.f32 %v768_v54, %v582_v34 }
 0x1b0   : > { %v772_v57 = vpop.f32.mrf.mxu1  ;;  %v9039_v58 = vpop.f32.mrf.mxu0 }
 0x1b1   : > { %v9041_v59 = vadd.f32 %v772_v57, %v586_v25  ;;  %v2437_v57 = vshrl.u32 %v2436_v47, 7 }
 0x1b2   : > { %v774_v60 = vpop.f32.mrf.mxu1  ;;  %v9043_v61 = vpop.f32.mrf.mxu0 }
 0x1b3   : > { %v9045_v62 = vadd.f32 %v774_v60, %v588_v27 }
 0x1b4   : > { %v9047_v63 = vpop.f32.mrf.mxu0  ;;  %v9049_v1 = vpop.f32.mrf.mxu1 }
 0x1b6   : > { %v9051_v2 = vpop.f32.mrf.mxu0  ;;  %v9053_v3 = vpop.f32.mrf.mxu1 }
 0x1b8   : > { %v9055_v5 = vpop.f32.mrf.mxu0  ;;  %v9057_v6 = vpop.f32.mrf.mxu1 }
 0x1ba   : > { %v9059_v7 = vpop.f32.mrf.mxu0  ;;  %v1056_v8 = vpop.f32.mrf.mxu1 }
 0x1bb   : > { %v9061_v9 = vadd.f32 %v1056_v8, %v854_v50 }
 0x1bc   : > { %v9063_v10 = vpop.f32.mrf.mxu1  ;;  %v9065_v11 = vpop.f32.mrf.mxu0 }
 0x1be   : > { %v9067_v12 = vpop.f32.mrf.mxu1  ;;  %v9069_v13 = vpop.f32.mrf.mxu0 }
 0x1c0   : > { %v9071_v14 = vpop.f32.mrf.mxu1  ;;  %v9073_v15 = vpop.f32.mrf.mxu0 }
 0x1c2   : > { %v9075_v16 = vpop.f32.mrf.mxu1  ;;  %v9077_v17 = vpop.f32.mrf.mxu0 }
 0x1c4   : > { %v9079_v18 = vpop.f32.mrf.mxu1  ;;  %v9081_v19 = vpop.f32.mrf.mxu0 }
 0x1c6   : > { %v9083_v20 = vpop.f32.mrf.mxu1  ;;  %v9085_v21 = vpop.f32.mrf.mxu0 }
 0x1c8   : > { %v9087_v22 = vpop.f32.mrf.mxu1  ;;  %v9089_v23 = vpop.f32.mrf.mxu0 }
 0x1ca   : > { %v9091_v24 = vpop.f32.mrf.mxu1  ;;  %v9093_v25 = vpop.f32.mrf.mxu0 }
 0x1cc   : > { %v9095_v26 = vpop.f32.mrf.mxu0  ;;  %v9097_v27 = vpop.f32.mrf.mxu1 }
 0x1ce   : > { %v9099_v28 = vpop.f32.mrf.mxu0  ;;  %v9101_v29 = vpop.f32.mrf.mxu1 }
 0x1d0   : > { %v9103_v30 = vpop.f32.mrf.mxu0  ;;  %v9105_v31 = vpop.f32.mrf.mxu1 }
 0x1d2   : > { %v9107_v32 = vpop.f32.mrf.mxu0  ;;  %v9109_v33 = vpop.f32.mrf.mxu1 }
 0x1d4   : > { %v9111_v34 = vpop.f32.mrf.mxu1  ;;  %v9113_v35 = vpop.f32.mrf.mxu0 }
 0x1d5   : > { %11307 = vst [vmem:[#allocation23_spill] sm:$0xff] %v9113_v35  ;;  %v2446_v35 = vsub.s32 2, %v2437_v57 }
 0x1d6   : > { %v9115_v36 = vpop.f32.mrf.mxu1  ;;  %v9117_v37 = vpop.f32.mrf.mxu0 }
 0x1d7   : > { %11308 = vst [vmem:[#allocation24_spill] sm:$0xff] %v9117_v37 }
 0x1d8   : > { %v9119_v40 = vpop.f32.mrf.mxu1  ;;  %v9121_v4 = vpop.f32.mrf.mxu0 }
 0x1d9   : > { %11309 = vst [vmem:[#allocation25_spill] sm:$0xff] %v9119_v40  ;;  %11310 = vst [vmem:[#allocation26_spill] sm:$0xff] %v9121_v4 }
 0x1da   : > { %v9123_v43 = vpop.f32.mrf.mxu1  ;;  %v9125_v44 = vpop.f32.mrf.mxu0 }
 0x1db   : > { %11311 = vst [vmem:[#allocation27_spill] sm:$0xff] %v9123_v43  ;;  %11312 = vst [vmem:[#allocation28_spill] sm:$0xff] %v9125_v44  ;;  %v2438_v43 = vsub.s32 0, %v2437_v57 }
 0x1dc   : > { %v9127_v48 = vpop.f32.mrf.mxu1  ;;  %v9129_v50 = vpop.f32.mrf.mxu0 }
 0x1dd   : > { %11313 = vst [vmem:[#allocation29_spill] sm:$0xff] %v9127_v48  ;;  %11314 = vst [vmem:[#allocation30_spill] sm:$0xff] %v9129_v50  ;;  %v2442_v48 = vsub.s32 1, %v2437_v57  ;;  %v9152_v47 = vrot.slane %v8710_v0, %v2438_v43  ;;  %v9166_v57 = vrot.slane %v8710_v0, %v2446_v35  ;;  %v1068_v43 = vadd.f32 %v9039_v58, %v9025_v45 }
 0x1de   : > { %v9131_v51 = vpop.f32.mrf.mxu1  ;;  %v9133_v54 = vpop.f32.mrf.mxu0  ;;  %v1074_v35 = vadd.f32 %v9055_v5, %v9041_v59  ;;  %v1076_v45 = vadd.f32 %v9057_v6, %v9027_v46 }
 0x1df   : > { %11315 = vst [vmem:[#allocation31_spill] sm:$0xff] %v9131_v51  ;;  %11321 = vst [vmem:[#allocation37_spill] sm:$0xff] %v9152_v47  ;;  %v1069_v47 = vadd.f32 %v9043_v61, %v9029_v49  ;;  %v1283_v59 = vadd.f32 %v9071_v14, %v1068_v43 }
 0x1e0   : > { %v9135_v60 = vpop.f32.mrf.mxu1  ;;  %v9137_v8 = vpop.f32.mrf.mxu0  ;;  %v11326_v43 = vld [vmem:[#allocation26_spill] sm:$0xff] }
 0x1e1   : > { %11316 = vst [vmem:[#allocation32_spill] sm:$0xff] %v9137_v8  ;;  %v1065_v8 = vadd.f32 %v9031_v52, %v9017_v38  ;;  %v1071_v38 = vadd.f32 %v9047_v63, %v9033_v53  ;;  %v1072_v52 = vadd.f32 %v9051_v2, %v9037_v56  ;;  %v1075_v53 = vadd.f32 %v9059_v7, %v9045_v62 }
 0x1e2   : > { %v9139_v40 = vpop.f32.mrf.mxu1  ;;  %v9141_v4 = vpop.f32.mrf.mxu0  ;;  %v1291_v63 = vadd.f32 %v9073_v15, %v1076_v45  ;;  %v1284_v46 = vadd.f32 %v9075_v16, %v1069_v47  ;;  %v11325_v47 = vld [vmem:[#allocation25_spill] sm:$0xff] }
 0x1e3   : > { %11317 = vst [vmem:[#allocation33_spill] sm:$0xff] %v9139_v40  ;;  %11318 = vst [vmem:[#allocation34_spill] sm:$0xff] %v9141_v4  ;;  %v1066_v4 = vadd.f32 %v9035_v55, %v9021_v41  ;;  %v1070_v41 = vadd.f32 %v9049_v1, %v9019_v39  ;;  %v1067_v55 = vadd.f32 %v9053_v3, %v9023_v42 }
 0x1e4   : > { %v9143_v44 = vpop.f32.mrf.mxu0  ;;  %v9145_v37 = vpop.f32.mrf.mxu1  ;;  %v1280_v39 = vadd.f32 %v9063_v10, %v1065_v8  ;;  %v1288_v3 = vadd.f32 %v9077_v17, %v9061_v9  ;;  %v1286_v62 = vadd.f32 %v9079_v18, %v1071_v38  ;;  %v1287_v6 = vadd.f32 %v9083_v20, %v1072_v52  ;;  %v11324_v8 = vld [vmem:[#allocation24_spill] sm:$0xff]  ;;  %v11329_v45 = vld [vmem:[#allocation29_spill] sm:$0xff] }
 0x1e5   : > { %11319 = vst [vmem:[#allocation35_spill] sm:$0xff] %v9143_v44  ;;  %11320 = vst [vmem:[#allocation36_spill] sm:$0xff] %v9145_v37  ;;  %v9163_v37 = vrot.slane %v8710_v0, %v2442_v48  ;;  %v1285_v56 = vadd.f32 %v9065_v11, %v1070_v41  ;;  %v1281_v61 = vadd.f32 %v9067_v12, %v1066_v4  ;;  %v11322_v4 = vld [vmem:[#allocation30_spill] sm:$0xff]  ;;  %v11323_v48 = vld [vmem:[#allocation23_spill] sm:$0xff] }
 0x1e6   : > { %v9147_v50 = vpop.f32.mrf.mxu0  ;;  %v9149_v51 = vpop.f32.mrf.mxu1  ;;  %v1282_v42 = vadd.f32 %v9069_v13, %v1067_v55  ;;  %v1495_v5 = vadd.f32 %v9081_v19, %v1280_v39  ;;  %v1289_v10 = vadd.f32 %v9087_v22, %v1074_v35  ;;  %v1498_v11 = vadd.f32 %v9089_v23, %v1283_v59  ;;  %v11327_v41 = vld [vmem:[#allocation27_spill] sm:$0xff]  ;;  %v11328_v55 = vld [vmem:[#allocation28_spill] sm:$0xff] }
 0x1e7   : > { %v1496_v7 = vadd.f32 %v9085_v21, %v1281_v61  ;;  %v1290_v12 = vadd.f32 %v9091_v24, %v1075_v53  ;;  %v1499_v15 = vadd.f32 %v9093_v25, %v1284_v46  ;;  %v1501_v9 = vadd.f32 %v9095_v26, %v1286_v62  ;;  %v11330_v39 = vld [vmem:[#allocation31_spill] sm:$0xff] }
 0x1e8   : > { %v9158_v40 = vpop.f32.mrf.mxu0  ;;  %v9160_v44 = vpop.f32.mrf.mxu1  ;;  %v1500_v16 = vadd.f32 %v9097_v27, %v1285_v56  ;;  %v1710_v17 = vadd.f32 %v9111_v34, %v1495_v5  ;;  %v1502_v18 = vadd.f32 %v9099_v28, %v1287_v6  ;;  %v1497_v19 = vadd.f32 %v9101_v29, %v1282_v42  ;;  %v11331_v42 = vld [vmem:[#allocation32_spill] sm:$0xff] }
 0x1e9   : > { %v1504_v20 = vadd.f32 %v9103_v30, %v1289_v10  ;;  %v1506_v21 = vadd.f32 %v9105_v31, %v1291_v63  ;;  %v1505_v24 = vadd.f32 %v9107_v32, %v1290_v12  ;;  %v1503_v25 = vadd.f32 %v9109_v33, %v1288_v3 }
 0x1ea   : > { %v9184_v58 = vpop.f32.mrf.mxu0  ;;  %v9186_v49 = vpop.f32.mrf.mxu1  ;;  %v1711_v26 = vadd.f32 %v9115_v36, %v1496_v7  ;;  %v1925_v27 = vadd.f32 %v11322_v4, %v1710_v17  ;;  %v1715_v34 = vadd.f32 %v11323_v48, %v1500_v16  ;;  %v1712_v28 = vadd.f32 %v11324_v8, %v1497_v19  ;;  %v11332_v3 = vld [vmem:[#allocation33_spill] sm:$0xff]  ;;  %v11333_v5 = vld [vmem:[#allocation34_spill] sm:$0xff] }
 0x1eb   : > { %v1713_v29 = vadd.f32 %v11325_v47, %v1498_v11  ;;  %v1721_v30 = vadd.f32 %v11326_v43, %v1506_v21  ;;  %v1714_v52 = vadd.f32 %v11327_v41, %v1499_v15  ;;  %v1718_v32 = vadd.f32 %v11328_v55, %v1503_v25  ;;  %v9225_v36 = vpop.permute.xlu0 %2369 }
 0x1ec   : > { %v2032_v1 = vpop.f32.mrf.mxu1  ;;  %v7879_v2 = vpop.f32.mrf.mxu0  ;;  %v1926_v33 = vadd.f32 %v9133_v54, %v1711_v26  ;;  %v1716_v53 = vadd.f32 %v11329_v45, %v1501_v9  ;;  %v1717_v56 = vadd.f32 %v11330_v39, %v1502_v18  ;;  %v1719_v61 = vadd.f32 %v9135_v60, %v1504_v20  ;;  %v11335_v12 = vld [vmem:[#allocation36_spill] sm:$0xff] }
 0x1ed   : > { %v2140_v35 = vadd.f32 %v2032_v1, %v1925_v27  ;;  %v1928_v59 = vadd.f32 %v11331_v42, %v1713_v29  ;;  %v1720_v62 = vadd.f32 %v11332_v3, %v1505_v24  ;;  %v1929_v6 = vadd.f32 %v11333_v5, %v1714_v52  ;;  %v2375_v54 = vpop.permute.xlu1 %2374  ;;  %v11334_v1 = vld [vmem:[#allocation35_spill] sm:$0xff] }
 0x1ee   : > { %v2034_v13 = vpop.f32.mrf.mxu1  ;;  %v2121_v14 = vpop.f32.mrf.mxu0  ;;  %v1931_v11 = vadd.f32 %v11334_v1, %v1716_v53  ;;  %v1930_v15 = vadd.f32 %v11335_v12, %v1715_v34  ;;  %v1932_v9 = vadd.f32 %v9147_v50, %v1717_v56  ;;  %v1927_v16 = vadd.f32 %v9149_v51, %v1712_v28 }
 0x1ef   : > { %v2141_v7 = vadd.f32 %v2034_v13, %v1926_v33  ;;  %v1934_v18 = vadd.f32 %v9158_v40, %v1719_v61  ;;  %v1936_v19 = vadd.f32 %v9160_v44, %v1721_v30  ;;  %v1935_v13 = vadd.f32 %v9184_v58, %v1720_v62 }
 0x1f0   : > { %v2038_v22 = vpop.f32.mrf.mxu1  ;;  %v7882_v23 = vpop.f32.mrf.mxu0  ;;  %v1933_v24 = vadd.f32 %v9186_v49, %v1718_v32  ;;  %v2145_v25 = vadd.f32 %v7879_v2, %v1930_v15  ;;  %v2142_v50 = vadd.f32 %v2121_v14, %v1927_v16 }
 0x1f1   : > { %v2143_v26 = vadd.f32 %v2038_v22, %v1928_v59  ;;  %v2151_v34 = vadd.f32 %v7882_v23, %v1936_v19  ;;  %v9245_v2 = vpop.permute.xlu1 %2379  ;;  %v11336_v22 = vld [vmem:[#allocation37_spill] sm:$0xff] }
 0x1f2   : > { %v2040_v38 = vpop.f32.mrf.mxu1  ;;  %v2131_v31 = vpop.f32.mrf.mxu0 }
 0x1f3   : > { %v2144_v40 = vadd.f32 %v2040_v38, %v1929_v6  ;;  %v9243_v8 = vadd.f32 %v2131_v31, %v1933_v24 }
 0x1f4   : > { %v2044_v63 = vpop.f32.mrf.mxu1  ;;  %v2247_v46 = vpop.f32.mrf.mxu0 }
 0x1f5   : > { %v2355_v10 = vadd.f32 %v2247_v46, %v2140_v35  ;;  %v2146_v29 = vadd.f32 %v2044_v63, %v1931_v11 }
 0x1f6   : > { %v2046_v60 = vpop.f32.mrf.mxu1  ;;  %v2249_v17 = vpop.f32.mrf.mxu0 }
 0x1f7   : > { %v2387_v20 = vadd.f32 %v9225_v36, %v2355_v10  ;;  %v2356_v21 = vadd.f32 %v2249_v17, %v2141_v7  ;;  %v2147_v43 = vadd.f32 %v2046_v60, %v1932_v9 }
 0x1f8   : > { %v2050_v4 = vpop.f32.mrf.mxu1  ;;  %v2253_v27 = vpop.f32.mrf.mxu0 }
 0x1f9   : > { %vm2399_vm10 = vcmp.ge.f32.partialorder %v2387_v20, 0.0  ;;  %v2411_v51 = vmul.f32 0.2, %v2387_v20  ;;  %v2388_v48 = vadd.f32 %v9225_v36, %v2356_v21  ;;  %v2358_v44 = vadd.f32 %v2253_v27, %v2143_v26  ;;  %v2385_v21 = vpop.permute.xlu0 %2384 }
 0x1fa   : > { %v2052_v28 = vpop.f32.mrf.mxu1  ;;  %v2255_v47 = vpop.f32.mrf.mxu0  ;;  %v2149_v31 = vadd.f32 %v2050_v4, %v1934_v18 }
 0x1fb   : > { %v2423_v58 = vsel %vm2399_vm10, %v2387_v20, %v2411_v51  ;;  %vm2400_vm11 = vcmp.ge.f32.partialorder %v2388_v48, 0.0  ;;  %v2412_v49 = vmul.f32 0.2, %v2388_v48  ;;  %v2390_v30 = vadd.f32 %v2375_v54, %v2358_v44 }
 0x1fc   : > { %v2451_v14 = vmul.f32 %v11336_v22, %v2423_v58  ;;  %v2359_v41 = vadd.f32 %v2255_v47, %v2144_v40  ;;  %v2259_v52 = vpop.f32.mrf.mxu0  ;;  %v7887_v23 = vpop.f32.mrf.mxu1  ;;  %v2150_v46 = vadd.f32 %v2052_v28, %v1935_v13 }
 0x1fd   : > { %v2424_v38 = vsel %vm2400_vm11, %v2388_v48, %v2412_v49  ;;  %v2361_v55 = vadd.f32 %v2259_v52, %v2146_v29  ;;  %v2360_v32 = vadd.f32 %v7887_v23, %v2145_v25  ;;  %vm2402_vm13 = vcmp.ge.f32.partialorder %v2390_v30, 0.0 }
 0x1fe   : > { %2463 = vst [vmem:[#allocation2 + $0x8] sm:$0xff] %v2451_v14  ;;  %v2452_v33 = vmul.f32 %v9163_v37, %v2424_v38  ;;  %v2414_v35 = vmul.f32 0.2, %v2390_v30  ;;  %v2391_v45 = vadd.f32 %v2375_v54, %v2359_v41  ;;  %v2261_v53 = vpop.f32.mrf.mxu0  ;;  %v2336_v39 = vpop.f32.mrf.mxu1 }
 0x1ff   : > { %v2392_v56 = vadd.f32 %v2375_v54, %v2360_v32  ;;  %v2393_v61 = vadd.f32 %v9245_v2, %v2361_v55  ;;  %v2362_v42 = vadd.f32 %v2261_v53, %v2147_v43  ;;  %v2357_v59 = vadd.f32 %v2336_v39, %v2142_v50 }
 0x200   : > { %2464 = vst [vmem:[#allocation2 + $0x10] sm:$0xff] %v2452_v33  ;;  %v2426_v63 = vsel %vm2402_vm13, %v2390_v30, %v2414_v35  ;;  %vm2403_vm14 = vcmp.ge.f32.partialorder %v2391_v45, 0.0  ;;  %v2415_v3 = vmul.f32 0.2, %v2391_v45  ;;  %v2265_v62 = vpop.f32.mrf.mxu0  ;;  %v7890_v5 = vpop.f32.mrf.mxu1 }
 0x201   : > { %v2454_v6 = vmul.f32 %v11336_v22, %v2426_v63  ;;  %vm2404_vm15 = vcmp.ge.f32.partialorder %v2392_v56, 0.0  ;;  %v2416_v7 = vmul.f32 0.2, %v2392_v56  ;;  %vm2405_vm0 = vcmp.ge.f32.partialorder %v2393_v61, 0.0 }
 0x202   : > { %v2427_v10 = vsel %vm2403_vm14, %v2391_v45, %v2415_v3  ;;  %v2417_v1 = vmul.f32 0.2, %v2393_v61  ;;  %v2394_v54 = vadd.f32 %v9245_v2, %v2362_v42  ;;  %v2389_v11 = vadd.f32 %v9225_v36, %v2357_v59  ;;  %v2267_v60 = vpop.f32.mrf.mxu0  ;;  %v2346_v17 = vpop.f32.mrf.mxu1 }
 0x203   : > { %2467 = vst [vmem:[#allocation2 + $0x28] sm:$0xff] %v2454_v6  ;;  %v2455_v12 = vmul.f32 %v9163_v37, %v2427_v10  ;;  %v2428_v15 = vsel %vm2404_vm15, %v2392_v56, %v2416_v7  ;;  %v2364_v9 = vadd.f32 %v2265_v62, %v2149_v31  ;;  %v2366_v16 = vadd.f32 %v7890_v5, %v2151_v34 }
 0x204   : > { %v2456_v18 = vmul.f32 %v9166_v57, %v2428_v15  ;;  %v2429_v19 = vsel %vm2405_vm0, %v2393_v61, %v2417_v1  ;;  %vm2406_vm1 = vcmp.ge.f32.partialorder %v2394_v54, 0.0  ;;  %v2418_v20 = vmul.f32 0.2, %v2394_v54 }
 0x205   : > { %2468 = vst [vmem:[#allocation2 + $0x30] sm:$0xff] %v2455_v12  ;;  %v2457_v13 = vmul.f32 %v11336_v22, %v2429_v19  ;;  %vm2401_vm2 = vcmp.ge.f32.partialorder %v2389_v11, 0.0  ;;  %v2413_v24 = vmul.f32 0.2, %v2389_v11  ;;  %v2396_v36 = vadd.f32 %v2385_v21, %v2364_v9 }
 0x206   : > { %2469 = vst.msk [vmem:[#allocation2 + $0x38] sm:$0xff] %vm2465_vm12, %v2456_v18  ;;  %v2430_v25 = vsel %vm2406_vm1, %v2394_v54, %v2418_v20  ;;  %v2398_v26 = vadd.f32 %v2385_v21, %v2366_v16  ;;  %v2365_v4 = vadd.f32 %v2267_v60, %v2150_v46  ;;  %v2363_v27 = vadd.f32 %v2346_v17, %v9243_v8 }
 0x207   : > { %2470 = vst [vmem:[#allocation2 + $0x48] sm:$0xff] %v2457_v13  ;;  %v2458_v50 = vmul.f32 %v9163_v37, %v2430_v25  ;;  %v2425_v51 = vsel %vm2401_vm2, %v2389_v11, %v2413_v24  ;;  %vm2408_vm3 = vcmp.ge.f32.partialorder %v2396_v36, 0.0  ;;  %v2420_v48 = vmul.f32 0.2, %v2396_v36 }
 0x208   : > { %v2453_v34 = vmul.f32 %v9166_v57, %v2425_v51  ;;  %vm2410_vm4 = vcmp.ge.f32.partialorder %v2398_v26, 0.0  ;;  %v2422_v40 = vmul.f32 0.2, %v2398_v26  ;;  %v2397_v44 = vadd.f32 %v2385_v21, %v2365_v4 }
 0x209   : > { %2471 = vst [vmem:[#allocation2 + $0x50] sm:$0xff] %v2458_v50  ;;  %v2432_v28 = vsel %vm2408_vm3, %v2396_v36, %v2420_v48  ;;  %v2395_v47 = vadd.f32 %v9245_v2, %v2363_v27 }
 0x20a   : > { %2466 = vst.msk [vmem:[#allocation2 + $0x18] sm:$0xff] %vm2465_vm12, %v2453_v34  ;;  %v2434_v29 = vsel %vm2410_vm4, %v2398_v26, %v2422_v40  ;;  %v2460_v8 = vmul.f32 %v11336_v22, %v2432_v28  ;;  %vm2409_vm5 = vcmp.ge.f32.partialorder %v2397_v44, 0.0  ;;  %v2421_v58 = vmul.f32 0.2, %v2397_v44 }
 0x20b   : > { %v2462_v49 = vmul.f32 %v9166_v57, %v2434_v29  ;;  %vm2407_vm6 = vcmp.ge.f32.partialorder %v2395_v47, 0.0  ;;  %v2419_v14 = vmul.f32 0.2, %v2395_v47 }
 0x20c   : > { %2473 = vst [vmem:[#allocation2 + $0x68] sm:$0xff] %v2460_v8  ;;  %v2433_v43 = vsel %vm2409_vm5, %v2397_v44, %v2421_v58 }
 0x20d   : > { %2475 = vst.msk [vmem:[#allocation2 + $0x78] sm:$0xff] %vm2465_vm12, %v2462_v49  ;;  %v2461_v30 = vmul.f32 %v9163_v37, %v2433_v43  ;;  %v2431_v41 = vsel %vm2407_vm6, %v2395_v47, %v2419_v14 }
 0x20e   : > { %v2459_v2 = vmul.f32 %v9166_v57, %v2431_v41 }
 0x20f   : > { %2474 = vst [vmem:[#allocation2 + $0x70] sm:$0xff] %v2461_v30 }
 0x210   : > { %2472 = vst.msk [vmem:[#allocation2 + $0x58] sm:$0xff] %vm2465_vm12, %v2459_v2 }
 0x211 PF: > { %v9270_v52 = vld [vmem:[#allocation2 + $0x60] sm:$0xff]  ;;  %s8484_s20 = smov 18   ;;  %v9278_v37 = vld [vmem:[#allocation2 + $0x48] sm:$0xff]  ;;  %v9284_v57 = vld [vmem:[#allocation2 + $0x50] sm:$0xff]  ;;  %v11258_v53 = vmov 0.0   ;;  %vm2578_vm7 = vcmask 261120  }
 0x212   : > { %2545 = vrot.lane.b32.xlu1 %v9270_v52, %s8484_s20  ;;  %v9286_v38 = vld [vmem:[#allocation2 + $0x40] sm:$0xff]  ;;  %v9292_v31 = vld [vmem:[#allocation2 + $0x30] sm:$0xff]  ;;  %v9294_v55 = vld [vmem:[#allocation2 + $0x28] sm:$0xff]  ;;  %2655 = vmatprep.mubr.f32.mxu0 %v11258_v53  ;;  %s8486_s26 = smov 19   ;;  %s8487_s8 = smov 17   ;;  %vm2553_vm8 = vcmask 146432  }
 0x213   : > { %v9268_v22 = vld [vmem:[#allocation2 + $0x68] sm:$0xff]  ;;  %v9300_v32 = vld [vmem:[#allocation2 + $0x20] sm:$0xff]  ;;  %v9308_v35 = vld [vmem:[#allocation2 + $0x10] sm:$0xff]  ;;  %s8488_s18 = smov 1   ;;  %s8489_s27 = smov 127   ;;  %vm2797_vm9 = vcmask 154624  }
 0x214   : > { %2547 = vrot.lane.b32.xlu0 %v9268_v22, %s8484_s20  ;;  %v9302_v33 = vld [vmem:[#allocation2 + $0x8] sm:$0xff]  ;;  %v9310_v45 = vld [vmem:[#allocation2] sm:$0xff]  ;;  %v9322_v56 = vld [vmem:[#allocation2 + $0x78] sm:$0xff]  ;;  %s8490_s23 = smov 111   ;;  %vm3045_vm10 = vcmask 138240   ;;  %s8491_s17 = smov 110  }
 0x215   : > { %v9314_v39 = vld [vmem:[%s8685_s29 + $0x20] sm:$0xff]  ;;  %v9334_v42 = vld [vmem:[#allocation2 + $0x38] sm:$0xff]  ;;  %v7417_v36 = vld [vmem:[%s8685_s29 + $0x28] sm:$0xff]  ;;  %s8492_s19 = smov 109   ;;  %vm3305_vm11 = vcmask 7168   ;;  %vm3760_vm12 = vcmask 1039360  }
 0x216   : > { %v9276_v23 = vld [vmem:[#allocation2 + $0x70] sm:$0xff]  ;;  %2539 = vrot.lane.b32.xlu1 %v9278_v37, %s8484_s20  ;;  %7899 = vmatprep.mubr.msk.f32.mxu1 %vm2578_vm7, %v9314_v39  ;;  %v9340_v59 = vld [vmem:[#allocation2 + $0x18] sm:$0xff]  ;;  %v9479_v44 = vld [vmem:[%s8685_s29] sm:$0xff]  ;;  %vm4008_vm13 = vcmask 908288   ;;  %vm4256_vm14 = vcmask 900096   ;;  %vm4504_vm15 = vcmask 891904  }
 0x217   : > { %v9324_v61 = vld [vmem:[#allocation2 + $0x58] sm:$0xff]  ;;  %v7418_v50 = vld [vmem:[%s8685_s29 + $0x30] sm:$0xff]  ;;  %v9504_v2 = vld [vmem:[%s8685_s29 + $0x8] sm:$0xff]  ;;  %vm4797_vm0 = vcmask 244736   ;;  %p7624_p1 = scmp.ne.s32.totalorder %s8452_s11, 1 }
 0x218   : > { %2549 = vrot.lane.b32.xlu0 %v9276_v23, %s8484_s20  ;;  %v7419_v40 = vld [vmem:[%s8685_s29 + $0x38] sm:$0xff] }
 0x21a   : > { %2537 = vrot.lane.b32.xlu1 %v9286_v38, %s8484_s20 }
 0x21c   : > { %2541 = vrot.lane.b32.xlu0 %v9284_v57, %s8484_s20 }
 0x21e   : > { %2533 = vrot.lane.b32.xlu1 %v9292_v31, %s8484_s20 }
 0x220   : > { %2531 = vrot.lane.b32.xlu0 %v9294_v55, %s8484_s20 }
 0x222   : > { %2523 = vrot.lane.b32.xlu1 %v9302_v33, %s8484_s20 }
 0x224   : > { %2529 = vrot.lane.b32.xlu0 %v9300_v32, %s8484_s20 }
 0x226   : > { %2521 = vrot.lane.b32.xlu1 %v9310_v45, %s8484_s20 }
 0x228   : > { %2525 = vrot.lane.b32.xlu0 %v9308_v35, %s8484_s20 }
 0x22a   : > { %2543 = vrot.lane.b32.xlu1 %v9324_v61, %s8484_s20 }
 0x22c   : > { %2551 = vrot.lane.b32.xlu0 %v9322_v56, %s8484_s20 }
 0x22e   : > { %2795 = vrot.lane.b32.xlu1 %v9322_v56, %s8486_s26 }
 0x230   : > { %2793 = vrot.lane.b32.xlu0 %v9276_v23, %s8486_s26 }
 0x232   : > { %2785 = vrot.lane.b32.xlu1 %v9284_v57, %s8486_s26 }
 0x234   : > { %2535 = vrot.lane.b32.xlu0 %v9334_v42, %s8484_s20 }
 0x236   : > { %2527 = vrot.lane.b32.xlu1 %v9340_v59, %s8484_s20 }
 0x238   : > { %2787 = vrot.lane.b32.xlu0 %v9324_v61, %s8486_s26 }
 0x23a   : > { %2779 = vrot.lane.b32.xlu1 %v9334_v42, %s8486_s26 }
 0x23c   : > { %2777 = vrot.lane.b32.xlu0 %v9292_v31, %s8486_s26 }
 0x23e   : > { %2771 = vrot.lane.b32.xlu1 %v9340_v59, %s8486_s26 }
 0x240   : > { %2769 = vrot.lane.b32.xlu0 %v9308_v35, %s8486_s26 }
 0x242   : > { %2789 = vrot.lane.b32.xlu1 %v9270_v52, %s8486_s26 }
 0x244   : > { %2791 = vrot.lane.b32.xlu0 %v9268_v22, %s8486_s26 }
 0x246   : > { %3039 = vrot.lane.b32.xlu1 %v9268_v22, %s8487_s8 }
 0x248   : > { %2783 = vrot.lane.b32.xlu0 %v9278_v37, %s8486_s26 }
 0x24a   : > { %2781 = vrot.lane.b32.xlu1 %v9286_v38, %s8486_s26 }
 0x24c   : > { %3041 = vrot.lane.b32.xlu0 %v9276_v23, %s8487_s8 }
 0x24e   : > { %2775 = vrot.lane.b32.xlu1 %v9294_v55, %s8486_s26 }
 0x250   : > { %3037 = vrot.lane.b32.xlu0 %v9270_v52, %s8487_s8 }
 0x252   : > { %3033 = vrot.lane.b32.xlu1 %v9284_v57, %s8487_s8 }
 0x254   : > { %3031 = vrot.lane.b32.xlu0 %v9278_v37, %s8487_s8 }
 0x256   : > { %3029 = vrot.lane.b32.xlu1 %v9286_v38, %s8487_s8 }
 0x258   : > { %2773 = vrot.lane.b32.xlu0 %v9300_v32, %s8486_s26 }
 0x25a   : > { %3023 = vrot.lane.b32.xlu1 %v9294_v55, %s8487_s8 }
 0x25c   : > { %2767 = vrot.lane.b32.xlu0 %v9302_v33, %s8486_s26 }
 0x25e   : > { %2765 = vrot.lane.b32.xlu1 %v9310_v45, %s8486_s26 }
 0x260   : > { %3025 = vrot.lane.b32.xlu0 %v9292_v31, %s8487_s8 }
 0x262   : > { %3015 = vrot.lane.b32.xlu1 %v9302_v33, %s8487_s8 }
 0x264   : > { %3021 = vrot.lane.b32.xlu0 %v9300_v32, %s8487_s8 }
 0x266   : > { %3013 = vrot.lane.b32.xlu1 %v9310_v45, %s8487_s8 }
 0x268   : > { %3017 = vrot.lane.b32.xlu0 %v9308_v35, %s8487_s8 }
 0x26a   : > { %3035 = vrot.lane.b32.xlu1 %v9324_v61, %s8487_s8 }
 0x26c   : > { %3043 = vrot.lane.b32.xlu0 %v9322_v56, %s8487_s8 }
 0x26e   : > { %3303 = vrot.lane.b32.xlu1 %v9322_v56, %s8488_s18 }
 0x270   : > { %3301 = vrot.lane.b32.xlu0 %v9276_v23, %s8488_s18 }
 0x272   : > { %3293 = vrot.lane.b32.xlu1 %v9284_v57, %s8488_s18 }
 0x274   : > { %3027 = vrot.lane.b32.xlu0 %v9334_v42, %s8487_s8 }
 0x276   : > { %3019 = vrot.lane.b32.xlu1 %v9340_v59, %s8487_s8 }
 0x278   : > { %3295 = vrot.lane.b32.xlu0 %v9324_v61, %s8488_s18 }
 0x27a   : > { %3287 = vrot.lane.b32.xlu1 %v9334_v42, %s8488_s18 }
 0x27c   : > { %3285 = vrot.lane.b32.xlu0 %v9292_v31, %s8488_s18 }
 0x27e   : > { %3279 = vrot.lane.b32.xlu1 %v9340_v59, %s8488_s18 }
 0x280   : > { %3277 = vrot.lane.b32.xlu0 %v9308_v35, %s8488_s18 }
 0x282   : > { %3297 = vrot.lane.b32.xlu1 %v9270_v52, %s8488_s18  ;;  %v9510_v52 = vld [vmem:[%s8685_s29 + $0x10] sm:$0xff] }
 0x284   : > { %3299 = vrot.lane.b32.xlu0 %v9268_v22, %s8488_s18  ;;  %v2546_v46 = vpop.permute.xlu1 %2545 }
 0x286   : > { %v2548_v63 = vpop.permute.xlu0 %2547  ;;  %3289 = vrot.lane.b32.xlu1 %v9286_v38, %s8488_s18 }
 0x287   : > { %v2563_v6 = vsel %vm2553_vm8, %v2546_v46, %v2548_v63 }
 0x288   : > { %3291 = vrot.lane.b32.xlu0 %v9278_v37, %s8488_s18  ;;  %v2540_v62 = vpop.permute.xlu1 %2539 }
 0x28a   : > { %v2550_v3 = vpop.permute.xlu0 %2549  ;;  %3281 = vrot.lane.b32.xlu1 %v9300_v32, %s8488_s18 }
 0x28b   : > { %v2564_v5 = vsel %vm2553_vm8, %v2548_v63, %v2550_v3  ;;  %v9522_v63 = vld [vmem:[%s8685_s29 + $0x18] sm:$0xff] }
 0x28c   : > { %2615 = vmatprep.subr.mxu0 %v2564_v5  ;;  %3283 = vrot.lane.b32.xlu0 %v9294_v55, %s8488_s18  ;;  %v2538_v10 = vpop.permute.xlu1 %2537 }
 0x28d   : > { %2616 = vmatpush1.msra.mxu0 %v2563_v6  ;;  %v2560_v54 = vsel %vm2553_vm8, %v2538_v10, %v2540_v62 }
 0x28e   : > { %v2542_v7 = vpop.permute.xlu0 %2541  ;;  %3273 = vrot.lane.b32.xlu1 %v9310_v45, %s8488_s18 }
 0x28f   : > { %v2561_v1 = vsel %vm2553_vm8, %v2540_v62, %v2542_v7 }
 0x290   : > { %2617 = vmatprep.subr.mxu0 %v2561_v1  ;;  %3275 = vrot.lane.b32.xlu0 %v9302_v33, %s8488_s18  ;;  %v2534_v11 = vpop.permute.xlu1 %2533 }
 0x291   : > { %2618 = vmatpush1.msra.mxu0 %v2560_v54 }
 0x292   : > { %v2532_v12 = vpop.permute.xlu0 %2531  ;;  %3752 = vrot.lane.b32.xlu1 %v9324_v61, %s8489_s27 }
 0x293   : > { %v2558_v15 = vsel %vm2553_vm8, %v2532_v12, %v2534_v11 }
 0x294   : > { %2619 = vmatprep.subr.mxu0 %v2558_v15  ;;  %3758 = vrot.lane.b32.xlu0 %v9322_v56, %s8489_s27  ;;  %v2524_v16 = vpop.permute.xlu1 %2523 }
 0x296   : > { %v2530_v9 = vpop.permute.xlu0 %2529  ;;  %3756 = vrot.lane.b32.xlu1 %v9276_v23, %s8489_s27 }
 0x297   : > { %v2557_v60 = vsel %vm2553_vm8, %v2530_v9, %v2532_v12 }
 0x298   : > { %2620 = vmatpush1.msra.mxu0 %v2557_v60  ;;  %3746 = vrot.lane.b32.xlu0 %v9334_v42, %s8489_s27  ;;  %v2522_v18 = vpop.permute.xlu1 %2521 }
 0x299   : > { %v2554_v20 = vsel %vm2553_vm8, %v2522_v18, %v2524_v16 }
 0x29a   : > { %v2526_v17 = vpop.permute.xlu0 %2525  ;;  %3754 = vrot.lane.b32.xlu1 %v9268_v22, %s8489_s27 }
 0x29b   : > { %v2555_v19 = vsel %vm2553_vm8, %v2524_v16, %v2526_v17 }
 0x29c   : > { %3740 = vrot.lane.b32.xlu0 %v9340_v59, %s8489_s27  ;;  %2621 = vmatprep.subr.mxu0 %v2555_v19  ;;  %v2544_v13 = vpop.permute.xlu1 %2543 }
 0x29d   : > { %2622 = vmatpush1.msra.mxu0 %v2554_v20  ;;  %v2562_v25 = vsel %vm2553_vm8, %v2542_v7, %v2544_v13 }
 0x29e   : > { %v2552_v21 = vpop.permute.xlu0 %2551  ;;  %7420 = vmatmul.mubr.msk.f32.vlgmr.msra.gmra.mxu0 %vm2578_vm7, %v9314_v39  ;;  %4004 = vrot.lane.b32.xlu1 %v9276_v23, %s8490_s23 }
 0x29f   : > { %v2565_v24 = vsel %vm2553_vm8, %v2550_v3, %v2552_v21  ;;  %2661 = vmatprep.mubr.f32.mxu0 %v11258_v53 }
 0x2a0   : > { %7891 = vmatprep.subr.mxu1 %v2565_v24  ;;  %3750 = vrot.lane.b32.xlu0 %v9284_v57, %s8489_s27  ;;  %v2796_v4 = vpop.permute.xlu1 %2795 }
 0x2a1   : > { %7892 = vmatpush3.msra.mxu1 %v2565_v24 }
 0x2a2   : > { %v2794_v26 = vpop.permute.xlu0 %2793  ;;  %7893 = vmatprep.subr.mxu1 %v2562_v25  ;;  %7421 = vmatmul.mubr.msk.f32.gmra.mxu0 %vm2578_vm7, %v7417_v36 }
 0x2a3   : > { %7894 = vmatpush3.msra.mxu1 %v2562_v25  ;;  %v2809_v27 = vsel %vm2797_vm9, %v2794_v26, %v2796_v4  ;;  %2667 = vmatprep.mubr.f32.mxu0 %v11258_v53 }
 0x2a4   : > { %4006 = vrot.lane.b32.xlu0 %v9322_v56, %s8490_s23  ;;  %7905 = vmatprep.subr.mxu0 %v2809_v27  ;;  %v2786_v48 = vpop.permute.xlu1 %2785 }
 0x2a5   : > { %3748 = vrot.lane.b32.xlu1 %v9278_v37, %s8489_s27  ;;  %7906 = vmatpush3.msra.mxu0 %v2809_v27 }
 0x2a6   : > { %v2536_v51 = vpop.permute.xlu0 %2535  ;;  %7422 = vmatmul.mubr.msk.f32.gmra.mxu0 %vm2578_vm7, %v7418_v50 }
 0x2a7   : > { %v2559_v34 = vsel %vm2553_vm8, %v2534_v11, %v2536_v51  ;;  %2673 = vmatprep.mubr.f32.mxu0 %v11258_v53 }
 0x2a8   : > { %4002 = vrot.lane.b32.xlu0 %v9268_v22, %s8490_s23  ;;  %7895 = vmatprep.subr.mxu1 %v2559_v34  ;;  %v2528_v47 = vpop.permute.xlu1 %2527 }
 0x2a9   : > { %3744 = vrot.lane.b32.xlu1 %v9292_v31, %s8489_s27  ;;  %7896 = vmatpush3.msra.mxu1 %v2559_v34  ;;  %v2556_v29 = vsel %vm2553_vm8, %v2526_v17, %v2528_v47 }
 0x2aa   : > { %v2788_v28 = vpop.permute.xlu0 %2787  ;;  %7423 = vmatmul.mubr.msk.f32.gmra.mxu0 %vm2578_vm7, %v7419_v40  ;;  %7897 = vmatprep.subr.mxu1 %v2556_v29 }
 0x2ab   : > { %v2806_v8 = vsel %vm2797_vm9, %v2786_v48, %v2788_v28  ;;  %7913 = vmatprep.mubr.msk.f32.mxu0 %vm2578_vm7, %v9479_v44  ;;  %7898 = vmatpush3.msra.mxu1 %v2556_v29 }
 0x2ac   : > { %3998 = vrot.lane.b32.xlu0 %v9284_v57, %s8490_s23  ;;  %7907 = vmatprep.subr.mxu0 %v2806_v8  ;;  %v2780_v49 = vpop.permute.xlu1 %2779 }
 0x2ad   : > { %4000 = vrot.lane.b32.xlu1 %v9324_v61, %s8490_s23  ;;  %7908 = vmatpush3.msra.mxu0 %v2806_v8  ;;  %v7437_v8 = vld [vmem:[%s8685_s29 + $0x48] sm:$0xff] }
 0x2ae   : > { %v2778_v58 = vpop.permute.xlu0 %2777  ;;  %7900 = vmatmul.mubr.msk.f32.vlgmr.msra.gmra.mxu1 %vm2578_vm7, %v7417_v36 }
 0x2af   : > { %v2803_v14 = vsel %vm2797_vm9, %v2778_v58, %v2780_v49  ;;  %7902 = vmatprep.mubr.msk.f32.mxu1 %vm2578_vm7, %v7418_v50 }
 0x2b0   : > { %3742 = vrot.lane.b32.xlu0 %v9294_v55, %s8489_s27  ;;  %7909 = vmatprep.subr.mxu0 %v2803_v14  ;;  %v2772_v30 = vpop.permute.xlu1 %2771 }
 0x2b1   : > { %3996 = vrot.lane.b32.xlu1 %v9278_v37, %s8490_s23  ;;  %7910 = vmatpush3.msra.mxu0 %v2803_v14 }
 0x2b2   : > { %v9498_v43 = vpop.permute.xlu0 %2769  ;;  %7903 = vmatmul.mubr.msk.f32.gmra.mxu1 %vm2578_vm7, %v7419_v40 }
 0x2b3   : > { %v2800_v41 = vsel %vm2797_vm9, %v9498_v43, %v2772_v30  ;;  %2898 = vmatprep.mubr.f32.mxu1 %v11258_v53  ;;  %v7438_v30 = vld [vmem:[%s8685_s29 + $0x50] sm:$0xff] }
 0x2b4   : > { %3738 = vrot.lane.b32.xlu0 %v9308_v35, %s8489_s27  ;;  %7911 = vmatprep.subr.mxu0 %v2800_v41  ;;  %v2790_v32 = vpop.permute.xlu1 %2789 }
 0x2b5   : > { %3992 = vrot.lane.b32.xlu1 %v9292_v31, %s8490_s23  ;;  %7912 = vmatpush3.msra.mxu0 %v2800_v41 }
 0x2b6   : > { %v2792_v38 = vpop.permute.xlu0 %2791  ;;  %7914 = vmatmul.mubr.msk.f32.vlgmr.msra.gmra.mxu0 %vm2578_vm7, %v9504_v2 }
 0x2b7   : > { %v2807_v45 = vsel %vm2797_vm9, %v2790_v32, %v2792_v38  ;;  %v2808_v39 = vsel %vm2797_vm9, %v2792_v38, %v2794_v26  ;;  %7916 = vmatprep.mubr.msk.f32.mxu0 %vm2578_vm7, %v9510_v52  ;;  %v7439_v38 = vld [vmem:[%s8685_s29 + $0x58] sm:$0xff]  ;;  %v9628_v32 = vld [vmem:[%s8685_s29 + $0x60] sm:$0xff] }
 0x2b8   : > { %3994 = vrot.lane.b32.xlu0 %v9334_v42, %s8490_s23  ;;  %2858 = vmatprep.subr.mxu1 %v2808_v39  ;;  %v3040_v3 = vpop.permute.xlu1 %3039 }
 0x2b9   : > { %3736 = vrot.lane.b32.xlu1 %v9302_v33, %s8489_s27  ;;  %2859 = vmatpush1.msra.mxu1 %v2807_v45 }
 0x2ba   : > { %v2784_v46 = vpop.permute.xlu0 %2783  ;;  %7917 = vmatmul.mubr.msk.f32.gmra.mxu0 %vm2578_vm7, %v9522_v63 }
 0x2bb   : > { %v2805_v62 = vsel %vm2797_vm9, %v2784_v46, %v2786_v48  ;;  %3146 = vmatprep.mubr.f32.mxu0 %v11258_v53 }
 0x2bc   : > { %3990 = vrot.lane.b32.xlu0 %v9294_v55, %s8490_s23  ;;  %2860 = vmatprep.subr.mxu1 %v2805_v62  ;;  %v2782_v6 = vpop.permute.xlu1 %2781 }
 0x2bd   : > { %3986 = vrot.lane.b32.xlu1 %v9308_v35, %s8490_s23  ;;  %v2804_v7 = vsel %vm2797_vm9, %v2782_v6, %v2784_v46 }
 0x2be   : > { %v9536_v5 = vpop.permute.xlu0 %3041  ;;  %2861 = vmatpush1.msra.mxu1 %v2804_v7 }
 0x2bf   : > { %v3056_v10 = vsel %vm3045_vm10, %v3040_v3, %v9536_v5 }
 0x2c0   : > { %3988 = vrot.lane.b32.xlu0 %v9340_v59, %s8490_s23  ;;  %3106 = vmatprep.subr.mxu0 %v3056_v10  ;;  %v2776_v54 = vpop.permute.xlu1 %2775 }
 0x2c1   : > { %3984 = vrot.lane.b32.xlu1 %v9302_v33, %s8490_s23  ;;  %v2802_v12 = vsel %vm2797_vm9, %v2776_v54, %v2778_v58 }
 0x2c2   : > { %v3038_v1 = vpop.permute.xlu0 %3037  ;;  %2862 = vmatprep.subr.mxu1 %v2802_v12 }
 0x2c3   : > { %v3055_v11 = vsel %vm3045_vm10, %v3038_v1, %v3040_v3  ;;  %v9651_v1 = vld [vmem:[%s8685_s29 + $0x68] sm:$0xff] }
 0x2c4   : > { %4254 = vrot.lane.b32.xlu0 %v9322_v56, %s8491_s17  ;;  %3107 = vmatpush1.msra.mxu0 %v3055_v11  ;;  %v3034_v9 = vpop.permute.xlu1 %3033  ;;  %v9655_v11 = vld [vmem:[%s8685_s29 + $0x70] sm:$0xff] }
 0x2c5   : > { %4248 = vrot.lane.b32.xlu1 %v9324_v61, %s8491_s17 }
 0x2c6   : > { %v3032_v15 = vpop.permute.xlu0 %3031 }
 0x2c7   : > { %v3053_v16 = vsel %vm3045_vm10, %v3032_v15, %v3034_v9 }
 0x2c8   : > { %4242 = vrot.lane.b32.xlu0 %v9334_v42, %s8491_s17  ;;  %3108 = vmatprep.subr.mxu0 %v3053_v16  ;;  %v3030_v17 = vpop.permute.xlu1 %3029 }
 0x2c9   : > { %4252 = vrot.lane.b32.xlu1 %v9276_v23, %s8491_s17  ;;  %v3052_v19 = vsel %vm3045_vm10, %v3030_v17, %v3032_v15 }
 0x2ca   : > { %v2774_v60 = vpop.permute.xlu0 %2773  ;;  %3109 = vmatpush1.msra.mxu0 %v3052_v19 }
 0x2cb   : > { %v2801_v18 = vsel %vm2797_vm9, %v2774_v60, %v2776_v54  ;;  %v8493_v54 = vmov 0   ;;  %v9668_v60 = vld [vmem:[%s8685_s29 + $0x78] sm:$0xff] }
 0x2cc   : > { %4236 = vrot.lane.b32.xlu0 %v9340_v59, %s8491_s17  ;;  %2863 = vmatpush1.msra.mxu1 %v2801_v18  ;;  %v3024_v21 = vpop.permute.xlu1 %3023 }
 0x2cd   : > { %4250 = vrot.lane.b32.xlu1 %v9268_v22, %s8491_s17  ;;  %8286 = vset.pattern.permute.xlu0 %v8493_v54 }
 0x2ce   : > { %v2768_v20 = vpop.permute.xlu0 %2767  ;;  %8287 = vset.pattern.permute.xlu1 %v8493_v54 }
 0x2cf   : > { %v2799_v13 = vsel %vm2797_vm9, %v2768_v20, %v9498_v43 }
 0x2d0   : > { %4246 = vrot.lane.b32.xlu0 %v9284_v57, %s8491_s17  ;;  %2864 = vmatprep.subr.mxu1 %v2799_v13  ;;  %v2766_v36 = vpop.permute.xlu1 %2765  ;;  %v2476_v13 = vld [vmem:[%s8715_s25] sm:$0xff] }
 0x2d1   : > { %4500 = vrot.lane.b32.xlu1 %v9276_v23, %s8492_s19  ;;  %v2798_v25 = vsel %vm2797_vm9, %v2766_v36, %v2768_v20 }
 0x2d2   : > { %v3026_v24 = vpop.permute.xlu0 %3025  ;;  %2865 = vmatpush1.msra.mxu1 %v2798_v25 }
 0x2d3   : > { %v3050_v26 = vsel %vm3045_vm10, %v3024_v21, %v3026_v24  ;;  %7428 = vmatmul.mubr.msk.f32.vlgmr.msra.gmra.mxu1 %vm2578_vm7, %v9479_v44  ;;  %v7436_v44 = vld [vmem:[%s8685_s29 + $0x40] sm:$0xff] }
 0x2d4   : > { %4502 = vrot.lane.b32.xlu0 %v9322_v56, %s8492_s19  ;;  %3110 = vmatprep.subr.mxu0 %v3050_v26  ;;  %v3016_v27 = vpop.permute.xlu1 %3015 }
 0x2d5   : > { %4244 = vrot.lane.b32.xlu1 %v9278_v37, %s8491_s17  ;;  %2904 = vmatprep.mubr.f32.mxu1 %v11258_v53 }
 0x2d6   : > { %v3022_v4 = vpop.permute.xlu0 %3021 }
 0x2d7   : > { %v3049_v50 = vsel %vm3045_vm10, %v3022_v4, %v3024_v21  ;;  %7429 = vmatmul.mubr.msk.f32.gmra.mxu1 %vm2578_vm7, %v9504_v2  ;;  %v7461_v21 = vld [vmem:[%s8685_s29 + $0x88] sm:$0xff] }
 0x2d8   : > { %4498 = vrot.lane.b32.xlu0 %v9268_v22, %s8492_s19  ;;  %3111 = vmatpush1.msra.mxu0 %v3049_v50  ;;  %v3014_v48 = vpop.permute.xlu1 %3013 }
 0x2d9   : > { %4240 = vrot.lane.b32.xlu1 %v9292_v31, %s8491_s17  ;;  %v3046_v34 = vsel %vm3045_vm10, %v3014_v48, %v3016_v27  ;;  %2910 = vmatprep.mubr.f32.mxu1 %v11258_v53 }
 0x2da   : > { %v3018_v51 = vpop.permute.xlu0 %3017 }
 0x2db   : > { %v3047_v40 = vsel %vm3045_vm10, %v3016_v27, %v3018_v51  ;;  %7430 = vmatmul.mubr.msk.f32.gmra.mxu1 %vm2578_vm7, %v9510_v52 }
 0x2dc   : > { %4494 = vrot.lane.b32.xlu0 %v9284_v57, %s8492_s19  ;;  %3112 = vmatprep.subr.mxu0 %v3047_v40  ;;  %v3036_v47 = vpop.permute.xlu1 %3035 }
 0x2dd   : > { %4496 = vrot.lane.b32.xlu1 %v9324_v61, %s8492_s19  ;;  %3113 = vmatpush1.msra.mxu0 %v3046_v34  ;;  %v3054_v58 = vsel %vm3045_vm10, %v3034_v9, %v3036_v47 }
 0x2de   : > { %v3044_v28 = vpop.permute.xlu0 %3043  ;;  %7440 = vmatmul.mubr.msk.f32.vlgmr.msra.gmra.mxu0 %vm2578_vm7, %v7436_v44  ;;  %2916 = vmatprep.mubr.f32.mxu1 %v11258_v53 }
 0x2df   : > { %v3057_v29 = vsel %vm3045_vm10, %v9536_v5, %v3044_v28  ;;  %3152 = vmatprep.mubr.f32.mxu0 %v11258_v53  ;;  %7431 = vmatmul.mubr.msk.f32.gmra.mxu1 %vm2578_vm7, %v9522_v63 }
 0x2e0   : > { %4238 = vrot.lane.b32.xlu0 %v9294_v55, %s8491_s17  ;;  %7919 = vmatprep.subr.mxu1 %v3057_v29  ;;  %v3304_v14 = vpop.permute.xlu1 %3303 }
 0x2e1   : > { %4492 = vrot.lane.b32.xlu1 %v9278_v37, %s8492_s19  ;;  %7920 = vmatpush3.msra.mxu1 %v3057_v29 }
 0x2e2   : > { %v9605_v49 = vpop.permute.xlu0 %3301  ;;  %7921 = vmatprep.subr.mxu1 %v3054_v58  ;;  %7441 = vmatmul.mubr.msk.f32.gmra.mxu0 %vm2578_vm7, %v7437_v8 }
 0x2e3   : > { %7922 = vmatpush3.msra.mxu1 %v3054_v58  ;;  %v3317_v43 = vsel %vm3305_vm11, %v9605_v49, %v3304_v14  ;;  %3158 = vmatprep.mubr.f32.mxu0 %v11258_v53  ;;  %v7474_v14 = vld [vmem:[%s8685_s29 + $0xb0] sm:$0xff] }
 0x2e4   : > { %4234 = vrot.lane.b32.xlu0 %v9308_v35, %s8491_s17  ;;  %7933 = vmatprep.subr.mxu0 %v3317_v43  ;;  %v9616_v2 = vpop.permute.xlu1 %3293 }
 0x2e5   : > { %4488 = vrot.lane.b32.xlu1 %v9292_v31, %s8492_s19  ;;  %7934 = vmatpush3.msra.mxu0 %v3317_v43  ;;  %v9736_v43 = vld [vmem:[%s8685_s29 + $0xb8] sm:$0xff] }
 0x2e6   : > { %v3028_v41 = vpop.permute.xlu0 %3027  ;;  %7442 = vmatmul.mubr.msk.f32.gmra.mxu0 %vm2578_vm7, %v7438_v30  ;;  %7927 = vmatprep.mubr.msk.f32.mxu1 %vm2578_vm7, %v7436_v44  ;;  %v7473_v44 = vld [vmem:[%s8685_s29 + $0xa8] sm:$0xff] }
 0x2e7   : > { %v3051_v52 = vsel %vm3045_vm10, %v3026_v24, %v3028_v41  ;;  %3164 = vmatprep.mubr.f32.mxu0 %v11258_v53 }
 0x2e8   : > { %4490 = vrot.lane.b32.xlu0 %v9334_v42, %s8492_s19  ;;  %7923 = vmatprep.subr.mxu1 %v3051_v52  ;;  %v3020_v39 = vpop.permute.xlu1 %3019 }
 0x2e9   : > { %4232 = vrot.lane.b32.xlu1 %v9302_v33, %s8491_s17  ;;  %7924 = vmatpush3.msra.mxu1 %v3051_v52  ;;  %v3048_v63 = vsel %vm3045_vm10, %v3018_v51, %v3020_v39 }
 0x2ea   : > { %v3296_v45 = vpop.permute.xlu0 %3295  ;;  %7443 = vmatmul.mubr.msk.f32.gmra.mxu0 %vm2578_vm7, %v7439_v38  ;;  %7925 = vmatprep.subr.mxu1 %v3048_v63 }
 0x2eb   : > { %v3314_v46 = vsel %vm3305_vm11, %v9616_v2, %v3296_v45  ;;  %7941 = vmatprep.mubr.msk.f32.mxu0 %vm2578_vm7, %v9628_v32  ;;  %7926 = vmatpush3.msra.mxu1 %v3048_v63  ;;  %v2477_v45 = vld [vmem:[%s8715_s25 + $0x8] sm:$0xff] }
 0x2ec   : > { %4486 = vrot.lane.b32.xlu0 %v9294_v55, %s8492_s19  ;;  %7935 = vmatprep.subr.mxu0 %v3314_v46  ;;  %v3288_v62 = vpop.permute.xlu1 %3287 }
 0x2ed   : > { %4482 = vrot.lane.b32.xlu1 %v9308_v35, %s8492_s19  ;;  %7936 = vmatpush3.msra.mxu0 %v3314_v46 }
 0x2ee   : > { %v3286_v3 = vpop.permute.xlu0 %3285  ;;  %7928 = vmatmul.mubr.msk.f32.vlgmr.msra.gmra.mxu1 %vm2578_vm7, %v7437_v8 }
 0x2ef   : > { %v3311_v5 = vsel %vm3305_vm11, %v3286_v3, %v3288_v62  ;;  %7930 = vmatprep.mubr.msk.f32.mxu1 %vm2578_vm7, %v7438_v30 }
 0x2f0   : > { %4484 = vrot.lane.b32.xlu0 %v9340_v59, %s8492_s19  ;;  %7937 = vmatprep.subr.mxu0 %v3311_v5  ;;  %v3280_v7 = vpop.permute.xlu1 %3279 }
 0x2f1   : > { %4480 = vrot.lane.b32.xlu1 %v9302_v33, %s8492_s19  ;;  %7938 = vmatpush3.msra.mxu0 %v3311_v5 }
 0x2f2   : > { %v3278_v6 = vpop.permute.xlu0 %3277  ;;  %7931 = vmatmul.mubr.msk.f32.gmra.mxu1 %vm2578_vm7, %v7439_v38 }
 0x2f3   : > { %v3308_v10 = vsel %vm3305_vm11, %v3278_v6, %v3280_v7  ;;  %3406 = vmatprep.mubr.f32.mxu1 %v11258_v53 }
 0x2f4   : > { %7939 = vmatprep.subr.mxu0 %v3308_v10  ;;  %v3298_v15 = vpop.permute.xlu1 %3297 }
 0x2f5   : > { %7940 = vmatpush3.msra.mxu0 %v3308_v10 }
 0x2f6   : > { %v3300_v12 = vpop.permute.xlu0 %3299  ;;  %3569 = vmatprep.subr.mxu0 %v9276_v23  ;;  %7942 = vmatmul.mubr.msk.f32.vlgmr.msra.gmra.mxu0 %vm2578_vm7, %v9651_v1 }
 0x2f7   : > { %v3315_v9 = vsel %vm3305_vm11, %v3298_v15, %v3300_v12  ;;  %v3316_v16 = vsel %vm3305_vm11, %v3300_v12, %v9605_v49  ;;  %3570 = vmatpush1.msra.mxu0 %v9268_v22  ;;  %7944 = vmatprep.mubr.msk.f32.mxu0 %vm2578_vm7, %v9655_v11 }
 0x2f8   : > { %3366 = vmatprep.subr.mxu1 %v3316_v16  ;;  %3571 = vmatprep.subr.mxu0 %v9284_v57  ;;  %v3290_v17 = vpop.permute.xlu1 %3289  ;;  %v9681_v57 = vld [vmem:[%s8685_s29 + $0x80] sm:$0xff] }
 0x2f9   : > { %3367 = vmatpush1.msra.mxu1 %v3315_v9  ;;  %3572 = vmatpush1.msra.mxu0 %v9278_v37  ;;  %v2479_v37 = vld [vmem:[%s8715_s25 + $0x18] sm:$0xff] }
 0x2fa   : > { %v3292_v23 = vpop.permute.xlu0 %3291  ;;  %3573 = vmatprep.subr.mxu0 %v9292_v31  ;;  %7945 = vmatmul.mubr.msk.f32.gmra.mxu0 %vm2578_vm7, %v9668_v60  ;;  %v2478_v31 = vld [vmem:[%s8715_s25 + $0x10] sm:$0xff] }
 0x2fb   : > { %v3312_v22 = vsel %vm3305_vm11, %v3290_v17, %v3292_v23  ;;  %v3313_v18 = vsel %vm3305_vm11, %v3292_v23, %v9616_v2  ;;  %3574 = vmatpush1.msra.mxu0 %v9294_v55  ;;  %3609 = vmatprep.mubr.f32.mxu0 %v11258_v53  ;;  %v7484_v17 = vld [vmem:[%s8685_s29 + $0xc0] sm:$0xff] }
 0x2fc   : > { %3368 = vmatprep.subr.mxu1 %v3313_v18  ;;  %3575 = vmatprep.subr.mxu0 %v9308_v35  ;;  %v3282_v20 = vpop.permute.xlu1 %3281 }
 0x2fd   : > { %3369 = vmatpush1.msra.mxu1 %v3312_v22  ;;  %3576 = vmatpush1.msra.mxu0 %v9302_v33 }
 0x2fe   : > { %v3284_v19 = vpop.permute.xlu0 %3283  ;;  %7464 = vmatmul.mubr.msk.f32.vlgmr.msra.gmra.mxu0 %vm2578_vm7, %v9681_v57  ;;  %4740 = vperm.xlu0 %8286, %v2479_v37   ;;  %v7485_v37 = vld [vmem:[%s8685_s29 + $0xc8] sm:$0xff] }
 0x2ff   : > { %v3310_v55 = vsel %vm3305_vm11, %v3284_v19, %v3286_v3  ;;  %3615 = vmatprep.mubr.f32.mxu0 %v11258_v53  ;;  %4735 = vperm.xlu1 %8287, %v2478_v31   ;;  %v3309_v24 = vsel %vm3305_vm11, %v3282_v20, %v3284_v19  ;;  %v7486_v20 = vld [vmem:[%s8685_s29 + $0xd0] sm:$0xff] }
 0x300   : > { %3370 = vmatprep.subr.mxu1 %v3310_v55  ;;  %v3274_v33 = vpop.permute.xlu1 %3273 }
 0x301   : > { %3371 = vmatpush1.msra.mxu1 %v3309_v24  ;;  %v7487_v24 = vld [vmem:[%s8685_s29 + $0xd8] sm:$0xff] }
 0x302   : > { %v3276_v35 = vpop.permute.xlu0 %3275  ;;  %7465 = vmatmul.mubr.msk.f32.gmra.mxu0 %vm2578_vm7, %v7461_v21  ;;  %4725 = vperm.xlu0 %8286, %v2476_v13  }
 0x303   : > { %v3307_v36 = vsel %vm3305_vm11, %v3276_v35, %v3278_v6  ;;  %3621 = vmatprep.mubr.f32.mxu0 %v11258_v53  ;;  %v3306_v25 = vsel %vm3305_vm11, %v3274_v33, %v3276_v35  ;;  %4730 = vperm.xlu1 %8287, %v2477_v45   ;;  %v7496_v33 = vld [vmem:[%s8685_s29 + $0xe0] sm:$0xff] }
 0x304   : > { %3372 = vmatprep.subr.mxu1 %v3307_v36  ;;  %v3753_v4 = vpop.permute.xlu1 %3752 }
 0x305   : > { %3373 = vmatpush1.msra.mxu1 %v3306_v25 }
 0x306   : > { %v3759_v26 = vpop.permute.xlu0 %3758  ;;  %7452 = vmatmul.mubr.msk.f32.vlgmr.msra.gmra.mxu1 %vm2578_vm7, %v9628_v32  ;;  %7947 = vmatprep.subr.mxu1 %v9322_v56 }
 0x307   : > { %7948 = vmatpush3.msra.mxu1 %v9322_v56  ;;  %7961 = vmatprep.subr.mxu0 %v3759_v26  ;;  %v7462_v56 = vld [vmem:[%s8685_s29 + $0x90] sm:$0xff] }
 0x308   : > { %7949 = vmatprep.subr.mxu1 %v9324_v61  ;;  %7962 = vmatpush3.msra.mxu0 %v3759_v26  ;;  %v3757_v50 = vpop.permute.xlu1 %3756 }
 0x309   : > { %3412 = vmatprep.mubr.f32.mxu1 %v11258_v53  ;;  %7950 = vmatpush3.msra.mxu1 %v9324_v61  ;;  %v3768_v51 = vsel %vm3760_vm12, %v3757_v50, %v3759_v26 }
 0x30a   : > { %7963 = vmatprep.subr.mxu0 %v3753_v4  ;;  %v3747_v27 = vpop.permute.xlu0 %3746  ;;  %7453 = vmatmul.mubr.msk.f32.gmra.mxu1 %vm2578_vm7, %v9651_v1 }
 0x30b   : > { %7951 = vmatprep.subr.mxu1 %v9334_v42  ;;  %7964 = vmatpush3.msra.mxu0 %v3753_v4 }
 0x30c   : > { %7952 = vmatpush3.msra.mxu1 %v9334_v42  ;;  %3418 = vmatprep.mubr.f32.mxu1 %v11258_v53  ;;  %v3755_v48 = vpop.permute.xlu1 %3754  ;;  %v7463_v42 = vld [vmem:[%s8685_s29 + $0x98] sm:$0xff] }
 0x30d   : > { %7953 = vmatprep.subr.mxu1 %v9340_v59  ;;  %7965 = vmatprep.subr.mxu0 %v3747_v27  ;;  %v3767_v47 = vsel %vm3760_vm12, %v3755_v48, %v3757_v50 }
 0x30e   : > { %7954 = vmatpush3.msra.mxu1 %v9340_v59  ;;  %v3741_v61 = vpop.permute.xlu0 %3740  ;;  %7966 = vmatpush3.msra.mxu0 %v3747_v27  ;;  %v7472_v59 = vld [vmem:[%s8685_s29 + $0xa0] sm:$0xff] }
 0x30f   : > { %7454 = vmatmul.mubr.msk.f32.gmra.mxu1 %vm2578_vm7, %v9655_v11  ;;  %3817 = vmatprep.subr.mxu1 %v3768_v51  ;;  %v9795_v51 = vld [vmem:[%s8685_s29 + $0xf8] sm:$0xff] }
 0x310   : > { %7466 = vmatmul.mubr.msk.f32.gmra.mxu0 %vm2578_vm7, %v7462_v56  ;;  %3424 = vmatprep.mubr.f32.mxu1 %v11258_v53  ;;  %v4005_v40 = vpop.permute.xlu1 %4004 }
 0x311   : > { %7967 = vmatprep.subr.mxu0 %v3741_v61  ;;  %3627 = vmatprep.mubr.f32.mxu0 %v11258_v53 }
 0x312   : > { %v3751_v34 = vpop.permute.xlu0 %3750  ;;  %7968 = vmatpush3.msra.mxu0 %v3741_v61 }
 0x313   : > { %7455 = vmatmul.mubr.msk.f32.gmra.mxu1 %vm2578_vm7, %v9668_v60  ;;  %v3766_v49 = vsel %vm3760_vm12, %v3751_v34, %v3753_v4  ;;  %v7497_v4 = vld [vmem:[%s8685_s29 + $0xe8] sm:$0xff] }
 0x314   : > { %7467 = vmatmul.mubr.msk.f32.gmra.mxu0 %vm2578_vm7, %v7463_v42  ;;  %7955 = vmatprep.mubr.msk.f32.mxu1 %vm2578_vm7, %v9681_v57 }
 0x315   : > { %7969 = vmatprep.mubr.msk.f32.mxu0 %vm2578_vm7, %v7472_v59 }
 0x316   : > { %v4007_v28 = vpop.permute.xlu0 %4006 }
 0x317   : > { %v3749_v29 = vpop.permute.xlu1 %3748  ;;  %7956 = vmatmul.mubr.msk.f32.vlgmr.msra.gmra.mxu1 %vm2578_vm7, %v7461_v21  ;;  %v4016_v8 = vsel %vm4008_vm13, %v4005_v40, %v4007_v28 }
 0x318   : > { %v3765_v58 = vsel %vm3760_vm12, %v3749_v29, %v3751_v34  ;;  %3818 = vmatpush1.msra.mxu1 %v3767_v47  ;;  %7970 = vmatmul.mubr.msk.f32.vlgmr.msra.gmra.mxu0 %vm2578_vm7, %v7473_v44 }
 0x319   : > { %3819 = vmatprep.subr.mxu1 %v3766_v49  ;;  %4065 = vmatprep.subr.mxu0 %v4016_v8 }
 0x31a   : > { %3820 = vmatpush1.msra.mxu1 %v3765_v58  ;;  %7958 = vmatprep.mubr.msk.f32.mxu1 %vm2578_vm7, %v7462_v56  ;;  %v4003_v30 = vpop.permute.xlu0 %4002 }
 0x31b   : > { %v4015_v41 = vsel %vm4008_vm13, %v4003_v30, %v4005_v40  ;;  %v3745_v2 = vpop.permute.xlu1 %3744  ;;  %7959 = vmatmul.mubr.msk.f32.gmra.mxu1 %vm2578_vm7, %v7463_v42  ;;  %7972 = vmatprep.mubr.msk.f32.mxu0 %vm2578_vm7, %v7474_v14 }
 0x31c   : > { %v3764_v52 = vsel %vm3760_vm12, %v3745_v2, %v3747_v27  ;;  %7973 = vmatmul.mubr.msk.f32.gmra.mxu0 %vm2578_vm7, %v9736_v43  ;;  %3857 = vmatprep.mubr.f32.mxu1 %v11258_v53  ;;  %v9788_v27 = vld [vmem:[%s8685_s29 + $0xf0] sm:$0xff] }
 0x31d   : > { %3821 = vmatprep.subr.mxu1 %v3764_v52  ;;  %4066 = vmatpush1.msra.mxu0 %v4015_v41 }
 0x31e   : > { %v3999_v38 = vpop.permute.xlu0 %3998  ;;  %4105 = vmatprep.mubr.f32.mxu0 %v11258_v53 }
 0x31f   : > { %v4001_v32 = vpop.permute.xlu1 %4000 }
 0x320   : > { %v4014_v39 = vsel %vm4008_vm13, %v3999_v38, %v4001_v32 }
 0x321   : > { %4067 = vmatprep.subr.mxu0 %v4014_v39 }
 0x322   : > { %v3743_v63 = vpop.permute.xlu0 %3742 }
 0x323   : > { %v3763_v46 = vsel %vm3760_vm12, %v3743_v63, %v3745_v2  ;;  %v3997_v3 = vpop.permute.xlu1 %3996 }
 0x324   : > { %v4013_v62 = vsel %vm4008_vm13, %v3997_v3, %v3999_v38  ;;  %3822 = vmatpush1.msra.mxu1 %v3763_v46 }
 0x325   : > { %4068 = vmatpush1.msra.mxu0 %v4013_v62 }
 0x326   : > { %v3739_v5 = vpop.permute.xlu0 %3738 }
 0x327   : > { %v3993_v6 = vpop.permute.xlu1 %3992  ;;  %v3762_v7 = vsel %vm3760_vm12, %v3739_v5, %v3741_v61 }
 0x328   : > { %3823 = vmatprep.subr.mxu1 %v3762_v7  ;;  %v7508_v7 = vld [vmem:[%s8685_s29 + $0x100] sm:$0xff] }
 0x32a   : > { %v3995_v10 = vpop.permute.xlu0 %3994 }
 0x32b   : > { %v3737_v1 = vpop.permute.xlu1 %3736  ;;  %v4012_v54 = vsel %vm4008_vm13, %v3993_v6, %v3995_v10 }
 0x32c   : > { %v3761_v11 = vsel %vm3760_vm12, %v3737_v1, %v3739_v5  ;;  %4069 = vmatprep.subr.mxu0 %v4012_v54 }
 0x32d   : > { %3824 = vmatpush1.msra.mxu1 %v3761_v11  ;;  %v7509_v11 = vld [vmem:[%s8685_s29 + $0x108] sm:$0xff] }
 0x32e   : > { %7476 = vmatmul.mubr.msk.f32.vlgmr.msra.gmra.mxu1 %vm2578_vm7, %v7472_v59  ;;  %7975 = vmatprep.subr.mxu1 %v4007_v28  ;;  %v3991_v12 = vpop.permute.xlu0 %3990 }
 0x32f   : > { %v4011_v15 = vsel %vm4008_vm13, %v3991_v12, %v3993_v6  ;;  %v3987_v9 = vpop.permute.xlu1 %3986  ;;  %7976 = vmatpush3.msra.mxu1 %v4007_v28  ;;  %3863 = vmatprep.mubr.f32.mxu1 %v11258_v53 }
 0x330   : > { %7977 = vmatprep.subr.mxu1 %v4001_v32  ;;  %4070 = vmatpush1.msra.mxu0 %v4011_v15  ;;  %v7510_v15 = vld [vmem:[%s8685_s29 + $0x110] sm:$0xff] }
 0x331   : > { %7978 = vmatpush3.msra.mxu1 %v4001_v32 }
 0x332   : > { %7477 = vmatmul.mubr.msk.f32.gmra.mxu1 %vm2578_vm7, %v7473_v44  ;;  %7979 = vmatprep.subr.mxu1 %v3995_v10  ;;  %v3989_v16 = vpop.permute.xlu0 %3988 }
 0x333   : > { %v3985_v60 = vpop.permute.xlu1 %3984  ;;  %7980 = vmatpush3.msra.mxu1 %v3995_v10  ;;  %3869 = vmatprep.mubr.f32.mxu1 %v11258_v53  ;;  %v4010_v23 = vsel %vm4008_vm13, %v3987_v9, %v3989_v16 }
 0x334   : > { %v4009_v22 = vsel %vm4008_vm13, %v3985_v60, %v3987_v9  ;;  %4071 = vmatprep.subr.mxu0 %v4010_v23  ;;  %7981 = vmatprep.subr.mxu1 %v3989_v16 }
 0x335   : > { %4072 = vmatpush1.msra.mxu0 %v4009_v22  ;;  %7982 = vmatpush3.msra.mxu1 %v3989_v16  ;;  %v7511_v16 = vld [vmem:[%s8685_s29 + $0x118] sm:$0xff] }
 0x336   : > { %7478 = vmatmul.mubr.msk.f32.gmra.mxu1 %vm2578_vm7, %v7474_v14  ;;  %v4255_v18 = vpop.permute.xlu0 %4254  ;;  %7488 = vmatmul.mubr.msk.f32.vlgmr.msra.gmra.mxu0 %vm2578_vm7, %v7484_v17 }
 0x337   : > { %v4249_v57 = vpop.permute.xlu1 %4248  ;;  %7989 = vmatprep.subr.mxu0 %v4255_v18  ;;  %3875 = vmatprep.mubr.f32.mxu1 %v11258_v53 }
 0x338   : > { %7990 = vmatpush3.msra.mxu0 %v4255_v18  ;;  %4111 = vmatprep.mubr.f32.mxu0 %v11258_v53 }
 0x339   : > { %7991 = vmatprep.subr.mxu0 %v4249_v57 }
 0x33a   : > { %7479 = vmatmul.mubr.msk.f32.gmra.mxu1 %vm2578_vm7, %v9736_v43  ;;  %v4243_v31 = vpop.permute.xlu0 %4242  ;;  %7489 = vmatmul.mubr.msk.f32.gmra.mxu0 %vm2578_vm7, %v7485_v37 }
 0x33b   : > { %v4253_v19 = vpop.permute.xlu1 %4252  ;;  %7992 = vmatpush3.msra.mxu0 %v4249_v57  ;;  %7983 = vmatprep.mubr.msk.f32.mxu1 %vm2578_vm7, %v7484_v17 }
 0x33c   : > { %v4264_v55 = vsel %vm4256_vm14, %v4253_v19, %v4255_v18  ;;  %4117 = vmatprep.mubr.f32.mxu0 %v11258_v53  ;;  %7993 = vmatprep.subr.mxu0 %v4243_v31 }
 0x33d   : > { %4313 = vmatprep.subr.mxu1 %v4264_v55  ;;  %7994 = vmatpush3.msra.mxu0 %v4243_v31 }
 0x33e   : > { %7984 = vmatmul.mubr.msk.f32.vlgmr.msra.gmra.mxu1 %vm2578_vm7, %v7485_v37  ;;  %v4237_v21 = vpop.permute.xlu0 %4236  ;;  %7490 = vmatmul.mubr.msk.f32.gmra.mxu0 %vm2578_vm7, %v7486_v20 }
 0x33f   : > { %v4251_v13 = vpop.permute.xlu1 %4250  ;;  %7986 = vmatprep.mubr.msk.f32.mxu1 %vm2578_vm7, %v7486_v20  ;;  %4123 = vmatprep.mubr.f32.mxu0 %v11258_v53 }
 0x340   : > { %v4263_v35 = vsel %vm4256_vm14, %v4251_v13, %v4253_v19  ;;  %7995 = vmatprep.subr.mxu0 %v4237_v21 }
 0x341   : > { %4314 = vmatpush1.msra.mxu1 %v4263_v35  ;;  %7996 = vmatpush3.msra.mxu0 %v4237_v21  ;;  %v4816_v35 = vld [vmem:[#allocation3] sm:$0xff] }
 0x342   : > { %7987 = vmatmul.mubr.msk.f32.gmra.mxu1 %vm2578_vm7, %v7487_v24  ;;  %v4247_v36 = vpop.permute.xlu0 %4246  ;;  %7491 = vmatmul.mubr.msk.f32.gmra.mxu0 %vm2578_vm7, %v7487_v24  ;;  %v4824_v24 = vld [vmem:[#allocation3 + $0x40] sm:$0xff] }
 0x343   : > { %v4501_v25 = vpop.permute.xlu1 %4500  ;;  %v4262_v26 = vsel %vm4256_vm14, %v4247_v36, %v4249_v57  ;;  %7997 = vmatprep.mubr.msk.f32.mxu0 %vm2578_vm7, %v7496_v33  ;;  %4353 = vmatprep.mubr.f32.mxu1 %v11258_v53 }
 0x344   : > { %4315 = vmatprep.subr.mxu1 %v4262_v26  ;;  %4869 = vrot.lane.b32.xlu0 %v4824_v24, %s8484_s20 }
 0x346   : > { %v4503_v50 = vpop.permute.xlu0 %4502  ;;  %7998 = vmatmul.mubr.msk.f32.vlgmr.msra.gmra.mxu0 %vm2578_vm7, %v7497_v4 }
 0x347   : > { %v4245_v56 = vpop.permute.xlu1 %4244  ;;  %v4512_v61 = vsel %vm4504_vm15, %v4501_v25, %v4503_v50  ;;  %8000 = vmatprep.mubr.msk.f32.mxu0 %vm2578_vm7, %v9788_v27 }
 0x348   : > { %v4261_v48 = vsel %vm4256_vm14, %v4245_v56, %v4247_v36  ;;  %4561 = vmatprep.subr.mxu0 %v4512_v61  ;;  %4853 = vrot.lane.b32.xlu0 %v4816_v35, %s8484_s20  ;;  %v4820_v36 = vld [vmem:[#allocation3 + $0x20] sm:$0xff] }
 0x349   : > { %4316 = vmatpush1.msra.mxu1 %v4261_v48 }
 0x34a   : > { %v4499_v42 = vpop.permute.xlu0 %4498  ;;  %8001 = vmatmul.mubr.msk.f32.gmra.mxu0 %vm2578_vm7, %v9795_v51 }
 0x34b   : > { %v4511_v34 = vsel %vm4504_vm15, %v4499_v42, %v4501_v25  ;;  %v4241_v59 = vpop.permute.xlu1 %4240  ;;  %4601 = vmatprep.mubr.f32.mxu0 %v11258_v53 }
 0x34c   : > { %v4260_v40 = vsel %vm4256_vm14, %v4241_v59, %v4243_v31  ;;  %4562 = vmatpush1.msra.mxu0 %v4511_v34 }
 0x34d   : > { %4317 = vmatprep.subr.mxu1 %v4260_v40 }
 0x34e   : > { %v4495_v44 = vpop.permute.xlu0 %4494 }
 0x34f   : > { %v4497_v28 = vpop.permute.xlu1 %4496 }
 0x350   : > { %v4510_v47 = vsel %vm4504_vm15, %v4495_v44, %v4497_v28 }
 0x351   : > { %4563 = vmatprep.subr.mxu0 %v4510_v47 }
 0x352   : > { %v4239_v29 = vpop.permute.xlu0 %4238 }
 0x353   : > { %v4259_v8 = vsel %vm4256_vm14, %v4239_v29, %v4241_v59  ;;  %v4493_v58 = vpop.permute.xlu1 %4492 }
 0x354   : > { %v4509_v49 = vsel %vm4504_vm15, %v4493_v58, %v4495_v44  ;;  %4318 = vmatpush1.msra.mxu1 %v4259_v8 }
 0x355   : > { %4564 = vmatpush1.msra.mxu0 %v4509_v49 }
 0x356   : > { %v4235_v14 = vpop.permute.xlu0 %4234 }
 0x357   : > { %v4489_v43 = vpop.permute.xlu1 %4488  ;;  %v4258_v30 = vsel %vm4256_vm14, %v4235_v14, %v4237_v21 }
 0x358   : > { %4319 = vmatprep.subr.mxu1 %v4258_v30 }
 0x35a   : > { %v4491_v41 = vpop.permute.xlu0 %4490 }
 0x35b   : > { %v4233_v2 = vpop.permute.xlu1 %4232  ;;  %v4508_v52 = vsel %vm4504_vm15, %v4489_v43, %v4491_v41 }
 0x35c   : > { %v4257_v38 = vsel %vm4256_vm14, %v4233_v2, %v4235_v14  ;;  %4565 = vmatprep.subr.mxu0 %v4508_v52 }
 0x35d   : > { %4320 = vmatpush1.msra.mxu1 %v4257_v38 }
 0x35e   : > { %7500 = vmatmul.mubr.msk.f32.vlgmr.msra.gmra.mxu1 %vm2578_vm7, %v7496_v33  ;;  %8003 = vmatprep.subr.mxu1 %v4503_v50  ;;  %v4487_v32 = vpop.permute.xlu0 %4486  ;;  %v9810_v45 = vpop.f32.mrf.mxu0  ;;  %v4828_v33 = vld [vmem:[#allocation3 + $0x60] sm:$0xff] }
 0x35f   : > { %v4507_v39 = vsel %vm4504_vm15, %v4487_v32, %v4489_v43  ;;  %8004 = vmatpush3.msra.mxu1 %v4503_v50  ;;  %v4483_v63 = vpop.permute.xlu1 %4482  ;;  %4359 = vmatprep.mubr.f32.mxu1 %v11258_v53 }
 0x360   : > { %8005 = vmatprep.subr.mxu1 %v4497_v28  ;;  %4566 = vmatpush1.msra.mxu0 %v4507_v39  ;;  %v9814_v46 = vpop.f32.mrf.mxu0 }
 0x361   : > { %8006 = vmatpush3.msra.mxu1 %v4497_v28  ;;  %5119 = vrot.lane.b32.xlu0 %v4828_v33, %s8486_s26 }
 0x362   : > { %7501 = vmatmul.mubr.msk.f32.gmra.mxu1 %vm2578_vm7, %v7497_v4  ;;  %8007 = vmatprep.subr.mxu1 %v4491_v41  ;;  %v4485_v3 = vpop.permute.xlu0 %4484  ;;  %v9817_v62 = vpop.f32.mrf.mxu0 }
 0x363   : > { %8008 = vmatpush3.msra.mxu1 %v4491_v41  ;;  %v4481_v5 = vpop.permute.xlu1 %4480  ;;  %4365 = vmatprep.mubr.f32.mxu1 %v11258_v53  ;;  %v4506_v6 = vsel %vm4504_vm15, %v4483_v63, %v4485_v3 }
 0x364   : > { %v4505_v10 = vsel %vm4504_vm15, %v4481_v5, %v4483_v63  ;;  %4567 = vmatprep.subr.mxu0 %v4506_v6  ;;  %8009 = vmatprep.subr.mxu1 %v4485_v3  ;;  %v2665_v1 = vpop.f32.mrf.mxu0 }
 0x365   : > { %4568 = vmatpush1.msra.mxu0 %v4505_v10  ;;  %8010 = vmatpush3.msra.mxu1 %v4485_v3 }
 0x366   : > { %7502 = vmatmul.mubr.msk.f32.gmra.mxu1 %vm2578_vm7, %v9788_v27  ;;  %7512 = vmatmul.mubr.msk.f32.vlgmr.msra.gmra.mxu0 %vm2578_vm7, %v7508_v7  ;;  %v2669_v54 = vpop.f32.mrf.mxu0 }
 0x367   : > { %4371 = vmatprep.mubr.f32.mxu1 %v11258_v53  ;;  %4607 = vmatprep.mubr.f32.mxu0 %v11258_v53 }
 0x368   : > { %v2671_v12 = vpop.f32.mrf.mxu0  ;;  %4877 = vrot.lane.b32.xlu1 %v4828_v33, %s8484_s20  ;;  %5111 = vrot.lane.b32.xlu0 %v4824_v24, %s8486_s26 }
 0x36a   : > { %7503 = vmatmul.mubr.msk.f32.gmra.mxu1 %vm2578_vm7, %v9795_v51  ;;  %7513 = vmatmul.mubr.msk.f32.gmra.mxu0 %vm2578_vm7, %v7509_v11  ;;  %v2675_v9 = vpop.f32.mrf.mxu0 }
 0x36b   : > { %8011 = vmatprep.mubr.msk.f32.mxu1 %vm2578_vm7, %v7508_v7  ;;  %4613 = vmatprep.mubr.f32.mxu0 %v11258_v53 }
 0x36c   : > { %v2677_v23 = vpop.f32.mrf.mxu0  ;;  %4861 = vrot.lane.b32.xlu1 %v4820_v36, %s8484_s20  ;;  %5103 = vrot.lane.b32.xlu0 %v4820_v36, %s8486_s26 }
 0x36e   : > { %8012 = vmatmul.mubr.msk.f32.vlgmr.msra.gmra.mxu1 %vm2578_vm7, %v7509_v11  ;;  %7514 = vmatmul.mubr.msk.f32.gmra.mxu0 %vm2578_vm7, %v7510_v15  ;;  %v7901_v60 = vpop.f32.mrf.mxu1 }
 0x36f   : > { %8014 = vmatprep.mubr.msk.f32.mxu1 %vm2578_vm7, %v7510_v15  ;;  %4619 = vmatprep.mubr.f32.mxu0 %v11258_v53 }
 0x370   : > { %v2746_v17 = vpop.f32.mrf.mxu1  ;;  %5366 = vrot.lane.b32.xlu1 %v4828_v33, %s8487_s8  ;;  %5095 = vrot.lane.b32.xlu0 %v4816_v35, %s8486_s26 }
 0x372   : > { %8015 = vmatmul.mubr.msk.f32.gmra.mxu1 %vm2578_vm7, %v7511_v16  ;;  %7515 = vmatmul.mubr.msk.f32.gmra.mxu0 %vm2578_vm7, %v7511_v16  ;;  %v7904_v57 = vpop.f32.mrf.mxu1 }
 0x373   : > { %4985 = vmatprep.mubr.f32.mxu1 %v11258_v53 }
 0x374   : > { %v2756_v55 = vpop.f32.mrf.mxu1  ;;  %5350 = vrot.lane.b32.xlu1 %v4820_v36, %s8487_s8  ;;  %5358 = vrot.lane.b32.xlu0 %v4824_v24, %s8487_s8 }
 0x376   : > { %v7915_v22 = vpop.f32.mrf.mxu0 }
 0x377   : > { %v9843_v18 = vadd.f32 %v7915_v22, %v7901_v60 }
 0x378   : > { %v2989_v37 = vpop.f32.mrf.mxu0  ;;  %5342 = vrot.lane.b32.xlu0 %v4816_v35, %s8487_s8 }
 0x379   : > { %v9845_v31 = vadd.f32 %v2989_v37, %v2746_v17 }
 0x37a   : > { %v7918_v19 = vpop.f32.mrf.mxu0 }
 0x37b   : > { %v9847_v20 = vadd.f32 %v7918_v19, %v7904_v57 }
 0x37c   : > { %v2999_v21 = vpop.f32.mrf.mxu0  ;;  %5625 = vrot.lane.b32.xlu0 %v4828_v33, %s8488_s18 }
 0x37d   : > { %v9849_v13 = vadd.f32 %v2999_v21, %v2756_v55 }
 0x380   : > { %5617 = vrot.lane.b32.xlu0 %v4824_v24, %s8488_s18 }
 0x384   : > { %5609 = vrot.lane.b32.xlu0 %v4820_v36, %s8488_s18 }
 0x388   : > { %5601 = vrot.lane.b32.xlu0 %v4816_v35, %s8488_s18 }
 0x393   : > { %v2900_v25 = vpop.f32.mrf.mxu1 }
 0x394   : > { %v9862_v26 = vadd.f32 %v2900_v25, %v9810_v45 }
 0x395   : > { %v2902_v4 = vpop.f32.mrf.mxu1 }
 0x396   : > { %v9865_v27 = vadd.f32 %v2902_v4, %v9814_v46 }
 0x397   : > { %v2906_v50 = vpop.f32.mrf.mxu1 }
 0x398   : > { %v9869_v56 = vadd.f32 %v2906_v50, %v9817_v62 }
 0x399   : > { %v2908_v61 = vpop.f32.mrf.mxu1 }
 0x39a   : > { %v9871_v51 = vadd.f32 %v2908_v61, %v2665_v1 }
 0x39b   : > { %v2912_v42 = vpop.f32.mrf.mxu1 }
 0x39c   : > { %v9876_v34 = vadd.f32 %v2912_v42, %v2669_v54 }
 0x39d   : > { %v2914_v40 = vpop.f32.mrf.mxu1 }
 0x39e   : > { %v9874_v48 = vpop.f32.mrf.mxu0  ;;  %v9880_v44 = vadd.f32 %v2914_v40, %v2671_v12 }
 0x39f   : > { %v2918_v29 = vpop.f32.mrf.mxu1 }
 0x3a0   : > { %v9878_v59 = vpop.f32.mrf.mxu0  ;;  %v9888_v8 = vadd.f32 %v2918_v29, %v2675_v9 }
 0x3a1   : > { %v2920_v58 = vpop.f32.mrf.mxu1 }
 0x3a2   : > { %v9883_v28 = vpop.f32.mrf.mxu0  ;;  %v9890_v49 = vadd.f32 %v2920_v58, %v2677_v23 }
 0x3a4   : > { %v9886_v47 = vpop.f32.mrf.mxu0 }
 0x3a6   : > { %v9893_v14 = vpop.f32.mrf.mxu0 }
 0x3a8   : > { %v9896_v43 = vpop.f32.mrf.mxu0 }
 0x3aa   : > { %v9898_v30 = vpop.f32.mrf.mxu0 }
 0x3ac   : > { %v9900_v41 = vpop.f32.mrf.mxu0 }
 0x3ae   : > { %v7929_v2 = vpop.f32.mrf.mxu1 }
 0x3b0   : > { %v3237_v52 = vpop.f32.mrf.mxu1 }
 0x3b2   : > { %v7932_v32 = vpop.f32.mrf.mxu1 }
 0x3b4   : > { %v9906_v39 = vpop.f32.mrf.mxu1 }
 0x3b6   : > { %v9902_v38 = vpop.f32.mrf.mxu0 }
 0x3b8   : > { %v9904_v45 = vpop.f32.mrf.mxu0 }
 0x3ba   : > { %v9908_v63 = vpop.f32.mrf.mxu0 }
 0x3bc   : > { %v9910_v3 = vpop.f32.mrf.mxu0 }
 0x3be   : > { %v9912_v5 = vpop.f32.mrf.mxu0 }
 0x3c0   : > { %v9916_v7 = vpop.f32.mrf.mxu0 }
 0x3c2   : > { %v9920_v1 = vpop.f32.mrf.mxu0 }
 0x3c4   : > { %v9924_v11 = vpop.f32.mrf.mxu0 }
 0x3c6   : > { %v3408_v46 = vpop.f32.mrf.mxu1 }
 0x3c8   : > { %v3410_v62 = vpop.f32.mrf.mxu1 }
 0x3ca   : > { %v9914_v6 = vpop.f32.mrf.mxu1 }
 0x3cc   : > { %v9918_v10 = vpop.f32.mrf.mxu1 }
 0x3cf   : > { %v9922_v54 = vpop.f32.mrf.mxu1 }
 0x3d0   : > { %v9928_v15 = vpop.f32.mrf.mxu0 }
 0x3d1   : > { %v9926_v12 = vpop.f32.mrf.mxu1 }
 0x3d2   : > { %v9932_v16 = vpop.f32.mrf.mxu0 }
 0x3d3   : > { %v9930_v9 = vpop.f32.mrf.mxu1 }
 0x3d4   : > { %v9936_v23 = vpop.f32.mrf.mxu0 }
 0x3d5   : > { %v9934_v60 = vpop.f32.mrf.mxu1  ;;  %11337 = vst [vmem:[#allocation38_spill] sm:$0xff] %v9936_v23 }
 0x3d6   : > { %v9940_v22 = vpop.f32.mrf.mxu0 }
 0x3d7   : > { %v9938_v17 = vpop.f32.mrf.mxu1  ;;  %11338 = vst [vmem:[#allocation39_spill] sm:$0xff] %v9940_v22  ;;  %v4768_v22 = vlaneseq }
 0x3d8   : > { %v9944_v37 = vpop.f32.mrf.mxu0 }
 0x3d9   : > { %v9942_v57 = vpop.f32.mrf.mxu1  ;;  %11339 = vst [vmem:[#allocation40_spill] sm:$0xff] %v9944_v37 }
 0x3da   : > { %v9948_v55 = vpop.f32.mrf.mxu0 }
 0x3db   : > { %v9946_v19 = vpop.f32.mrf.mxu1  ;;  %11340 = vst [vmem:[#allocation41_spill] sm:$0xff] %v9948_v55 }
 0x3dc   : > { %v9952_v35 = vpop.f32.mrf.mxu0 }
 0x3dd   : > { %v9950_v21 = vpop.f32.mrf.mxu1  ;;  %11341 = vst [vmem:[#allocation42_spill] sm:$0xff] %v9952_v35 }
 0x3de   : > { %v9956_v36 = vpop.f32.mrf.mxu0 }
 0x3df   : > { %11342 = vst [vmem:[#allocation43_spill] sm:$0xff] %v9956_v36 }
 0x3ee   : > { %v3859_v24 = vpop.f32.mrf.mxu1 }
 0x3f0   : > { %v9954_v33 = vpop.f32.mrf.mxu1 }
 0x3f2   : > { %v9958_v25 = vpop.f32.mrf.mxu1 }
 0x3f4   : > { %v9962_v50 = vpop.f32.mrf.mxu1 }
 0x3f5   : > { %11343 = vst [vmem:[#allocation44_spill] sm:$0xff] %v9962_v50 }
 0x3f6   : > { %v9960_v4 = vpop.f32.mrf.mxu0  ;;  %v9966_v42 = vpop.f32.mrf.mxu1 }
 0x3f7   : > { %11344 = vst [vmem:[#allocation45_spill] sm:$0xff] %v9966_v42 }
 0x3f8   : > { %v9964_v61 = vpop.f32.mrf.mxu0  ;;  %v9970_v29 = vpop.f32.mrf.mxu1 }
 0x3f9   : > { %11346 = vst [vmem:[#allocation47_spill] sm:$0xff] %v9970_v29  ;;  %v4769_v29 = vshrl.u32 %v4768_v22, 7  ;;  %v3260_v22 = vadd.f32 %v9886_v47, %v9871_v51  ;;  %v3265_v51 = vadd.f32 %v9898_v30, %v9888_v8 }
 0x3fa   : > { %v9968_v40 = vpop.f32.mrf.mxu0  ;;  %v9974_v53 = vpop.f32.mrf.mxu1 }
 0x3fb   : > { %11345 = vst [vmem:[#allocation46_spill] sm:$0xff] %v9968_v40  ;;  %11348 = vst [vmem:[#allocation49_spill] sm:$0xff] %v9974_v53  ;;  %v3520_v30 = vadd.f32 %v9918_v10, %v3260_v22 }
 0x3fc   : > { %v9972_v58 = vpop.f32.mrf.mxu0  ;;  %v9978_v36 = vpop.f32.mrf.mxu1 }
 0x3fd   : > { %11347 = vst [vmem:[#allocation48_spill] sm:$0xff] %v9972_v58  ;;  %11350 = vst [vmem:[#allocation51_spill] sm:$0xff] %v9978_v36  ;;  %v3256_v58 = vadd.f32 %v9874_v48, %v9862_v26  ;;  %v4770_v36 = vsub.s32 0, %v4769_v29  ;;  %v3262_v26 = vadd.f32 %v9893_v14, %v9876_v34  ;;  %v3258_v48 = vadd.f32 %v3237_v52, %v9845_v31  ;;  %v10028_v14 = vpop.permute.xlu0 %4740 }
 0x3fe   : > { %v9976_v35 = vpop.f32.mrf.mxu0  ;;  %v9982_v37 = vpop.f32.mrf.mxu1  ;;  %v3266_v34 = vadd.f32 %v9900_v41, %v9890_v49 }
 0x3ff   : > { %11349 = vst [vmem:[#allocation50_spill] sm:$0xff] %v9976_v35  ;;  %11352 = vst [vmem:[#allocation53_spill] sm:$0xff] %v9982_v37  ;;  %v4774_v37 = vsub.s32 1, %v4769_v29  ;;  %v3516_v23 = vadd.f32 %v3408_v46, %v3256_v58  ;;  %v3518_v8 = vadd.f32 %v9904_v45, %v3258_v48  ;;  %v3522_v41 = vadd.f32 %v9922_v54, %v3262_v26  ;;  %v11364_v58 = vld [vmem:[#allocation42_spill] sm:$0xff] }
 0x400   : > { %v9980_v55 = vpop.f32.mrf.mxu0  ;;  %v9986_v42 = vpop.f32.mrf.mxu1  ;;  %v3526_v45 = vadd.f32 %v9934_v60, %v3266_v34 }
 0x401   : > { %11351 = vst [vmem:[#allocation52_spill] sm:$0xff] %v9980_v55  ;;  %11354 = vst [vmem:[#allocation55_spill] sm:$0xff] %v9986_v42  ;;  %v3257_v55 = vadd.f32 %v9878_v59, %v9865_v27  ;;  %v3261_v42 = vadd.f32 %v7929_v2, %v9843_v18  ;;  %v3264_v18 = vadd.f32 %v9906_v39, %v9849_v13 }
 0x402   : > { %v9984_v50 = vpop.f32.mrf.mxu0  ;;  %v9992_v53 = vpop.f32.mrf.mxu1 }
 0x403   : > { %11353 = vst [vmem:[#allocation54_spill] sm:$0xff] %v9984_v50  ;;  %v3259_v50 = vadd.f32 %v9883_v28, %v9869_v56  ;;  %v3263_v56 = vadd.f32 %v9896_v43, %v9880_v44  ;;  %v3517_v59 = vadd.f32 %v3410_v62, %v3257_v55  ;;  %v10023_v28 = vrot.slane %v8710_v0, %v4774_v37 }
 0x404   : > { %v9988_v40 = vpop.f32.mrf.mxu0  ;;  %v3521_v47 = vadd.f32 %v9902_v38, %v3261_v42  ;;  %v3719_v44 = vadd.f32 %v9912_v5, %v3516_v23  ;;  %v4778_v43 = vsub.s32 2, %v4769_v29  ;;  %v3524_v38 = vadd.f32 %v9910_v3, %v3264_v18  ;;  %v10047_v23 = vpop.permute.xlu1 %4735  ;;  %v11363_v42 = vld [vmem:[#allocation41_spill] sm:$0xff]  ;;  %v11367_v18 = vld [vmem:[#allocation44_spill] sm:$0xff] }
 0x405   : > { %11355 = vst [vmem:[#allocation56_spill] sm:$0xff] %v9988_v40  ;;  %v3267_v40 = vadd.f32 %v7932_v32, %v9847_v20  ;;  %v10020_v20 = vrot.slane %v8710_v0, %v4770_v36  ;;  %11358 = vst [vmem:[#allocation59_spill] sm:$0xff] %v10023_v28  ;;  %v3519_v13 = vadd.f32 %v9914_v6, %v3259_v50 }
 0x406   : > { %v9994_v35 = vpop.f32.mrf.mxu0  ;;  %v3720_v32 = vadd.f32 %v9916_v7, %v3517_v59  ;;  %v3523_v39 = vadd.f32 %v9926_v12, %v3263_v56  ;;  %v3967_v46 = vadd.f32 %v3859_v24, %v3719_v44  ;;  %v3525_v62 = vadd.f32 %v9930_v9, %v3265_v51  ;;  %v11368_v51 = vld [vmem:[#allocation45_spill] sm:$0xff] }
 0x407   : > { %11356 = vst [vmem:[#allocation57_spill] sm:$0xff] %v9994_v35  ;;  %v10007_v35 = vpop.f32.mrf.mxu1  ;;  %11357 = vst [vmem:[#allocation58_spill] sm:$0xff] %v10020_v20  ;;  %v3527_v49 = vadd.f32 %v9908_v63, %v3267_v40  ;;  %v3724_v63 = vadd.f32 %v9938_v17, %v3521_v47  ;;  %v3721_v5 = vadd.f32 %v9942_v57, %v3518_v8 }
 0x408   : > { %v10009_v27 = vpop.f32.mrf.mxu0  ;;  %v3722_v10 = vadd.f32 %v9920_v1, %v3519_v13  ;;  %v3968_v3 = vadd.f32 %v9954_v33, %v3720_v32  ;;  %v4215_v7 = vadd.f32 %v9960_v4, %v3967_v46  ;;  %v3723_v12 = vadd.f32 %v9924_v11, %v3520_v30  ;;  %v10060_v33 = vpop.permute.xlu0 %4725  ;;  %v11360_v11 = vld [vmem:[#allocation38_spill] sm:$0xff]  ;;  %v11371_v32 = vld [vmem:[#allocation51_spill] sm:$0xff] }
 0x409   : > { %v3730_v54 = vadd.f32 %v9946_v19, %v3527_v49  ;;  %v3725_v9 = vadd.f32 %v9928_v15, %v3522_v41  ;;  %v3727_v60 = vadd.f32 %v9950_v21, %v3524_v38  ;;  %v10055_v37 = vrot.slane %v8710_v0, %v4778_v43  ;;  %v11361_v15 = vld [vmem:[#allocation39_spill] sm:$0xff]  ;;  %v11362_v21 = vld [vmem:[#allocation40_spill] sm:$0xff]  ;;  %v11370_v43 = vld [vmem:[#allocation49_spill] sm:$0xff]  ;;  %v4731_v38 = vpop.permute.xlu1 %4730 }
 0x40a   : > { %v10034_v2 = vpop.f32.mrf.mxu0  ;;  %v3726_v1 = vadd.f32 %v9932_v16, %v3523_v39  ;;  %v3970_v19 = vadd.f32 %v9958_v25, %v3722_v10  ;;  %v4216_v55 = vadd.f32 %v9964_v61, %v3968_v3  ;;  %v3728_v36 = vadd.f32 %v11360_v11, %v3525_v62  ;;  %v11365_v16 = vld [vmem:[#allocation46_spill] sm:$0xff]  ;;  %v11366_v61 = vld [vmem:[#allocation43_spill] sm:$0xff]  ;;  %v11372_v39 = vld [vmem:[#allocation48_spill] sm:$0xff] }
 0x40b   : > { %11359 = vst [vmem:[#allocation60_spill] sm:$0xff] %v10055_v37  ;;  %v3729_v4 = vadd.f32 %v11361_v15, %v3526_v45  ;;  %v3972_v50 = vadd.f32 %v11362_v21, %v3724_v63  ;;  %v3969_v40 = vadd.f32 %v11363_v42, %v3721_v5  ;;  %v3978_v22 = vadd.f32 %v11364_v58, %v3730_v54  ;;  %v11373_v62 = vld [vmem:[#allocation53_spill] sm:$0xff]  ;;  %v11374_v63 = vld [vmem:[#allocation50_spill] sm:$0xff]  ;;  %v11375_v3 = vld [vmem:[#allocation55_spill] sm:$0xff] }
 0x40c   : > { %v10052_v17 = vpop.f32.mrf.mxu0  ;;  %v4218_v26 = vadd.f32 %v11365_v16, %v3970_v19  ;;  %v3975_v56 = vadd.f32 %v11366_v61, %v3727_v60  ;;  %v3971_v59 = vadd.f32 %v11367_v18, %v3723_v12  ;;  %v3973_v34 = vadd.f32 %v11368_v51, %v3725_v9  ;;  %v11376_v60 = vld [vmem:[#allocation52_spill] sm:$0xff] }
 0x40d   : > { %v3976_v8 = vadd.f32 %v11370_v43, %v3728_v36  ;;  %v4220_v45 = vadd.f32 %v11373_v62, %v3972_v50  ;;  %v4226_v19 = vadd.f32 %v9992_v53, %v3978_v22  ;;  %v11381_v61 = vld [vmem:[#allocation56_spill] sm:$0xff] }
 0x40e   : > { %v4219_v46 = vadd.f32 %v11372_v39, %v3971_v59  ;;  %v4221_v5 = vadd.f32 %v11374_v63, %v3973_v34  ;;  %v4223_v58 = vadd.f32 %v10007_v35, %v3975_v56 }
 0x40f   : > { %v4474_v59 = vadd.f32 %v10034_v2, %v4226_v19 }
 0x410   : > { %v4471_v43 = vadd.f32 %v10052_v17, %v4223_v58  ;;  %v10176_v58 = vpop.permute.xlu0 %4869 }
 0x41e   : > { %v4355_v31 = vpop.f32.mrf.mxu1 }
 0x41f   : > { %v4463_v24 = vadd.f32 %v4355_v31, %v4215_v7  ;;  %v11369_v31 = vld [vmem:[#allocation47_spill] sm:$0xff]  ;;  %v4217_v7 = vadd.f32 %v11375_v3, %v3969_v40  ;;  %v11379_v40 = vld [vmem:[#allocation54_spill] sm:$0xff] }
 0x420   : > { %v4357_v52 = vpop.f32.mrf.mxu1  ;;  %v3974_v47 = vadd.f32 %v11369_v31, %v3726_v1 }
 0x421   : > { %v4464_v25 = vadd.f32 %v4357_v52, %v4216_v55  ;;  %v3977_v52 = vadd.f32 %v11371_v32, %v3729_v4  ;;  %v11377_v55 = vld [vmem:[#allocation57_spill] sm:$0xff]  ;;  %v4465_v16 = vadd.f32 %v10009_v27, %v4217_v7 }
 0x422   : > { %v4361_v6 = vpop.f32.mrf.mxu1  ;;  %v4222_v1 = vadd.f32 %v11376_v60, %v3974_v47 }
 0x423   : > { %v4466_v49 = vadd.f32 %v4361_v6, %v4218_v26  ;;  %v4225_v18 = vadd.f32 %v11381_v61, %v3977_v52 }
 0x424   : > { %v4363_v57 = vpop.f32.mrf.mxu1 }
 0x425   : > { %v4467_v11 = vadd.f32 %v4363_v57, %v4219_v46 }
 0x426   : > { %v4367_v29 = vpop.f32.mrf.mxu1  ;;  %v4603_v0 = vpop.f32.mrf.mxu0 }
 0x427   : > { %v4711_v48 = vadd.f32 %v4603_v0, %v4463_v24  ;;  %v4468_v24 = vadd.f32 %v11377_v55, %v4220_v45  ;;  %v4469_v4 = vadd.f32 %v4367_v29, %v4221_v5  ;;  %v4224_v0 = vadd.f32 %v11379_v40, %v3976_v8 }
 0x428   : > { %v4369_v44 = vpop.f32.mrf.mxu1  ;;  %v4605_v13 = vpop.f32.mrf.mxu0 }
 0x429   : > { %v4712_v30 = vadd.f32 %v4605_v13, %v4464_v25  ;;  %v4743_v41 = vadd.f32 %v10060_v33, %v4711_v48  ;;  %v4470_v51 = vadd.f32 %v4369_v44, %v4222_v1 }
 0x42a   : > { %v4373_v10 = vpop.f32.mrf.mxu1  ;;  %v4609_v54 = vpop.f32.mrf.mxu0 }
 0x42b   : > { %v4744_v12 = vadd.f32 %v10060_v33, %v4712_v30  ;;  %v4755_v9 = vmax.f32 %v4743_v41, 0.0  ;;  %v4714_v6 = vadd.f32 %v4609_v54, %v4466_v49  ;;  %v4472_v8 = vadd.f32 %v4373_v10, %v4224_v0 }
 0x42c   : > { %v4375_v36 = vpop.f32.mrf.mxu1  ;;  %v4611_v15 = vpop.f32.mrf.mxu0 }
 0x42d   : > { %v4756_v21 = vmax.f32 %v4744_v12, 0.0  ;;  %v10084_v50 = vmul.f32 %v10020_v20, %v4755_v9  ;;  %v4746_v42 = vadd.f32 %v4731_v38, %v4714_v6  ;;  %v4715_v26 = vadd.f32 %v4611_v15, %v4467_v11 }
 0x42e   : > { %v8013_v53 = vpop.f32.mrf.mxu1  ;;  %v4615_v22 = vpop.f32.mrf.mxu0  ;;  %v4473_v46 = vadd.f32 %v4375_v36, %v4225_v18  ;;  %v10247_v18 = vld [vmem:[%s8691_s13 + $0x20] sm:$0xff] }
 0x42f   : > { %11378 = vst [vmem:[#allocation38_spill] sm:$0xff] %v10084_v50  ;;  %v10090_v57 = vmul.f32 %v10023_v28, %v4756_v21  ;;  %v4758_v25 = vmax.f32 %v4746_v42, 0.0  ;;  %v4716_v48 = vadd.f32 %v8013_v53, %v4468_v24  ;;  %v4717_v29 = vadd.f32 %v4615_v22, %v4469_v4  ;;  %4855 = vrot.lane.b32.xlu0 %v10084_v50, %s8484_s20 }
 0x430   : > { %v4747_v35 = vadd.f32 %v4731_v38, %v4715_v26  ;;  %v4692_v56 = vpop.f32.mrf.mxu1  ;;  %v4617_v27 = vpop.f32.mrf.mxu0  ;;  %8025 = vmatprep.mubr.msk.f32.mxu0 %vm2578_vm7, %v10247_v18 }
 0x431   : > { %11380 = vst [vmem:[#allocation39_spill] sm:$0xff] %v10090_v57  ;;  %v10097_v34 = vmul.f32 %v10020_v20, %v4758_v25  ;;  %v4748_v31 = vadd.f32 %v4731_v38, %v4716_v48  ;;  %v4749_v47 = vadd.f32 %v10047_v23, %v4717_v29  ;;  %v4713_v13 = vadd.f32 %v4692_v56, %v4465_v16  ;;  %v10184_v16 = vpop.permute.xlu0 %4853 }
 0x432   : > { %v4759_v49 = vmax.f32 %v4747_v35, 0.0  ;;  %v4718_v30 = vadd.f32 %v4617_v27, %v4470_v51  ;;  %v8016_v41 = vpop.f32.mrf.mxu1  ;;  %v4621_v32 = vpop.f32.mrf.mxu0 }
 0x433   : > { %11382 = vst [vmem:[#allocation40_spill] sm:$0xff] %v10097_v34  ;;  %v4760_v52 = vmax.f32 %v4748_v31, 0.0  ;;  %v4761_v2 = vmax.f32 %v4749_v47, 0.0  ;;  %v4745_v44 = vadd.f32 %v10060_v33, %v4713_v13  ;;  %v4722_v39 = vadd.f32 %v8016_v41, %v4474_v59  ;;  %5344 = vrot.lane.b32.xlu0 %v10084_v50, %s8487_s8  ;;  %v10257_v51 = vpop.permute.xlu1 %4877 }
 0x434   : > { %v10105_v38 = vmul.f32 %v10023_v28, %v4759_v49  ;;  %v4750_v62 = vadd.f32 %v10047_v23, %v4718_v30  ;;  %v4720_v17 = vadd.f32 %v4621_v32, %v4472_v8  ;;  %v4702_v45 = vpop.f32.mrf.mxu1  ;;  %v4623_v63 = vpop.f32.mrf.mxu0 }
 0x435   : > { %v4788_v5 = vmul.f32 %v10055_v37, %v4760_v52  ;;  %v10110_v10 = vmul.f32 %v10020_v20, %v4761_v2  ;;  %v4757_v54 = vmax.f32 %v4745_v44, 0.0  ;;  %v4754_v33 = vadd.f32 %v10028_v14, %v4722_v39  ;;  %v10192_v26 = vpop.permute.xlu0 %5119 }
 0x436   : > { %11383 = vst [vmem:[#allocation41_spill] sm:$0xff] %v10105_v38  ;;  %v4762_v3 = vmax.f32 %v4750_v62, 0.0  ;;  %v4752_v7 = vadd.f32 %v10028_v14, %v4720_v17  ;;  %v4719_v12 = vadd.f32 %v4702_v45, %v4471_v43  ;;  %v4721_v9 = vadd.f32 %v4623_v63, %v4473_v46 }
 0x437   : > { %11384 = vst [vmem:[#allocation42_spill] sm:$0xff] %v10110_v10  ;;  %4801 = vst.msk [vmem:[#allocation3 + $0x38] sm:$0xff] %vm4797_vm0, %v4788_v5  ;;  %v4785_v6 = vmul.f32 %v10055_v37, %v4757_v54  ;;  %v4766_v60 = vmax.f32 %v4754_v33, 0.0  ;;  %v10267_v56 = vpop.permute.xlu1 %4861 }
 0x438   : > { %v10117_v1 = vmul.f32 %v10023_v28, %v4762_v3  ;;  %v4764_v19 = vmax.f32 %v4752_v7, 0.0  ;;  %v4751_v55 = vadd.f32 %v10047_v23, %v4719_v12  ;;  %v4753_v24 = vadd.f32 %v10028_v14, %v4721_v9 }
 0x439   : > { %4798 = vst.msk [vmem:[#allocation3 + $0x18] sm:$0xff] %vm4797_vm0, %v4785_v6  ;;  %v4794_v11 = vmul.f32 %v10055_v37, %v4766_v60  ;;  %v10200_v53 = vpop.permute.xlu0 %5111 }
 0x43a   : > { %11385 = vst [vmem:[#allocation46_spill] sm:$0xff] %v10117_v1  ;;  %v10124_v36 = vmul.f32 %v10020_v20, %v4764_v19  ;;  %v4763_v15 = vmax.f32 %v4751_v55, 0.0  ;;  %v4765_v4 = vmax.f32 %v4753_v24, 0.0 }
 0x43b   : > { %4807 = vst.msk [vmem:[#allocation3 + $0x78] sm:$0xff] %vm4797_vm0, %v4794_v11  ;;  %v10275_v31 = vpop.permute.xlu1 %5366 }
 0x43c   : > { %11386 = vst [vmem:[#allocation43_spill] sm:$0xff] %v10124_v36  ;;  %v4791_v21 = vmul.f32 %v10055_v37, %v4763_v15  ;;  %v10129_v42 = vmul.f32 %v10023_v28, %v4765_v4 }
 0x43d   : > { %v10208_v22 = vpop.permute.xlu0 %5103 }
 0x43e   : > { %11387 = vst [vmem:[#allocation44_spill] sm:$0xff] %v10129_v42  ;;  %4804 = vst.msk [vmem:[#allocation3 + $0x58] sm:$0xff] %vm4797_vm0, %v4791_v21  ;;  %v10132_v23 = vld [vmem:[#allocation3 + $0x38] sm:$0xff] }
 0x43f   : > { %11388 = vst [vmem:[#allocation45_spill] sm:$0xff] %v10132_v23  ;;  %4867 = vrot.lane.b32.xlu1 %v10132_v23, %s8484_s20  ;;  %v10285_v13 = vpop.permute.xlu1 %5350 }
 0x440   : > { %v10136_v14 = vld [vmem:[#allocation3 + $0x18] sm:$0xff] }
 0x441   : > { %11389 = vst [vmem:[#allocation47_spill] sm:$0xff] %v10136_v14  ;;  %4859 = vrot.lane.b32.xlu0 %v10136_v14, %s8484_s20  ;;  %v10216_v25 = vpop.permute.xlu0 %5095 }
 0x442   : > { %v10154_v40 = vld [vmem:[#allocation3 + $0x78] sm:$0xff] }
 0x443   : > { %5109 = vrot.lane.b32.xlu1 %v10132_v23, %s8486_s26  ;;  %11390 = vst [vmem:[#allocation49_spill] sm:$0xff] %v10154_v40 }
 0x445   : > { %5099 = vrot.lane.b32.xlu0 %v10090_v57, %s8486_s26  ;;  %v10164_v0 = vld [vmem:[#allocation3 + $0x58] sm:$0xff]  ;;  %v10224_v48 = vpop.permute.xlu0 %5358 }
 0x446   : > { %11391 = vst [vmem:[#allocation51_spill] sm:$0xff] %v10164_v0 }
 0x447   : > { %5097 = vrot.lane.b32.xlu1 %v10084_v50, %s8486_s26 }
 0x449   : > { %5348 = vrot.lane.b32.xlu0 %v10136_v14, %s8487_s8  ;;  %v10232_v29 = vpop.permute.xlu0 %5342 }
 0x44b   : > { %5356 = vrot.lane.b32.xlu1 %v10132_v23, %s8487_s8 }
 0x44d   : > { %5605 = vrot.lane.b32.xlu0 %v10090_v57, %s8488_s18  ;;  %v10240_v61 = vpop.permute.xlu0 %5625 }
 0x44f   : > { %5615 = vrot.lane.b32.xlu1 %v10132_v23, %s8488_s18 }
 0x451   : > { %6085 = vrot.lane.b32.xlu0 %v10154_v40, %s8489_s27  ;;  %v10251_v59 = vpop.permute.xlu0 %5617 }
 0x453   : > { %5603 = vrot.lane.b32.xlu1 %v10084_v50, %s8488_s18 }
 0x455   : > { %4865 = vrot.lane.b32.xlu0 %v10105_v38, %s8484_s20  ;;  %v10263_v35 = vpop.permute.xlu0 %5609 }
 0x457   : > { %4857 = vrot.lane.b32.xlu1 %v10090_v57, %s8484_s20 }
 0x459   : > { %4875 = vrot.lane.b32.xlu0 %v10164_v0, %s8484_s20  ;;  %v5602_v27 = vpop.permute.xlu0 %5601 }
 0x45b   : > { %5101 = vrot.lane.b32.xlu1 %v10136_v14, %s8486_s26 }
 0x45d   : > { %5107 = vrot.lane.b32.xlu0 %v10105_v38, %s8486_s26 }
 0x45f   : > { %5346 = vrot.lane.b32.xlu1 %v10090_v57, %s8487_s8 }
 0x461   : > { %5354 = vrot.lane.b32.xlu0 %v10105_v38, %s8487_s8 }
 0x463   : > { %5607 = vrot.lane.b32.xlu1 %v10136_v14, %s8488_s18 }
 0x465   : > { %5364 = vrot.lane.b32.xlu0 %v10164_v0, %s8487_s8 }
 0x467   : > { %4863 = vrot.lane.b32.xlu1 %v10097_v34, %s8484_s20 }
 0x469   : > { %5613 = vrot.lane.b32.xlu0 %v10105_v38, %s8488_s18 }
 0x46b   : > { %4883 = vrot.lane.b32.xlu1 %v10154_v40, %s8484_s20 }
 0x46d   : > { %4871 = vrot.lane.b32.xlu0 %v10110_v10, %s8484_s20 }
 0x46f   : > { %5125 = vrot.lane.b32.xlu1 %v10154_v40, %s8486_s26 }
 0x471   : > { %5360 = vrot.lane.b32.xlu0 %v10110_v10, %s8487_s8 }
 0x473   : > { %5105 = vrot.lane.b32.xlu1 %v10097_v34, %s8486_s26 }
 0x475   : > { %5115 = vrot.lane.b32.xlu0 %v10117_v1, %s8486_s26 }
 0x477   : > { %5352 = vrot.lane.b32.xlu1 %v10097_v34, %s8487_s8 }
 0x479   : > { %5621 = vrot.lane.b32.xlu0 %v10117_v1, %s8488_s18 }
 0x47b   : > { %5372 = vrot.lane.b32.xlu1 %v10154_v40, %s8487_s8 }
 0x47d   : > { %4881 = vrot.lane.b32.xlu0 %v10129_v42, %s8484_s20 }
 0x47f   : > { %5631 = vrot.lane.b32.xlu1 %v10154_v40, %s8488_s18 }
 0x481   : > { %6077 = vrot.lane.b32.xlu0 %v10117_v1, %s8489_s27 }
 0x483   : > { %5611 = vrot.lane.b32.xlu1 %v10097_v34, %s8488_s18 }
 0x485   : > { %6075 = vrot.lane.b32.xlu0 %v10110_v10, %s8489_s27 }
 0x487   : > { %5117 = vrot.lane.b32.xlu1 %v10164_v0, %s8486_s26 }
 0x489   : > { %6073 = vrot.lane.b32.xlu0 %v10132_v23, %s8489_s27 }
 0x48b   : > { %5623 = vrot.lane.b32.xlu1 %v10164_v0, %s8488_s18 }
 0x48d   : > { %5123 = vrot.lane.b32.xlu0 %v10129_v42, %s8486_s26 }
 0x48f   : > { %5113 = vrot.lane.b32.xlu1 %v10110_v10, %s8486_s26 }
 0x491   : > { %6065 = vrot.lane.b32.xlu0 %v10090_v57, %s8489_s27 }
 0x493   : > { %5619 = vrot.lane.b32.xlu1 %v10110_v10, %s8488_s18 }
 0x495   : > { %5370 = vrot.lane.b32.xlu0 %v10129_v42, %s8487_s8 }
 0x497   : > { %4873 = vrot.lane.b32.xlu1 %v10117_v1, %s8484_s20 }
 0x499   : > { %6063 = vrot.lane.b32.xlu0 %v10084_v50, %s8489_s27 }
 0x49b   : > { %5362 = vrot.lane.b32.xlu1 %v10117_v1, %s8487_s8 }
 0x49d   : > { %6332 = vrot.lane.b32.xlu0 %v10154_v40, %s8490_s23 }
 0x49f   : > { %4879 = vrot.lane.b32.xlu1 %v10124_v36, %s8484_s20 }
 0x4a1   : > { %6324 = vrot.lane.b32.xlu0 %v10117_v1, %s8490_s23  ;;  %v10281_v47 = vpop.permute.xlu0 %4855 }
 0x4a3   : > { %5121 = vrot.lane.b32.xlu1 %v10124_v36, %s8486_s26 }
 0x4a5   : > { %5629 = vrot.lane.b32.xlu0 %v10129_v42, %s8488_s18  ;;  %v10289_v43 = vpop.permute.xlu0 %5344 }
 0x4a7   : > { %5368 = vrot.lane.b32.xlu1 %v10124_v36, %s8487_s8 }
 0x4a9   : > { %6322 = vrot.lane.b32.xlu0 %v10110_v10, %s8490_s23 }
 0x4ab   : > { %5627 = vrot.lane.b32.xlu1 %v10124_v36, %s8488_s18 }
 0x4ad   : > { %6320 = vrot.lane.b32.xlu0 %v10132_v23, %s8490_s23 }
 0x4af   : > { %6081 = vrot.lane.b32.xlu1 %v10124_v36, %s8489_s27 }
 0x4b1   : > { %v10293_v8 = vpop.permute.xlu1 %4867  ;;  %6312 = vrot.lane.b32.xlu0 %v10090_v57, %s8490_s23 }
 0x4b3   : > { %6079 = vrot.lane.b32.xlu1 %v10164_v0, %s8489_s27  ;;  %v4860_v49 = vpop.permute.xlu0 %4859 }
 0x4b5   : > { %v10299_v30 = vpop.permute.xlu1 %5109  ;;  %6310 = vrot.lane.b32.xlu0 %v10084_v50, %s8490_s23 }
 0x4b7   : > { %6071 = vrot.lane.b32.xlu1 %v10105_v38, %s8489_s27  ;;  %v10305_v41 = vpop.permute.xlu0 %5099 }
 0x4b9   : > { %v10307_v32 = vpop.permute.xlu1 %5097  ;;  %6579 = vrot.lane.b32.xlu0 %v10154_v40, %s8491_s17 }
 0x4bb   : > { %6069 = vrot.lane.b32.xlu1 %v10097_v34, %s8489_s27  ;;  %v5349_v52 = vpop.permute.xlu0 %5348 }
 0x4bd   : > { %v10313_v2 = vpop.permute.xlu1 %5356  ;;  %6571 = vrot.lane.b32.xlu0 %v10117_v1, %s8491_s17 }
 0x4bf   : > { %6067 = vrot.lane.b32.xlu1 %v10136_v14, %s8489_s27  ;;  %v5606_v44 = vpop.permute.xlu0 %5605 }
 0x4c1   : > { %v10319_v39 = vpop.permute.xlu1 %5615  ;;  %6569 = vrot.lane.b32.xlu0 %v10110_v10, %s8491_s17 }
 0x4c2   : > { %11392 = vst [vmem:[#allocation48_spill] sm:$0xff] %v10319_v39 }
 0x4c3   : > { %6328 = vrot.lane.b32.xlu1 %v10124_v36, %s8490_s23  ;;  %v10325_v46 = vpop.permute.xlu0 %6085 }
 0x4c4   : > { %11393 = vst [vmem:[#allocation53_spill] sm:$0xff] %v10325_v46 }
 0x4c5   : > { %v5604_v62 = vpop.permute.xlu1 %5603  ;;  %6567 = vrot.lane.b32.xlu0 %v10132_v23, %s8491_s17 }
 0x4c6   : > { %v10330_v17 = vsel %vm3305_vm11, %v5602_v27, %v5604_v62  ;;  %v10333_v45 = vsel %vm3305_vm11, %v5604_v62, %v5606_v44 }
 0x4c7   : > { %6326 = vrot.lane.b32.xlu1 %v10164_v0, %s8490_s23  ;;  %v10337_v63 = vpop.permute.xlu0 %4865 }
 0x4c9   : > { %v4858_v5 = vpop.permute.xlu1 %4857  ;;  %6559 = vrot.lane.b32.xlu0 %v10090_v57, %s8491_s17 }
 0x4ca   : > { %v10342_v54 = vsel %vm2553_vm8, %v4858_v5, %v4860_v49  ;;  %v10346_v33 = vsel %vm2553_vm8, %v10281_v47, %v4858_v5  ;;  %v4809_v5 = vld [vmem:[%s8720_s16 + $0x8] sm:$0xff] }
 0x4cb   : > { %6318 = vrot.lane.b32.xlu1 %v10105_v38, %s8490_s23  ;;  %v10350_v3 = vpop.permute.xlu0 %4875 }
 0x4cd   : > { %v5102_v7 = vpop.permute.xlu1 %5101  ;;  %6557 = vrot.lane.b32.xlu0 %v10084_v50, %s8491_s17 }
 0x4ce   : > { %v10356_v12 = vsel %vm2797_vm9, %v10305_v41, %v5102_v7 }
 0x4cf   : > { %6316 = vrot.lane.b32.xlu1 %v10097_v34, %s8490_s23  ;;  %v10360_v9 = vpop.permute.xlu0 %5107 }
 0x4d1   : > { %v5347_v6 = vpop.permute.xlu1 %5346  ;;  %6826 = vrot.lane.b32.xlu0 %v10154_v40, %s8492_s19 }
 0x4d2   : > { %v10365_v60 = vsel %vm3045_vm10, %v5347_v6, %v5349_v52  ;;  %v10369_v19 = vsel %vm3045_vm10, %v10289_v43, %v5347_v6 }
 0x4d3   : > { %6314 = vrot.lane.b32.xlu1 %v10136_v14, %s8490_s23  ;;  %v10373_v55 = vpop.permute.xlu0 %5354 }
 0x4d5   : > { %v5608_v24 = vpop.permute.xlu1 %5607  ;;  %6818 = vrot.lane.b32.xlu0 %v10117_v1, %s8492_s19 }
 0x4d6   : > { %v10378_v11 = vsel %vm3305_vm11, %v5606_v44, %v5608_v24  ;;  %v4811_v24 = vld [vmem:[%s8720_s16 + $0x18] sm:$0xff] }
 0x4d7   : > { %11394 = vst [vmem:[#allocation50_spill] sm:$0xff] %v10378_v11  ;;  %6575 = vrot.lane.b32.xlu1 %v10124_v36, %s8491_s17  ;;  %v10382_v15 = vpop.permute.xlu0 %5364 }
 0x4d9   : > { %v10384_v4 = vpop.permute.xlu1 %4863  ;;  %6816 = vrot.lane.b32.xlu0 %v10110_v10, %s8492_s19 }
 0x4db   : > { %6573 = vrot.lane.b32.xlu1 %v10164_v0, %s8491_s17  ;;  %v10390_v21 = vpop.permute.xlu0 %5613 }
 0x4dc   : > { %11395 = vst [vmem:[#allocation55_spill] sm:$0xff] %v10390_v21 }
 0x4dd   : > { %v4884_v27 = vpop.permute.xlu1 %4883  ;;  %6814 = vrot.lane.b32.xlu0 %v10132_v23, %s8492_s19 }
 0x4df   : > { %6565 = vrot.lane.b32.xlu1 %v10105_v38, %s8491_s17  ;;  %v10396_v49 = vpop.permute.xlu0 %4871 }
 0x4e1   : > { %v10398_v52 = vpop.permute.xlu1 %5125  ;;  %6806 = vrot.lane.b32.xlu0 %v10090_v57, %s8492_s19 }
 0x4e3   : > { %6083 = vrot.lane.b32.xlu1 %v10129_v42, %s8489_s27  ;;  %v10404_v44 = vpop.permute.xlu0 %5360 }
 0x4e5   : > { %v10406_v62 = vpop.permute.xlu1 %5105  ;;  %6804 = vrot.lane.b32.xlu0 %v10084_v50, %s8492_s19 }
 0x4e7   : > { %6563 = vrot.lane.b32.xlu1 %v10097_v34, %s8491_s17  ;;  %v10413_v7 = vpop.permute.xlu0 %5115 }
 0x4e9   : > { %v10415_v6 = vpop.permute.xlu1 %5352  ;;  %7053 = vperm.xlu0 %8286, %v4809_v5  }
 0x4ea   : > { %v10421_v37 = vsel %vm3045_vm10, %v10415_v6, %v10373_v55 }
 0x4eb   : > { %6330 = vrot.lane.b32.xlu1 %v10129_v42, %s8490_s23  ;;  %v10425_v28 = vpop.permute.xlu0 %5621 }
 0x4ed   : > { %v10427_v20 = vpop.permute.xlu1 %5372  ;;  %7063 = vperm.xlu0 %8286, %v4811_v24  }
 0x4ef   : > { %6561 = vrot.lane.b32.xlu1 %v10136_v14, %s8491_s17  ;;  %v4882_v46 = vpop.permute.xlu0 %4881 }
 0x4f0   : > { %v4896_v5 = vsel %vm2553_vm8, %v4882_v46, %v4884_v27 }
 0x4f1   : > { %v10432_v50 = vpop.permute.xlu1 %5631  ;;  %8017 = vmatprep.subr.mxu0 %v4896_v5 }
 0x4f2   : > { %8018 = vmatpush3.msra.mxu0 %v4896_v5 }
 0x4f3   : > { %6822 = vrot.lane.b32.xlu1 %v10124_v36, %s8492_s19  ;;  %v10436_v57 = vpop.permute.xlu0 %6077 }
 0x4f4   : > { %11396 = vst [vmem:[#allocation52_spill] sm:$0xff] %v10436_v57 }
 0x4f5   : > { %v10438_v10 = vpop.permute.xlu1 %5611 }
 0x4f6   : > { %v10443_v24 = vsel %vm3305_vm11, %v10438_v10, %v10390_v21  ;;  %v4808_v21 = vld [vmem:[%s8720_s16] sm:$0xff] }
 0x4f7   : > { %6820 = vrot.lane.b32.xlu1 %v10164_v0, %s8492_s19  ;;  %v6076_v27 = vpop.permute.xlu0 %6075 }
 0x4f8   : > { %v10449_v1 = vsel %vm3760_vm12, %v6076_v27, %v10436_v57 }
 0x4f9   : > { %11397 = vst [vmem:[#allocation57_spill] sm:$0xff] %v10449_v1  ;;  %v10451_v5 = vpop.permute.xlu1 %5117 }
 0x4fb   : > { %6577 = vrot.lane.b32.xlu1 %v10129_v42, %s8491_s17  ;;  %v10455_v36 = vpop.permute.xlu0 %6073 }
 0x4fc   : > { %11398 = vst [vmem:[#allocation54_spill] sm:$0xff] %v10455_v36 }
 0x4fd   : > { %v10457_v23 = vpop.permute.xlu1 %5623 }
 0x4ff   : > { %6812 = vrot.lane.b32.xlu1 %v10105_v38, %s8492_s19  ;;  %v10461_v11 = vpop.permute.xlu0 %5123 }
 0x501   : > { %v5114_v0 = vpop.permute.xlu1 %5113 }
 0x503   : > { %6824 = vrot.lane.b32.xlu1 %v10129_v42, %s8492_s19  ;;  %v10465_v27 = vpop.permute.xlu0 %6065 }
 0x504   : > { %11399 = vst [vmem:[#allocation56_spill] sm:$0xff] %v10465_v27 }
 0x505   : > { %v10467_v1 = vpop.permute.xlu1 %5619 }
 0x507   : > { %6810 = vrot.lane.b32.xlu1 %v10097_v34, %s8492_s19  ;;  %v10471_v57 = vpop.permute.xlu0 %5370  ;;  %v4890_v34 = vsel %vm2553_vm8, %v10337_v63, %v10293_v8 }
 0x509   : > { %v4874_v36 = vpop.permute.xlu1 %4873 }
 0x50a   : > { %v4893_v38 = vsel %vm2553_vm8, %v4874_v36, %v10350_v3  ;;  %v7521_v3 = vld [vmem:[%s8691_s13 + $0x28] sm:$0xff] }
 0x50b   : > { %6808 = vrot.lane.b32.xlu1 %v10136_v14, %s8492_s19  ;;  %8019 = vmatprep.subr.mxu0 %v4893_v38  ;;  %v6064_v42 = vpop.permute.xlu0 %6063  ;;  %v10490_v14 = vld [vmem:[%s8691_s13 + $0x30] sm:$0xff] }
 0x50c   : > { %v10479_v40 = vsel %vm3760_vm12, %v6064_v42, %v10465_v27  ;;  %8020 = vmatpush3.msra.mxu0 %v4893_v38  ;;  %v4810_v42 = vld [vmem:[%s8720_s16 + $0x10] sm:$0xff] }
 0x50d   : > { %11400 = vst [vmem:[#allocation61_spill] sm:$0xff] %v10479_v40  ;;  %v10485_v39 = vpop.permute.xlu1 %5362  ;;  %8021 = vmatprep.subr.mxu0 %v4890_v34 }
 0x50e   : > { %8022 = vmatpush3.msra.mxu0 %v4890_v34  ;;  %v10501_v34 = vld [vmem:[%s8691_s13 + $0x38] sm:$0xff] }
 0x50f   : > { %7048 = vperm.xlu1 %8287, %v4808_v21   ;;  %8023 = vmatprep.subr.mxu0 %v10342_v54  ;;  %v4891_v21 = vsel %vm2553_vm8, %v10176_v58, %v10396_v49  ;;  %v4888_v58 = vsel %vm2553_vm8, %v10267_v56, %v10384_v4  ;;  %v5131_v56 = vsel %vm2797_vm9, %v10406_v62, %v10360_v9 }
 0x510   : > { %8024 = vmatpush3.msra.mxu0 %v10342_v54  ;;  %v4892_v54 = vsel %vm2553_vm8, %v10396_v49, %v4874_v36  ;;  %v5133_v49 = vsel %vm2797_vm9, %v10200_v53, %v5114_v0  ;;  %v5128_v53 = vsel %vm2797_vm9, %v10307_v32, %v10305_v41  ;;  %v5132_v41 = vsel %vm2797_vm9, %v10360_v9, %v10299_v30 }
 0x511   : > { %v4880_v38 = vpop.permute.xlu1 %4879  ;;  %8026 = vmatmul.mubr.msk.f32.vlgmr.msra.gmra.mxu0 %vm2578_vm7, %v7521_v3 }
 0x512   : > { %v4894_v8 = vsel %vm2553_vm8, %v10257_v51, %v4880_v38  ;;  %v4895_v40 = vsel %vm2553_vm8, %v4880_v38, %v4882_v46  ;;  %8028 = vmatprep.mubr.msk.f32.mxu0 %vm2578_vm7, %v10490_v14  ;;  %v11401_v46 = vmov 0.0   ;;  %v7541_v38 = vld [vmem:[%s8691_s13 + $0x48] sm:$0xff] }
 0x513   : > { %7058 = vperm.xlu1 %8287, %v4810_v42   ;;  %4945 = vmatprep.subr.mxu1 %v4895_v40  ;;  %v4889_v40 = vsel %vm2553_vm8, %v10384_v4, %v10337_v63  ;;  %v4885_v63 = vsel %vm2553_vm8, %v10184_v16, %v10281_v47  ;;  %v5130_v16 = vsel %vm2797_vm9, %v10208_v22, %v10406_v62 }
 0x514   : > { %4946 = vmatpush1.msra.mxu1 %v4894_v8  ;;  %v5135_v22 = vsel %vm2797_vm9, %v10413_v7, %v10451_v5  ;;  %v5385_v4 = vsel %vm3045_vm10, %v10471_v57, %v10427_v20  ;;  %v5381_v5 = vsel %vm3045_vm10, %v10404_v44, %v10485_v39 }
 0x515   : > { %v5122_v27 = vpop.permute.xlu1 %5121  ;;  %4947 = vmatprep.subr.mxu1 %v4892_v54  ;;  %8029 = vmatmul.mubr.msk.f32.gmra.mxu0 %vm2578_vm7, %v10501_v34 }
 0x516   : > { %v5136_v51 = vsel %vm2797_vm9, %v10192_v26, %v5122_v27  ;;  %4948 = vmatpush1.msra.mxu1 %v4891_v21  ;;  %v5137_v36 = vsel %vm2797_vm9, %v5122_v27, %v10461_v11  ;;  %5227 = vmatprep.mubr.f32.mxu0 %v11401_v46  ;;  %v5134_v26 = vsel %vm2797_vm9, %v5114_v0, %v10413_v7  ;;  %v10528_v27 = vpop.permute.xlu0 %6332  ;;  %v7540_v7 = vld [vmem:[%s8691_s13 + $0x40] sm:$0xff] }
 0x517   : > { %4949 = vmatprep.subr.mxu1 %v4889_v40  ;;  %5187 = vmatprep.subr.mxu0 %v5137_v36  ;;  %v5138_v0 = vsel %vm2797_vm9, %v10461_v11, %v10398_v52  ;;  %v4813_v52 = vld [vmem:[%s8691_s13 + $0x8] sm:$0xff]  ;;  %v11407_v36 = vld [vmem:[#allocation44_spill] sm:$0xff] }
 0x518   : > { %4950 = vmatpush1.msra.mxu1 %v4888_v58  ;;  %5188 = vmatpush1.msra.mxu0 %v5136_v51  ;;  %v7553_v51 = vld [vmem:[%s8691_s13 + $0x68] sm:$0xff]  ;;  %v11408_v58 = vld [vmem:[#allocation45_spill] sm:$0xff] }
 0x519   : > { %v10530_v42 = vpop.permute.xlu1 %5368  ;;  %4951 = vmatprep.subr.mxu1 %v10346_v33  ;;  %5189 = vmatprep.subr.mxu0 %v5134_v26  ;;  %v5127_v33 = vsel %vm2797_vm9, %v10216_v25, %v10307_v32  ;;  %v5382_v32 = vsel %vm3045_vm10, %v10485_v39, %v10382_v15  ;;  %v5379_v15 = vsel %vm3045_vm10, %v10373_v55, %v10313_v2  ;;  %v4815_v55 = vld [vmem:[%s8691_s13 + $0x18] sm:$0xff] }
 0x51a   : > { %4952 = vmatpush1.msra.mxu1 %v4885_v63  ;;  %5190 = vmatpush1.msra.mxu0 %v5133_v49  ;;  %v10557_v11 = vpop.permute.xlu0 %6324  ;;  %v5384_v9 = vsel %vm3045_vm10, %v10530_v42, %v10471_v57  ;;  %v5377_v39 = vsel %vm3045_vm10, %v10285_v13, %v10415_v6  ;;  %v7542_v13 = vld [vmem:[%s8691_s13 + $0x50] sm:$0xff]  ;;  %v5639_v6 = vsel %vm3305_vm11, %v10251_v59, %v10467_v1  ;;  %v11409_v49 = vld [vmem:[#allocation47_spill] sm:$0xff] }
 0x51b   : > { %7524 = vmatmul.mubr.msk.f32.vlgmr.msra.gmra.mxu1 %vm2578_vm7, %v10247_v18  ;;  %5191 = vmatprep.subr.mxu0 %v5131_v56  ;;  %v4812_v18 = vld [vmem:[%s8691_s13] sm:$0xff]  ;;  %v5641_v59 = vsel %vm3305_vm11, %v10425_v28, %v10457_v23  ;;  %v11404_v23 = vld [vmem:[#allocation49_spill] sm:$0xff]  ;;  %v7554_v63 = vld [vmem:[%s8691_s13 + $0x70] sm:$0xff] }
 0x51c   : > { %8031 = vmatprep.subr.mxu1 %v5138_v0  ;;  %5192 = vmatpush1.msra.mxu0 %v5130_v16  ;;  %v7555_v16 = vld [vmem:[%s8691_s13 + $0x78] sm:$0xff] }
 0x51d   : > { %8032 = vmatpush3.msra.mxu1 %v5138_v0  ;;  %v10547_v47 = vpop.permute.xlu1 %5627  ;;  %5193 = vmatprep.subr.mxu0 %v5128_v53  ;;  %v7564_v0 = vld [vmem:[%s8691_s13 + $0x80] sm:$0xff]  ;;  %v11410_v53 = vld [vmem:[#allocation43_spill] sm:$0xff] }
 0x51e   : > { %8033 = vmatprep.subr.mxu1 %v5135_v22  ;;  %4991 = vmatprep.mubr.f32.mxu1 %v11401_v46  ;;  %v5630_v20 = vpop.permute.xlu0 %5629 }
 0x51f   : > { %5194 = vmatpush1.msra.mxu0 %v5127_v33  ;;  %8034 = vmatpush3.msra.mxu1 %v5135_v22  ;;  %v5643_v57 = vsel %vm3305_vm11, %v10547_v47, %v5630_v20  ;;  %v11411_v22 = vld [vmem:[#allocation46_spill] sm:$0xff] }
 0x520   : > { %7525 = vmatmul.mubr.msk.f32.gmra.mxu1 %vm2578_vm7, %v7521_v3  ;;  %7532 = vmatmul.mubr.msk.f32.vlgmr.msra.gmra.mxu0 %vm2578_vm7, %v4812_v18  ;;  %v5380_v3 = vsel %vm3045_vm10, %v10224_v48, %v10404_v44  ;;  %v5642_v48 = vsel %vm3305_vm11, %v10240_v61, %v10547_v47  ;;  %v5374_v44 = vsel %vm3045_vm10, %v10232_v29, %v10289_v43  ;;  %v7543_v29 = vld [vmem:[%s8691_s13 + $0x58] sm:$0xff] }
 0x521   : > { %8035 = vmatprep.subr.mxu1 %v5132_v41  ;;  %8045 = vmatprep.subr.mxu0 %v5385_v4  ;;  %v10567_v25 = vpop.permute.xlu1 %6081 }
 0x522   : > { %8036 = vmatpush3.msra.mxu1 %v5132_v41  ;;  %8046 = vmatpush3.msra.mxu0 %v5385_v4  ;;  %v10599_v2 = vpop.permute.xlu0 %6322  ;;  %v11412_v41 = vld [vmem:[#allocation42_spill] sm:$0xff]  ;;  %v11413_v4 = vld [vmem:[#allocation41_spill] sm:$0xff] }
 0x523   : > { %8037 = vmatprep.subr.mxu1 %v10356_v12  ;;  %8047 = vmatprep.subr.mxu0 %v5382_v32 }
 0x524   : > { %4997 = vmatprep.mubr.f32.mxu1 %v11401_v46  ;;  %5233 = vmatprep.mubr.f32.mxu0 %v11401_v46 }
 0x525   : > { %8038 = vmatpush3.msra.mxu1 %v10356_v12  ;;  %8048 = vmatpush3.msra.mxu0 %v5382_v32  ;;  %v10577_v30 = vpop.permute.xlu1 %6079  ;;  %v4814_v12 = vld [vmem:[%s8691_s13 + $0x10] sm:$0xff] }
 0x526   : > { %7526 = vmatmul.mubr.msk.f32.gmra.mxu1 %vm2578_vm7, %v10490_v14  ;;  %7533 = vmatmul.mubr.msk.f32.gmra.mxu0 %vm2578_vm7, %v4813_v52  ;;  %v7566_v32 = vld [vmem:[%s8691_s13 + $0x90] sm:$0xff] }
 0x527   : > { %5434 = vmatprep.subr.mxu1 %v5384_v9  ;;  %8049 = vmatprep.subr.mxu0 %v5379_v15  ;;  %v11415_v9 = vld [vmem:[#allocation39_spill] sm:$0xff] }
 0x528   : > { %8050 = vmatpush3.msra.mxu0 %v5379_v15  ;;  %5003 = vmatprep.mubr.f32.mxu1 %v11401_v46  ;;  %v7567_v15 = vld [vmem:[%s8691_s13 + $0x98] sm:$0xff] }
 0x529   : > { %8051 = vmatprep.subr.mxu0 %v10365_v60  ;;  %5239 = vmatprep.mubr.f32.mxu0 %v11401_v46  ;;  %v10592_v14 = vpop.permute.xlu1 %6071 }
 0x52a   : > { %8052 = vmatpush3.msra.mxu0 %v10365_v60  ;;  %7527 = vmatmul.mubr.msk.f32.gmra.mxu1 %vm2578_vm7, %v10501_v34  ;;  %v5383_v60 = vsel %vm3045_vm10, %v10275_v31, %v10530_v42  ;;  %v10621_v31 = vpop.permute.xlu0 %6320 }
 0x52b   : > { %7534 = vmatmul.mubr.msk.f32.gmra.mxu0 %vm2578_vm7, %v4814_v12  ;;  %5693 = vmatprep.subr.mxu0 %v5643_v57  ;;  %v11417_v57 = vld [vmem:[#allocation53_spill] sm:$0xff] }
 0x52c   : > { %5245 = vmatprep.mubr.f32.mxu0 %v11401_v46  ;;  %8039 = vmatprep.mubr.msk.f32.mxu1 %vm2578_vm7, %v4812_v18  ;;  %v7565_v18 = vld [vmem:[%s8691_s13 + $0x88] sm:$0xff] }
 0x52d   : > { %v10605_v62 = vpop.permute.xlu1 %6069 }
 0x52e   : > { %8040 = vmatmul.mubr.msk.f32.vlgmr.msra.gmra.mxu1 %vm2578_vm7, %v4813_v52  ;;  %v10650_v43 = vpop.permute.xlu0 %6312  ;;  %v11414_v52 = vld [vmem:[#allocation40_spill] sm:$0xff] }
 0x52f   : > { %7535 = vmatmul.mubr.msk.f32.gmra.mxu0 %vm2578_vm7, %v4815_v55  ;;  %5435 = vmatpush1.msra.mxu1 %v5383_v60 }
 0x530   : > { %5436 = vmatprep.subr.mxu1 %v5381_v5  ;;  %8042 = vmatprep.mubr.msk.f32.mxu1 %vm2578_vm7, %v4814_v12  ;;  %v11416_v12 = vld [vmem:[#allocation38_spill] sm:$0xff] }
 0x531   : > { %5437 = vmatpush1.msra.mxu1 %v5380_v3  ;;  %8053 = vmatprep.mubr.msk.f32.mxu0 %vm2578_vm7, %v7540_v7  ;;  %v10624_v8 = vpop.permute.xlu1 %6067  ;;  %v11418_v3 = vld [vmem:[#allocation54_spill] sm:$0xff] }
 0x532   : > { %5438 = vmatprep.subr.mxu1 %v10421_v37  ;;  %8043 = vmatmul.mubr.msk.f32.gmra.mxu1 %vm2578_vm7, %v4815_v55  ;;  %v5640_v37 = vsel %vm3305_vm11, %v10467_v1, %v10425_v28  ;;  %v5636_v1 = vsel %vm3305_vm11, %v10263_v35, %v10438_v10  ;;  %v11403_v10 = vld [vmem:[#allocation55_spill] sm:$0xff]  ;;  %v10673_v54 = vpop.permute.xlu0 %6310 }
 0x533   : > { %5439 = vmatpush1.msra.mxu1 %v5377_v39  ;;  %8054 = vmatmul.mubr.msk.f32.vlgmr.msra.gmra.mxu0 %vm2578_vm7, %v7541_v38  ;;  %v11419_v39 = vld [vmem:[#allocation52_spill] sm:$0xff] }
 0x534   : > { %5694 = vmatpush1.msra.mxu0 %v5642_v48  ;;  %5440 = vmatprep.subr.mxu1 %v10369_v19  ;;  %v5644_v19 = vsel %vm3305_vm11, %v5630_v20, %v10432_v50  ;;  %v11402_v50 = vld [vmem:[#allocation48_spill] sm:$0xff]  ;;  %v6092_v48 = vsel %vm3760_vm12, %v11419_v39, %v10577_v30 }
 0x535   : > { %5695 = vmatprep.subr.mxu0 %v5640_v37  ;;  %5441 = vmatpush1.msra.mxu1 %v5374_v44  ;;  %v10646_v61 = vpop.permute.xlu1 %6328  ;;  %v5638_v35 = vsel %vm3305_vm11, %v11403_v10, %v11402_v50  ;;  %v11420_v44 = vld [vmem:[#allocation57_spill] sm:$0xff]  ;;  %v6090_v37 = vsel %vm3760_vm12, %v10592_v14, %v11418_v3  ;;  %v7578_v10 = vld [vmem:[%s8691_s13 + $0xb0] sm:$0xff] }
 0x536   : > { %5696 = vmatpush1.msra.mxu0 %v5639_v6  ;;  %5474 = vmatprep.mubr.f32.mxu1 %v11401_v46  ;;  %v10690_v40 = vpop.permute.xlu0 %6579  ;;  %v7576_v6 = vld [vmem:[%s8691_s13 + $0xa0] sm:$0xff]  ;;  %v7614_v39 = vld [vmem:[%s8691_s13 + $0x110] sm:$0xff] }
 0x537   : > { %8056 = vmatprep.mubr.msk.f32.mxu0 %vm2578_vm7, %v7542_v13  ;;  %5697 = vmatprep.subr.mxu0 %v10443_v24  ;;  %v7552_v24 = vld [vmem:[%s8691_s13 + $0x60] sm:$0xff] }
 0x538   : > { %8059 = vmatprep.subr.mxu1 %v5644_v19  ;;  %7544 = vmatmul.mubr.msk.f32.vlgmr.msra.gmra.mxu1 %vm2578_vm7, %v7540_v7 }
 0x539   : > { %8057 = vmatmul.mubr.msk.f32.gmra.mxu0 %vm2578_vm7, %v7543_v29  ;;  %8060 = vmatpush3.msra.mxu1 %v5644_v19  ;;  %v10664_v34 = vpop.permute.xlu1 %6326 }
 0x53a   : > { %5698 = vmatpush1.msra.mxu0 %v5636_v1  ;;  %8061 = vmatprep.subr.mxu1 %v5641_v59  ;;  %v10706_v42 = vpop.permute.xlu0 %6571 }
 0x53b   : > { %5699 = vmatprep.subr.mxu0 %v10333_v45  ;;  %8062 = vmatpush3.msra.mxu1 %v5641_v59  ;;  %v11406_v45 = vld [vmem:[#allocation51_spill] sm:$0xff] }
 0x53c   : > { %5700 = vmatpush1.msra.mxu0 %v10330_v17  ;;  %5480 = vmatprep.mubr.f32.mxu1 %v11401_v46  ;;  %v11405_v17 = vld [vmem:[#allocation50_spill] sm:$0xff]  ;;  %v7577_v59 = vld [vmem:[%s8691_s13 + $0xa8] sm:$0xff] }
 0x53d   : > { %5733 = vmatprep.mubr.f32.mxu0 %v11401_v46  ;;  %8063 = vmatprep.subr.mxu1 %v5638_v35  ;;  %v10676_v28 = vpop.permute.xlu1 %6318 }
 0x53e   : > { %8073 = vmatprep.subr.mxu0 %v11404_v23  ;;  %7545 = vmatmul.mubr.msk.f32.gmra.mxu1 %vm2578_vm7, %v7541_v38  ;;  %v10723_v33 = vpop.permute.xlu0 %6569 }
 0x53f   : > { %7556 = vmatmul.mubr.msk.f32.vlgmr.msra.gmra.mxu0 %vm2578_vm7, %v7552_v24  ;;  %8064 = vmatpush3.msra.mxu1 %v5638_v35  ;;  %v7579_v35 = vld [vmem:[%s8691_s13 + $0xb8] sm:$0xff] }
 0x540   : > { %8074 = vmatpush3.msra.mxu0 %v11404_v23  ;;  %8065 = vmatprep.subr.mxu1 %v11405_v17  ;;  %v6338_v23 = vsel %vm4008_vm13, %v10599_v2, %v10557_v11 }
 0x541   : > { %8075 = vmatprep.subr.mxu0 %v11406_v45  ;;  %8066 = vmatpush3.msra.mxu1 %v11405_v17  ;;  %v10685_v21 = vpop.permute.xlu1 %6316  ;;  %v6337_v17 = vsel %vm4008_vm13, %v10676_v28, %v10621_v31 }
 0x542   : > { %8076 = vmatpush3.msra.mxu0 %v11406_v45  ;;  %5486 = vmatprep.mubr.f32.mxu1 %v11401_v46  ;;  %v10741_v55 = vpop.permute.xlu0 %6567  ;;  %v6336_v45 = vsel %vm4008_vm13, %v10685_v21, %v10676_v28  ;;  %v6334_v28 = vsel %vm4008_vm13, %v10673_v54, %v10650_v43  ;;  %v7589_v54 = vld [vmem:[%s8691_s13 + $0xc8] sm:$0xff] }
 0x543   : > { %5739 = vmatprep.mubr.f32.mxu0 %v11401_v46  ;;  %5896 = vmatprep.subr.mxu1 %v11407_v36 }
 0x544   : > { %8077 = vmatprep.subr.mxu0 %v11408_v58  ;;  %7546 = vmatmul.mubr.msk.f32.gmra.mxu1 %vm2578_vm7, %v7542_v13  ;;  %v6089_v13 = vsel %vm3760_vm12, %v10605_v62, %v10592_v14  ;;  %v11422_v14 = vld [vmem:[#allocation61_spill] sm:$0xff] }
 0x545   : > { %7557 = vmatmul.mubr.msk.f32.gmra.mxu0 %vm2578_vm7, %v7553_v51  ;;  %5492 = vmatprep.mubr.f32.mxu1 %v11401_v46  ;;  %v10698_v26 = vpop.permute.xlu1 %6314 }
 0x546   : > { %8078 = vmatpush3.msra.mxu0 %v11408_v58  ;;  %5745 = vmatprep.mubr.f32.mxu0 %v11401_v46  ;;  %v7590_v58 = vld [vmem:[%s8691_s13 + $0xd0] sm:$0xff] }
 0x547   : > { %8079 = vmatprep.subr.mxu0 %v11409_v49 }
 0x548   : > { %8080 = vmatpush3.msra.mxu0 %v11409_v49  ;;  %7547 = vmatmul.mubr.msk.f32.gmra.mxu1 %vm2578_vm7, %v7543_v29  ;;  %v11421_v29 = vld [vmem:[#allocation56_spill] sm:$0xff]  ;;  %v7591_v49 = vld [vmem:[%s8691_s13 + $0xd8] sm:$0xff] }
 0x549   : > { %7558 = vmatmul.mubr.msk.f32.gmra.mxu0 %vm2578_vm7, %v7554_v63  ;;  %8067 = vmatprep.mubr.msk.f32.mxu1 %vm2578_vm7, %v7552_v24  ;;  %v10710_v56 = vpop.permute.xlu1 %6575  ;;  %v6088_v19 = vsel %vm3760_vm12, %v11421_v29, %v10624_v8  ;;  %v6339_v24 = vsel %vm4008_vm13, %v10557_v11, %v10664_v34  ;;  %v6335_v11 = vsel %vm4008_vm13, %v10650_v43, %v10698_v26 }
 0x54a   : > { %5751 = vmatprep.mubr.f32.mxu0 %v11401_v46 }
 0x54c   : > { %8068 = vmatmul.mubr.msk.f32.vlgmr.msra.gmra.mxu1 %vm2578_vm7, %v7553_v51 }
 0x54d   : > { %7559 = vmatmul.mubr.msk.f32.gmra.mxu0 %vm2578_vm7, %v7555_v16  ;;  %5897 = vmatpush1.msra.mxu1 %v11410_v53  ;;  %v10718_v47 = vpop.permute.xlu1 %6573 }
 0x54e   : > { %5898 = vmatprep.subr.mxu1 %v11411_v22  ;;  %8070 = vmatprep.mubr.msk.f32.mxu1 %vm2578_vm7, %v7554_v63  ;;  %v6586_v63 = vsel %vm4256_vm14, %v10706_v42, %v10718_v47 }
 0x54f   : > { %5899 = vmatpush1.msra.mxu1 %v11412_v41  ;;  %8081 = vmatprep.mubr.msk.f32.mxu0 %vm2578_vm7, %v7564_v0 }
 0x550   : > { %5900 = vmatprep.subr.mxu1 %v11413_v4  ;;  %8071 = vmatmul.mubr.msk.f32.gmra.mxu1 %vm2578_vm7, %v7555_v16 }
 0x551   : > { %5901 = vmatpush1.msra.mxu1 %v11414_v52  ;;  %8082 = vmatmul.mubr.msk.f32.vlgmr.msra.gmra.mxu0 %vm2578_vm7, %v7565_v18  ;;  %v10732_v20 = vpop.permute.xlu1 %6565  ;;  %v7602_v52 = vld [vmem:[%s8691_s13 + $0xf0] sm:$0xff] }
 0x552   : > { %5902 = vmatprep.subr.mxu1 %v11415_v9  ;;  %5936 = vmatprep.mubr.f32.mxu1 %v11401_v46  ;;  %v7603_v9 = vld [vmem:[%s8691_s13 + $0xf8] sm:$0xff] }
 0x553   : > { %5903 = vmatpush1.msra.mxu1 %v11416_v12  ;;  %8084 = vmatprep.mubr.msk.f32.mxu0 %vm2578_vm7, %v7566_v32 }
 0x554   : > { %8087 = vmatprep.subr.mxu1 %v11417_v57  ;;  %7568 = vmatmul.mubr.msk.f32.vlgmr.msra.gmra.mxu1 %vm2578_vm7, %v7564_v0  ;;  %v6584_v0 = vsel %vm4256_vm14, %v10732_v20, %v10741_v55 }
 0x555   : > { %8085 = vmatmul.mubr.msk.f32.gmra.mxu0 %vm2578_vm7, %v7567_v15  ;;  %8088 = vmatpush3.msra.mxu1 %v11417_v57  ;;  %v6084_v60 = vpop.permute.xlu1 %6083 }
 0x556   : > { %8089 = vmatprep.subr.mxu1 %v10577_v30  ;;  %5942 = vmatprep.mubr.f32.mxu1 %v11401_v46  ;;  %v6094_v7 = vsel %vm3760_vm12, %v6084_v60, %v11417_v57  ;;  %v6093_v5 = vsel %vm3760_vm12, %v10567_v25, %v6084_v60  ;;  %v10762_v25 = vpop.permute.xlu0 %6559 }
 0x557   : > { %8090 = vmatpush3.msra.mxu1 %v10577_v30  ;;  %6143 = vmatprep.subr.mxu0 %v6094_v7 }
 0x558   : > { %8091 = vmatprep.subr.mxu1 %v11418_v3  ;;  %7569 = vmatmul.mubr.msk.f32.gmra.mxu1 %vm2578_vm7, %v7565_v18 }
 0x559   : > { %8092 = vmatpush3.msra.mxu1 %v11418_v3  ;;  %5948 = vmatprep.mubr.f32.mxu1 %v11401_v46  ;;  %v10756_v38 = vpop.permute.xlu1 %6563  ;;  %v7612_v3 = vld [vmem:[%s8691_s13 + $0x100] sm:$0xff] }
 0x55a   : > { %8093 = vmatprep.subr.mxu1 %v10624_v8  ;;  %6144 = vmatpush1.msra.mxu0 %v6093_v5  ;;  %v10783_v62 = vpop.permute.xlu0 %6557  ;;  %v6583_v53 = vsel %vm4256_vm14, %v10756_v38, %v10732_v20  ;;  %v7613_v38 = vld [vmem:[%s8691_s13 + $0x108] sm:$0xff] }
 0x55b   : > { %8094 = vmatpush3.msra.mxu1 %v10624_v8  ;;  %6145 = vmatprep.subr.mxu0 %v6092_v48  ;;  %v6581_v18 = vsel %vm4256_vm14, %v10783_v62, %v10762_v25  ;;  %v7615_v48 = vld [vmem:[%s8691_s13 + $0x118] sm:$0xff] }
 0x55c   : > { %7570 = vmatmul.mubr.msk.f32.gmra.mxu1 %vm2578_vm7, %v7566_v32  ;;  %6146 = vmatpush1.msra.mxu0 %v11420_v44 }
 0x55d   : > { %5954 = vmatprep.mubr.f32.mxu1 %v11401_v46  ;;  %6147 = vmatprep.subr.mxu0 %v6090_v37  ;;  %v6331_v30 = vpop.permute.xlu1 %6330 }
 0x55e   : > { %6148 = vmatpush1.msra.mxu0 %v6089_v13  ;;  %6183 = vmatprep.mubr.f32.mxu0 %v11401_v46  ;;  %v6341_v1 = vsel %vm4008_vm13, %v6331_v30, %v10528_v27  ;;  %v6340_v50 = vsel %vm4008_vm13, %v10646_v61, %v6331_v30 }
 0x55f   : > { %6149 = vmatprep.subr.mxu0 %v6088_v19  ;;  %6390 = vmatprep.subr.mxu1 %v6341_v1 }
 0x560   : > { %7571 = vmatmul.mubr.msk.f32.gmra.mxu1 %vm2578_vm7, %v7567_v15  ;;  %6150 = vmatpush1.msra.mxu0 %v11422_v14 }
 0x561   : > { %8095 = vmatprep.mubr.msk.f32.mxu1 %vm2578_vm7, %v7576_v6  ;;  %7580 = vmatmul.mubr.msk.f32.vlgmr.msra.gmra.mxu0 %vm2578_vm7, %v7576_v6  ;;  %v10788_v8 = vpop.permute.xlu1 %6561 }
 0x562   : > { %8101 = vmatprep.subr.mxu0 %v10528_v27  ;;  %6189 = vmatprep.mubr.f32.mxu0 %v11401_v46 }
 0x563   : > { %8102 = vmatpush3.msra.mxu0 %v10528_v27  ;;  %v10809_v27 = vpop.permute.xlu0 %6826 }
 0x564   : > { %8096 = vmatmul.mubr.msk.f32.vlgmr.msra.gmra.mxu1 %vm2578_vm7, %v7577_v59  ;;  %8103 = vmatprep.subr.mxu0 %v10664_v34 }
 0x565   : > { %8098 = vmatprep.mubr.msk.f32.mxu1 %vm2578_vm7, %v7578_v10  ;;  %6391 = vmatpush1.msra.mxu1 %v6340_v50  ;;  %v10803_v61 = vpop.permute.xlu1 %6822 }
 0x566   : > { %6392 = vmatprep.subr.mxu1 %v6339_v24  ;;  %8104 = vmatpush3.msra.mxu0 %v10664_v34  ;;  %v7588_v34 = vld [vmem:[%s8691_s13 + $0xc0] sm:$0xff] }
 0x567   : > { %6393 = vmatpush1.msra.mxu1 %v6338_v23  ;;  %7581 = vmatmul.mubr.msk.f32.gmra.mxu0 %vm2578_vm7, %v7577_v59  ;;  %v10833_v21 = vpop.permute.xlu0 %6818 }
 0x568   : > { %8099 = vmatmul.mubr.msk.f32.gmra.mxu1 %vm2578_vm7, %v7579_v35  ;;  %6394 = vmatprep.subr.mxu1 %v6337_v17 }
 0x569   : > { %8105 = vmatprep.subr.mxu0 %v10621_v31  ;;  %6395 = vmatpush1.msra.mxu1 %v6336_v45  ;;  %v10823_v2 = vpop.permute.xlu1 %6820 }
 0x56a   : > { %8106 = vmatpush3.msra.mxu0 %v10621_v31  ;;  %6396 = vmatprep.subr.mxu1 %v6335_v11  ;;  %v6833_v20 = vsel %vm4504_vm15, %v10833_v21, %v10823_v2 }
 0x56b   : > { %8107 = vmatprep.subr.mxu0 %v10698_v26  ;;  %6195 = vmatprep.mubr.f32.mxu0 %v11401_v46  ;;  %v6817_v36 = vpop.permute.xlu0 %6816 }
 0x56c   : > { %6397 = vmatpush1.msra.mxu1 %v6334_v28  ;;  %6430 = vmatprep.mubr.f32.mxu1 %v11401_v46  ;;  %v6832_v15 = vsel %vm4504_vm15, %v6817_v36, %v10833_v21 }
 0x56d   : > { %8108 = vmatpush3.msra.mxu0 %v10698_v26  ;;  %7592 = vmatmul.mubr.msk.f32.vlgmr.msra.gmra.mxu1 %vm2578_vm7, %v7588_v34  ;;  %v6578_v31 = vpop.permute.xlu1 %6577 }
 0x56e   : > { %7582 = vmatmul.mubr.msk.f32.gmra.mxu0 %vm2578_vm7, %v7578_v10  ;;  %8115 = vmatprep.subr.mxu1 %v10690_v40  ;;  %v6588_v43 = vsel %vm4256_vm14, %v6578_v31, %v10690_v40 }
 0x56f   : > { %8116 = vmatpush3.msra.mxu1 %v10690_v40  ;;  %6201 = vmatprep.mubr.f32.mxu0 %v11401_v46  ;;  %v6587_v40 = vsel %vm4256_vm14, %v10710_v56, %v6578_v31  ;;  %v6585_v56 = vsel %vm4256_vm14, %v10723_v33, %v10706_v42  ;;  %v6815_v16 = vpop.permute.xlu0 %6814  ;;  %v7600_v42 = vld [vmem:[%s8691_s13 + $0xe0] sm:$0xff]  ;;  %v7601_v33 = vld [vmem:[%s8691_s13 + $0xe8] sm:$0xff] }
 0x570   : > { %8117 = vmatprep.subr.mxu1 %v10718_v47  ;;  %6436 = vmatprep.mubr.f32.mxu1 %v11401_v46 }
 0x571   : > { %8118 = vmatpush3.msra.mxu1 %v10718_v47  ;;  %6637 = vmatprep.subr.mxu0 %v6588_v43  ;;  %v10847_v51 = vpop.permute.xlu1 %6812  ;;  %v6582_v47 = vsel %vm4256_vm14, %v10762_v25, %v10788_v8 }
 0x572   : > { %7583 = vmatmul.mubr.msk.f32.gmra.mxu0 %vm2578_vm7, %v7579_v35  ;;  %7593 = vmatmul.mubr.msk.f32.gmra.mxu1 %vm2578_vm7, %v7589_v54 }
 0x573   : > { %8119 = vmatprep.subr.mxu1 %v10741_v55  ;;  %6442 = vmatprep.mubr.f32.mxu1 %v11401_v46  ;;  %v6807_v32 = vpop.permute.xlu0 %6806 }
 0x574   : > { %8120 = vmatpush3.msra.mxu1 %v10741_v55  ;;  %8109 = vmatprep.mubr.msk.f32.mxu0 %vm2578_vm7, %v7588_v34  ;;  %v6831_v55 = vsel %vm4504_vm15, %v10847_v51, %v6815_v16 }
 0x575   : > { %8121 = vmatprep.subr.mxu1 %v10788_v8  ;;  %v6825_v26 = vpop.permute.xlu1 %6824 }
 0x576   : > { %8122 = vmatpush3.msra.mxu1 %v10788_v8  ;;  %8110 = vmatmul.mubr.msk.f32.vlgmr.msra.gmra.mxu0 %vm2578_vm7, %v7589_v54  ;;  %v6835_v22 = vsel %vm4504_vm15, %v6825_v26, %v10809_v27  ;;  %v6834_v4 = vsel %vm4504_vm15, %v10803_v61, %v6825_v26 }
 0x577   : > { %7594 = vmatmul.mubr.msk.f32.gmra.mxu1 %vm2578_vm7, %v7590_v58  ;;  %6638 = vmatpush1.msra.mxu0 %v6587_v40  ;;  %v6805_v60 = vpop.permute.xlu0 %6804 }
 0x578   : > { %6639 = vmatprep.subr.mxu0 %v6586_v63  ;;  %6448 = vmatprep.mubr.f32.mxu1 %v11401_v46  ;;  %v6828_v5 = vsel %vm4504_vm15, %v6805_v60, %v6807_v32 }
 0x579   : > { %8112 = vmatprep.mubr.msk.f32.mxu0 %vm2578_vm7, %v7590_v58  ;;  %6640 = vmatpush1.msra.mxu0 %v6585_v56  ;;  %v6811_v41 = vpop.permute.xlu1 %6810 }
 0x57a   : > { %8113 = vmatmul.mubr.msk.f32.gmra.mxu0 %vm2578_vm7, %v7591_v49  ;;  %6641 = vmatprep.subr.mxu0 %v6584_v0  ;;  %v6830_v57 = vsel %vm4504_vm15, %v6811_v41, %v10847_v51 }
 0x57b   : > { %7595 = vmatmul.mubr.msk.f32.gmra.mxu1 %vm2578_vm7, %v7591_v49  ;;  %6642 = vmatpush1.msra.mxu0 %v6583_v53 }
 0x57c   : > { %6643 = vmatprep.subr.mxu0 %v6582_v47  ;;  %6677 = vmatprep.mubr.f32.mxu0 %v11401_v46 }
 0x57d   : > { %6644 = vmatpush1.msra.mxu0 %v6581_v18  ;;  %8123 = vmatprep.mubr.msk.f32.mxu1 %vm2578_vm7, %v7600_v42  ;;  %v6809_v12 = vpop.permute.xlu1 %6808 }
 0x57e   : > { %7604 = vmatmul.mubr.msk.f32.vlgmr.msra.gmra.mxu0 %vm2578_vm7, %v7600_v42  ;;  %6884 = vmatprep.subr.mxu1 %v6835_v22  ;;  %v6829_v7 = vsel %vm4504_vm15, %v6807_v32, %v6809_v12 }
 0x57f   : > { %8124 = vmatmul.mubr.msk.f32.vlgmr.msra.gmra.mxu1 %vm2578_vm7, %v7601_v33  ;;  %8129 = vmatprep.subr.mxu0 %v10809_v27 }
 0x580   : > { %6885 = vmatpush1.msra.mxu1 %v6834_v4  ;;  %8130 = vmatpush3.msra.mxu0 %v10809_v27 }
 0x581   : > { %6886 = vmatprep.subr.mxu1 %v6833_v20  ;;  %8131 = vmatprep.subr.mxu0 %v10823_v2 }
 0x582   : > { %6683 = vmatprep.mubr.f32.mxu0 %v11401_v46  ;;  %8126 = vmatprep.mubr.msk.f32.mxu1 %vm2578_vm7, %v7602_v52 }
 0x583   : > { %6887 = vmatpush1.msra.mxu1 %v6832_v15  ;;  %8132 = vmatpush3.msra.mxu0 %v10823_v2 }
 0x584   : > { %7605 = vmatmul.mubr.msk.f32.gmra.mxu0 %vm2578_vm7, %v7601_v33  ;;  %8127 = vmatmul.mubr.msk.f32.gmra.mxu1 %vm2578_vm7, %v7603_v9 }
 0x585   : > { %6888 = vmatprep.subr.mxu1 %v6831_v55  ;;  %8133 = vmatprep.subr.mxu0 %v6815_v16 }
 0x586   : > { %6889 = vmatpush1.msra.mxu1 %v6830_v57  ;;  %8134 = vmatpush3.msra.mxu0 %v6815_v16 }
 0x587   : > { %6689 = vmatprep.mubr.f32.mxu0 %v11401_v46  ;;  %8135 = vmatprep.subr.mxu0 %v6809_v12 }
 0x588   : > { %7606 = vmatmul.mubr.msk.f32.gmra.mxu0 %vm2578_vm7, %v7602_v52  ;;  %6890 = vmatprep.subr.mxu1 %v6829_v7 }
 0x589   : > { %8136 = vmatpush3.msra.mxu0 %v6809_v12  ;;  %6891 = vmatpush1.msra.mxu1 %v6828_v5 }
 0x58a   : > { %6924 = vmatprep.mubr.f32.mxu1 %v11401_v46  ;;  %6695 = vmatprep.mubr.f32.mxu0 %v11401_v46 }
 0x58b   : > { %7616 = vmatmul.mubr.msk.f32.vlgmr.msra.gmra.mxu1 %vm2578_vm7, %v7612_v3 }
 0x58c   : > { %7607 = vmatmul.mubr.msk.f32.gmra.mxu0 %vm2578_vm7, %v7603_v9  ;;  %6930 = vmatprep.mubr.f32.mxu1 %v11401_v46 }
 0x58d   : > { %8137 = vmatprep.mubr.msk.f32.mxu0 %vm2578_vm7, %v7612_v3 }
 0x58f   : > { %7617 = vmatmul.mubr.msk.f32.gmra.mxu1 %vm2578_vm7, %v7613_v38 }
 0x590   : > { %8138 = vmatmul.mubr.msk.f32.vlgmr.msra.gmra.mxu0 %vm2578_vm7, %v7613_v38  ;;  %6936 = vmatprep.mubr.f32.mxu1 %v11401_v46 }
 0x591   : > { %8140 = vmatprep.mubr.msk.f32.mxu0 %vm2578_vm7, %v7614_v39 }
 0x593   : > { %7618 = vmatmul.mubr.msk.f32.gmra.mxu1 %vm2578_vm7, %v7614_v39 }
 0x594   : > { %8141 = vmatmul.mubr.msk.f32.gmra.mxu0 %vm2578_vm7, %v7615_v48  ;;  %6942 = vmatprep.mubr.f32.mxu1 %v11401_v46 }
 0x597   : > { %7619 = vmatmul.mubr.msk.f32.gmra.mxu1 %vm2578_vm7, %v7615_v48 }
 0x5d1   : > { %v8027_v25 = vpop.f32.mrf.mxu0 }
 0x5d3   : > { %v5076_v44 = vpop.f32.mrf.mxu0 }
 0x5d5   : > { %v8030_v37 = vpop.f32.mrf.mxu0 }
 0x5d7   : > { %v5086_v30 = vpop.f32.mrf.mxu0 }
 0x5db   : > { %v4987_v13 = vpop.f32.mrf.mxu1 }
 0x5dd   : > { %v4989_v6 = vpop.f32.mrf.mxu1 }
 0x5e0   : > { %v4993_v29 = vpop.f32.mrf.mxu1  ;;  %v5229_v19 = vpop.f32.mrf.mxu0 }
 0x5e1   : > { %v10936_v1 = vadd.f32 %v5229_v19, %v4987_v13 }
 0x5e2   : > { %v4995_v14 = vpop.f32.mrf.mxu1  ;;  %v5231_v62 = vpop.f32.mrf.mxu0 }
 0x5e3   : > { %v10938_v59 = vadd.f32 %v5231_v62, %v4989_v6 }
 0x5e6   : > { %v4999_v8 = vpop.f32.mrf.mxu1  ;;  %v5235_v50 = vpop.f32.mrf.mxu0 }
 0x5e7   : > { %v10940_v10 = vadd.f32 %v5235_v50, %v4993_v29 }
 0x5e8   : > { %v5001_v46 = vpop.f32.mrf.mxu1  ;;  %v5237_v35 = vpop.f32.mrf.mxu0 }
 0x5e9   : > { %v10942_v24 = vadd.f32 %v5237_v35, %v4995_v14 }
 0x5ea   : > { %v5005_v61 = vpop.f32.mrf.mxu1 }
 0x5eb   : > { %v5241_v23 = vpop.f32.mrf.mxu0 }
 0x5ec   : > { %v10944_v27 = vadd.f32 %v5241_v23, %v4999_v8  ;;  %v5007_v17 = vpop.f32.mrf.mxu1 }
 0x5ed   : > { %v5243_v45 = vpop.f32.mrf.mxu0 }
 0x5ee   : > { %v10946_v11 = vadd.f32 %v5243_v45, %v5001_v46  ;;  %v8041_v2 = vpop.f32.mrf.mxu1 }
 0x5ef   : > { %v5247_v34 = vpop.f32.mrf.mxu0  ;;  %v10948_v28 = vadd.f32 %v8041_v2, %v8027_v25 }
 0x5f0   : > { %v10950_v21 = vadd.f32 %v5247_v34, %v5005_v61  ;;  %v5318_v31 = vpop.f32.mrf.mxu1 }
 0x5f1   : > { %v5249_v43 = vpop.f32.mrf.mxu0  ;;  %v10952_v54 = vadd.f32 %v5318_v31, %v5076_v44 }
 0x5f2   : > { %v10954_v51 = vadd.f32 %v5249_v43, %v5007_v17  ;;  %v8044_v36 = vpop.f32.mrf.mxu1 }
 0x5f3   : > { %v10956_v40 = vadd.f32 %v8044_v36, %v8030_v37  ;;  %v10958_v58 = vpop.f32.mrf.mxu0 }
 0x5f4   : > { %v5328_v26 = vpop.f32.mrf.mxu1 }
 0x5f5   : > { %v10960_v63 = vadd.f32 %v5328_v26, %v5086_v30  ;;  %v10962_v49 = vpop.f32.mrf.mxu0 }
 0x5f8   : > { %v5476_v56 = vpop.f32.mrf.mxu1 }
 0x5f9   : > { %v10964_v16 = vpop.f32.mrf.mxu0 }
 0x5fa   : > { %v5478_v0 = vpop.f32.mrf.mxu1 }
 0x5fb   : > { %v10966_v53 = vpop.f32.mrf.mxu0 }
 0x5fe   : > { %v5482_v42 = vpop.f32.mrf.mxu1 }
 0x5ff   : > { %v10968_v47 = vpop.f32.mrf.mxu0 }
 0x600   : > { %v5484_v22 = vpop.f32.mrf.mxu1 }
 0x601   : > { %v10970_v18 = vpop.f32.mrf.mxu0 }
 0x604   : > { %v5488_v33 = vpop.f32.mrf.mxu1 }
 0x605   : > { %v10972_v41 = vpop.f32.mrf.mxu0 }
 0x606   : > { %v10974_v4 = vpop.f32.mrf.mxu1 }
 0x607   : > { %v10976_v32 = vpop.f32.mrf.mxu0 }
 0x608   : > { %v10978_v52 = vpop.f32.mrf.mxu1 }
 0x609   : > { %v10980_v20 = vpop.f32.mrf.mxu0 }
 0x60a   : > { %v10982_v9 = vpop.f32.mrf.mxu1 }
 0x60b   : > { %v10984_v15 = vpop.f32.mrf.mxu0 }
 0x60c   : > { %v10986_v12 = vpop.f32.mrf.mxu1 }
 0x60d   : > { %v10988_v57 = vpop.f32.mrf.mxu0 }
 0x60e   : > { %v5824_v55 = vpop.f32.mrf.mxu1 }
 0x60f   : > { %v10990_v60 = vpop.f32.mrf.mxu0 }
 0x610   : > { %v8072_v7 = vpop.f32.mrf.mxu1 }
 0x611   : > { %v10994_v3 = vpop.f32.mrf.mxu0 }
 0x612   : > { %v10992_v5 = vpop.f32.mrf.mxu1 }
 0x613   : > { %v10998_v48 = vpop.f32.mrf.mxu0 }
 0x614   : > { %v5938_v38 = vpop.f32.mrf.mxu1 }
 0x615   : > { %v8086_v37 = vpop.f32.mrf.mxu0 }
 0x616   : > { %v10996_v39 = vpop.f32.mrf.mxu1 }
 0x617   : > { %v6037_v6 = vpop.f32.mrf.mxu0 }
 0x618   : > { %v11000_v25 = vpop.f32.mrf.mxu1 }
 0x61a   : > { %v11002_v44 = vpop.f32.mrf.mxu1 }
 0x61c   : > { %v11004_v13 = vpop.f32.mrf.mxu1 }
 0x61e   : > { %v11006_v30 = vpop.f32.mrf.mxu1 }
 0x620   : > { %v11008_v29 = vpop.f32.mrf.mxu1 }
 0x621   : > { %v6185_v19 = vpop.f32.mrf.mxu0 }
 0x622   : > { %v11010_v14 = vpop.f32.mrf.mxu1 }
 0x623   : > { %v11012_v62 = vpop.f32.mrf.mxu0 }
 0x624   : > { %v11014_v8 = vpop.f32.mrf.mxu1 }
 0x626   : > { %v11016_v50 = vpop.f32.mrf.mxu1 }
 0x627   : > { %v11018_v46 = vpop.f32.mrf.mxu0 }
 0x628   : > { %11423 = vst [vmem:[#allocation48_spill] sm:$0xff] %v11018_v46  ;;  %v11020_v35 = vpop.f32.mrf.mxu1 }
 0x629   : > { %11424 = vst [vmem:[#allocation55_spill] sm:$0xff] %v11020_v35  ;;  %v11022_v61 = vpop.f32.mrf.mxu0 }
 0x62a   : > { %11425 = vst [vmem:[#allocation49_spill] sm:$0xff] %v11022_v61  ;;  %v11024_v23 = vpop.f32.mrf.mxu1 }
 0x62b   : > { %11426 = vst [vmem:[#allocation50_spill] sm:$0xff] %v11024_v23 }
 0x62d   : > { %v6432_v17 = vpop.f32.mrf.mxu1 }
 0x62e   : > { %v11026_v45 = vpop.f32.mrf.mxu0 }
 0x62f   : > { %11427 = vst [vmem:[#allocation51_spill] sm:$0xff] %v11026_v45  ;;  %v11028_v2 = vpop.f32.mrf.mxu1 }
 0x630   : > { %11428 = vst [vmem:[#allocation44_spill] sm:$0xff] %v11028_v2  ;;  %v11030_v34 = vpop.f32.mrf.mxu0 }
 0x631   : > { %11429 = vst [vmem:[#allocation45_spill] sm:$0xff] %v11030_v34 }
 0x632   : > { %v11032_v31 = vpop.f32.mrf.mxu0  ;;  %v11034_v43 = vpop.f32.mrf.mxu1 }
 0x633   : > { %11430 = vst [vmem:[#allocation47_spill] sm:$0xff] %v11032_v31  ;;  %11431 = vst [vmem:[#allocation43_spill] sm:$0xff] %v11034_v43 }
 0x634   : > { %v11036_v36 = vpop.f32.mrf.mxu0  ;;  %v11038_v26 = vpop.f32.mrf.mxu1 }
 0x635   : > { %11432 = vst [vmem:[#allocation46_spill] sm:$0xff] %v11036_v36  ;;  %11433 = vst [vmem:[#allocation42_spill] sm:$0xff] %v11038_v26  ;;  %v5589_v26 = vadd.f32 %v10958_v58, %v10948_v28 }
 0x636   : > { %v11040_v46 = vpop.f32.mrf.mxu0 }
 0x637   : > { %11434 = vst [vmem:[#allocation41_spill] sm:$0xff] %v11040_v46  ;;  %v11042_v61 = vpop.f32.mrf.mxu1  ;;  %v5584_v46 = vadd.f32 %v5476_v56, %v10936_v1  ;;  %v5592_v1 = vadd.f32 %v10966_v53, %v10960_v63  ;;  %v5594_v63 = vadd.f32 %v10982_v9, %v10954_v51 }
 0x638   : > { %11435 = vst [vmem:[#allocation40_spill] sm:$0xff] %v11042_v61  ;;  %v11044_v23 = vpop.f32.mrf.mxu0  ;;  %v5585_v61 = vadd.f32 %v5478_v0, %v10938_v59 }
 0x639   : > { %11436 = vst [vmem:[#allocation39_spill] sm:$0xff] %v11044_v23  ;;  %v11046_v35 = vpop.f32.mrf.mxu1  ;;  %v5587_v23 = vadd.f32 %v5482_v42, %v10940_v10  ;;  %v5843_v59 = vadd.f32 %v10968_v47, %v5584_v46 }
 0x63a   : > { %11437 = vst [vmem:[#allocation38_spill] sm:$0xff] %v11046_v35  ;;  %v11048_v45 = vpop.f32.mrf.mxu0  ;;  %v5844_v10 = vadd.f32 %v10970_v18, %v5585_v61 }
 0x63b   : > { %11438 = vst [vmem:[#allocation53_spill] sm:$0xff] %v11048_v45  ;;  %v11050_v2 = vpop.f32.mrf.mxu1  ;;  %v5586_v45 = vadd.f32 %v10962_v49, %v10952_v54  ;;  %v5846_v28 = vadd.f32 %v10972_v41, %v5587_v23  ;;  %v5591_v54 = vadd.f32 %v10974_v4, %v10946_v11  ;;  %v5848_v49 = vadd.f32 %v10986_v12, %v5589_v26 }
 0x63c   : > { %11439 = vst [vmem:[#allocation54_spill] sm:$0xff] %v11050_v2  ;;  %v11052_v34 = vpop.f32.mrf.mxu0  ;;  %v5590_v2 = vadd.f32 %v5488_v33, %v10944_v27  ;;  %v5851_v11 = vadd.f32 %v10992_v5, %v5592_v1  ;;  %v6046_v42 = vadd.f32 %v5938_v38, %v5843_v59  ;;  %v6047_v41 = vadd.f32 %v10996_v39, %v5844_v10  ;;  %v11442_v39 = vld [vmem:[#allocation55_spill] sm:$0xff]  ;;  %v11452_v59 = vld [vmem:[#allocation42_spill] sm:$0xff] }
 0x63d   : > { %11440 = vst [vmem:[#allocation52_spill] sm:$0xff] %v11052_v34  ;;  %v11054_v31 = vpop.f32.mrf.mxu1  ;;  %v5595_v34 = vadd.f32 %v10964_v16, %v10956_v40  ;;  %v5845_v56 = vadd.f32 %v5824_v55, %v5586_v45  ;;  %v5850_v0 = vadd.f32 %v10984_v15, %v5591_v54  ;;  %v11449_v45 = vld [vmem:[#allocation47_spill] sm:$0xff] }
 0x63e   : > { %11441 = vst [vmem:[#allocation57_spill] sm:$0xff] %v11054_v31  ;;  %v6679_v43 = vpop.f32.mrf.mxu0  ;;  %v5588_v31 = vadd.f32 %v5484_v22, %v10942_v24  ;;  %v5593_v24 = vadd.f32 %v10978_v52, %v10950_v21  ;;  %v5849_v27 = vadd.f32 %v10980_v20, %v5590_v2  ;;  %v5853_v22 = vadd.f32 %v10990_v60, %v5594_v63  ;;  %v7049_v63 = vpop.permute.xlu1 %7048 }
 0x63f   : > { %v11061_v36 = vpop.f32.mrf.mxu1  ;;  %v5854_v16 = vadd.f32 %v8072_v7, %v5595_v34  ;;  %v6051_v21 = vadd.f32 %v10994_v3, %v5848_v49  ;;  %v6048_v18 = vadd.f32 %v10998_v48, %v5845_v56  ;;  %v6054_v4 = vadd.f32 %v6037_v6, %v5851_v11  ;;  %v11454_v49 = vld [vmem:[#allocation40_spill] sm:$0xff] }
 0x640   : > { %v6681_v35 = vpop.f32.mrf.mxu0  ;;  %v5847_v40 = vadd.f32 %v10976_v32, %v5588_v31  ;;  %v5852_v53 = vadd.f32 %v10988_v57, %v5593_v24  ;;  %v6049_v32 = vadd.f32 %v11000_v25, %v5846_v28  ;;  %v6293_v52 = vadd.f32 %v6185_v19, %v6046_v42  ;;  %v11443_v25 = vld [vmem:[#allocation48_spill] sm:$0xff]  ;;  %v11451_v31 = vld [vmem:[#allocation46_spill] sm:$0xff]  ;;  %v11453_v28 = vld [vmem:[#allocation41_spill] sm:$0xff] }
 0x641   : > { %v11074_v58 = vpop.f32.mrf.mxu1  ;;  %v6057_v33 = vadd.f32 %v8086_v37, %v5854_v16  ;;  %v6052_v15 = vadd.f32 %v11004_v13, %v5849_v27  ;;  %v6053_v12 = vadd.f32 %v11006_v30, %v5850_v0  ;;  %v6056_v55 = vadd.f32 %v11010_v14, %v5853_v22  ;;  %v11444_v37 = vld [vmem:[#allocation49_spill] sm:$0xff]  ;;  %v11445_v30 = vld [vmem:[#allocation50_spill] sm:$0xff]  ;;  %v11447_v14 = vld [vmem:[#allocation44_spill] sm:$0xff] }
 0x642   : > { %v6050_v9 = vadd.f32 %v11002_v44, %v5847_v40  ;;  %v6055_v57 = vadd.f32 %v11008_v29, %v5852_v53  ;;  %v6298_v60 = vadd.f32 %v11014_v8, %v6051_v21  ;;  %v6294_v7 = vadd.f32 %v11012_v62, %v6047_v41  ;;  %v11446_v29 = vld [vmem:[#allocation51_spill] sm:$0xff]  ;;  %v11448_v62 = vld [vmem:[#allocation45_spill] sm:$0xff]  ;;  %v11455_v56 = vld [vmem:[#allocation38_spill] sm:$0xff] }
 0x643   : > { %v6540_v5 = vadd.f32 %v6432_v17, %v6293_v52  ;;  %v6295_v38 = vadd.f32 %v11016_v50, %v6048_v18  ;;  %v6304_v48 = vadd.f32 %v11442_v39, %v6057_v33  ;;  %v6296_v44 = vadd.f32 %v11443_v25, %v6049_v32  ;;  %v11450_v50 = vld [vmem:[#allocation43_spill] sm:$0xff]  ;;  %v11457_v11 = vld [vmem:[#allocation53_spill] sm:$0xff]  ;;  %v11458_v18 = vld [vmem:[#allocation54_spill] sm:$0xff] }
 0x644   : > { %v6685_v47 = vpop.f32.mrf.mxu0  ;;  %v8128_v51 = vpop.f32.mrf.mxu1  ;;  %v6297_v13 = vadd.f32 %v11444_v37, %v6050_v9  ;;  %v6301_v19 = vadd.f32 %v11445_v30, %v6054_v4  ;;  %v6299_v46 = vadd.f32 %v11446_v29, %v6052_v15  ;;  %v6541_v61 = vadd.f32 %v11447_v14, %v6294_v7  ;;  %v11456_v0 = vld [vmem:[#allocation39_spill] sm:$0xff]  ;;  %v11460_v15 = vld [vmem:[#allocation52_spill] sm:$0xff] }
 0x645   : > { %v6787_v8 = vadd.f32 %v6679_v43, %v6540_v5  ;;  %v6300_v17 = vadd.f32 %v11448_v62, %v6053_v12  ;;  %v6302_v2 = vadd.f32 %v11449_v45, %v6055_v57  ;;  %v6543_v34 = vadd.f32 %v11450_v50, %v6296_v44  ;;  %v7078_v22 = vld [vmem:[#allocation2 + $0x8] sm:$0xff]  ;;  %v7054_v5 = vpop.permute.xlu0 %7053  ;;  %v7082_v45 = vld [vmem:[#allocation2 + $0x30] sm:$0xff] }
 0x646   : > { %v6687_v20 = vpop.f32.mrf.mxu0  ;;  %v6778_v6 = vpop.f32.mrf.mxu1  ;;  %v6303_v26 = vadd.f32 %v11451_v31, %v6056_v55  ;;  %v6544_v10 = vadd.f32 %v11452_v59, %v6297_v13  ;;  %v6545_v54 = vadd.f32 %v11453_v28, %v6298_v60  ;;  %v6788_v40 = vadd.f32 %v6681_v35, %v6541_v61  ;;  %v11459_v35 = vld [vmem:[#allocation57_spill] sm:$0xff]  ;;  %v7079_v60 = vld [vmem:[#allocation2 + $0x10] sm:$0xff]  ;;  %v7081_v30 = vld [vmem:[#allocation2 + $0x28] sm:$0xff] }
 0x647   : > { %v6546_v43 = vadd.f32 %v11454_v49, %v6299_v46  ;;  %v6547_v16 = vadd.f32 %v11455_v56, %v6300_v17  ;;  %v6542_v53 = vadd.f32 %v11456_v0, %v6295_v38  ;;  %v6551_v42 = vadd.f32 %v11457_v11, %v6304_v48 }
 0x648   : > { %v6691_v3 = vpop.f32.mrf.mxu0  ;;  %v6549_v33 = vadd.f32 %v11458_v18, %v6302_v2  ;;  %v6790_v41 = vadd.f32 %v6685_v47, %v6543_v34  ;;  %v6550_v9 = vadd.f32 %v11459_v35, %v6303_v26  ;;  %v6548_v12 = vadd.f32 %v11460_v15, %v6301_v19  ;;  %v11461_v19 = vld [vmem:[#allocation58_spill] sm:$0xff]  ;;  %v7085_v18 = vld [vmem:[#allocation2 + $0x50] sm:$0xff] }
 0x649   : > { %v6792_v57 = vadd.f32 %v11061_v36, %v6545_v54  ;;  %v6789_v55 = vadd.f32 %v11074_v58, %v6542_v53  ;;  %v6791_v38 = vadd.f32 %v6687_v20, %v6544_v10  ;;  %v6798_v44 = vadd.f32 %v8128_v51, %v6551_v42  ;;  %v7059_v10 = vpop.permute.xlu1 %7058  ;;  %v7064_v49 = vpop.permute.xlu0 %7063  ;;  %v7089_v53 = vld [vmem:[#allocation2 + $0x78] sm:$0xff]  ;;  %v11463_v42 = vld [vmem:[#allocation60_spill] sm:$0xff] }
 0x64a   : > { %v6693_v23 = vpop.f32.mrf.mxu0  ;;  %v6795_v37 = vadd.f32 %v6778_v6, %v6548_v12  ;;  %v6793_v13 = vadd.f32 %v6691_v3, %v6546_v43  ;;  %v11462_v3 = vld [vmem:[#allocation59_spill] sm:$0xff] }
 0x64b   : > { %v6926_v1 = vpop.f32.mrf.mxu1  ;;  %v6794_v62 = vadd.f32 %v6693_v23, %v6547_v16 }
 0x64c   : > { %v7034_v24 = vadd.f32 %v6926_v1, %v6787_v8  ;;  %v6697_v27 = vpop.f32.mrf.mxu0  ;;  %v7083_v8 = vld [vmem:[#allocation2 + $0x38] sm:$0xff] }
 0x64d   : > { %v6928_v21 = vpop.f32.mrf.mxu1  ;;  %v6796_v17 = vadd.f32 %v6697_v27, %v6549_v33  ;;  %v7080_v1 = vld [vmem:[#allocation2 + $0x18] sm:$0xff] }
 0x64e   : > { %v7066_v4 = vadd.f32 %v7049_v63, %v7034_v24  ;;  %v7035_v32 = vadd.f32 %v6928_v21, %v6788_v40  ;;  %v6699_v52 = vpop.f32.mrf.mxu0  ;;  %v7084_v40 = vld [vmem:[#allocation2 + $0x48] sm:$0xff] }
 0x64f   : > { %v6932_v7 = vpop.f32.mrf.mxu1  ;;  %v6797_v28 = vadd.f32 %v6699_v52, %v6550_v9  ;;  %v7086_v9 = vld [vmem:[#allocation2 + $0x58] sm:$0xff] }
 0x650   : > { %v11122_v39 = vadd.f32 %v7078_v22, %v7066_v4  ;;  %v7067_v48 = vadd.f32 %v7049_v63, %v7035_v32  ;;  %v7037_v25 = vadd.f32 %v6932_v7, %v6790_v41  ;;  %v8139_v47 = vpop.f32.mrf.mxu0 }
 0x651   : > { %v6934_v29 = vpop.f32.mrf.mxu1  ;;  %v7039_v46 = vadd.f32 %v8139_v47, %v6792_v57  ;;  %v7087_v57 = vld [vmem:[#allocation2 + $0x68] sm:$0xff] }
 0x652   : > { %v7102_v36 = vmul.f32 %v11122_v39, %v11461_v19  ;;  %v11126_v14 = vadd.f32 %v7079_v60, %v7067_v48  ;;  %v7069_v58 = vadd.f32 %v7054_v5, %v7037_v25  ;;  %v7038_v61 = vadd.f32 %v6934_v29, %v6791_v38  ;;  %v7015_v20 = vpop.f32.mrf.mxu0 }
 0x653   : > { %v7071_v2 = vadd.f32 %v7054_v5, %v7039_v46  ;;  %v6938_v50 = vpop.f32.mrf.mxu1  ;;  %v7036_v51 = vadd.f32 %v7015_v20, %v6789_v55 }
 0x654   : > { %7114 = vst [vmem:[#allocation2 + $0x8] sm:$0xff] %v7102_v36  ;;  %v7103_v6 = vmul.f32 %v11126_v14, %v11462_v3  ;;  %v11130_v34 = vadd.f32 %v7081_v30, %v7069_v58  ;;  %v7070_v31 = vadd.f32 %v7054_v5, %v7038_v61  ;;  %v7040_v26 = vadd.f32 %v6938_v50, %v6793_v13  ;;  %v8142_v59 = vpop.f32.mrf.mxu0 }
 0x655   : > { %v7095_v54 = vadd.f32 %v7083_v8, %v7071_v2  ;;  %v7068_v23 = vadd.f32 %v7049_v63, %v7036_v51  ;;  %v6940_v24 = vpop.f32.mrf.mxu1  ;;  %v7045_v27 = vadd.f32 %v8142_v59, %v6798_v44  ;;  %v7088_v44 = vld [vmem:[#allocation2 + $0x70] sm:$0xff] }
 0x656   : > { %7115 = vst [vmem:[#allocation2 + $0x10] sm:$0xff] %v7103_v6  ;;  %v7105_v43 = vmul.f32 %v11130_v34, %v11461_v19  ;;  %v7094_v56 = vadd.f32 %v7082_v45, %v7070_v31  ;;  %v7072_v16 = vadd.f32 %v7059_v10, %v7040_v26  ;;  %v7041_v0 = vadd.f32 %v6940_v24, %v6794_v62  ;;  %v7025_v11 = vpop.f32.mrf.mxu0 }
 0x657   : > { %v7107_v22 = vmul.f32 %v7095_v54, %v11463_v42  ;;  %v7092_v21 = vadd.f32 %v7080_v1, %v7068_v23  ;;  %v7077_v33 = vadd.f32 %v7064_v49, %v7045_v27  ;;  %v6944_v41 = vpop.f32.mrf.mxu1  ;;  %v7042_v4 = vadd.f32 %v7025_v11, %v6795_v37 }
 0x658   : > { %7117 = vst [vmem:[#allocation2 + $0x28] sm:$0xff] %v7105_v43  ;;  %v7106_v63 = vmul.f32 %v7094_v56, %v11462_v3  ;;  %v7096_v32 = vadd.f32 %v7084_v40, %v7072_v16  ;;  %v7073_v52 = vadd.f32 %v7059_v10, %v7041_v0  ;;  %v7043_v35 = vadd.f32 %v6944_v41, %v6796_v17 }
 0x659   : > { %7119 = vst.msk [vmem:[#allocation2 + $0x38] sm:$0xff] %vm4797_vm0, %v7107_v22  ;;  %v7104_v15 = vmul.f32 %v7092_v21, %v11463_v42  ;;  %v7101_v12 = vadd.f32 %v7089_v53, %v7077_v33  ;;  %v7074_v55 = vadd.f32 %v7059_v10, %v7042_v4  ;;  %v6946_v60 = vpop.f32.mrf.mxu1 }
 0x65a   : > { %7118 = vst [vmem:[#allocation2 + $0x30] sm:$0xff] %v7106_v63  ;;  %v7108_v7 = vmul.f32 %v7096_v32, %v11461_v19  ;;  %v7097_v5 = vadd.f32 %v7085_v18, %v7073_v52  ;;  %v7075_v38 = vadd.f32 %v7064_v49, %v7043_v35  ;;  %v7044_v48 = vadd.f32 %v6946_v60, %v6797_v28 }
 0x65b   : > { %7116 = vst.msk [vmem:[#allocation2 + $0x18] sm:$0xff] %vm4797_vm0, %v7104_v15  ;;  %v7113_v25 = vmul.f32 %v7101_v12, %v11463_v42  ;;  %v7098_v47 = vadd.f32 %v7086_v9, %v7074_v55 }
 0x65c   : > { %7120 = vst [vmem:[#allocation2 + $0x48] sm:$0xff] %v7108_v7  ;;  %v7109_v37 = vmul.f32 %v7097_v5, %v11462_v3  ;;  %v7099_v13 = vadd.f32 %v7087_v57, %v7075_v38  ;;  %v7076_v30 = vadd.f32 %v7064_v49, %v7044_v48 }
 0x65d   : > { %7125 = vst.msk [vmem:[#allocation2 + $0x78] sm:$0xff] %vm4797_vm0, %v7113_v25  ;;  %v7110_v29 = vmul.f32 %v7098_v47, %v11463_v42 }
 0x65e   : > { %7121 = vst [vmem:[#allocation2 + $0x50] sm:$0xff] %v7109_v37  ;;  %v7111_v46 = vmul.f32 %v7099_v13, %v11461_v19  ;;  %v7100_v36 = vadd.f32 %v7088_v44, %v7076_v30  ;;  %7129 = sbr.rel (%p7624_p1) target bundleno = 1641 (0x669), region = 68 }
 0x65f   : > { %7122 = vst.msk [vmem:[#allocation2 + $0x58] sm:$0xff] %vm4797_vm0, %v7110_v29 }
 0x660   : > { %7123 = vst [vmem:[#allocation2 + $0x68] sm:$0xff] %v7111_v46  ;;  %v7112_v58 = vmul.f32 %v7100_v36, %v11462_v3 }
 0x662   : > { %7124 = vst [vmem:[#allocation2 + $0x70] sm:$0xff] %v7112_v58 }
 0x663   : > { %7130 = vst [vmem:[%s8722_s3] sm:$0xff] %v11122_v39  ;;  %7131 = vst [vmem:[%s8722_s3 + $0x8] sm:$0xff] %v11126_v14 }
 0x664   : > { %7132 = vst.msk [vmem:[%s8722_s3 + $0x10] sm:$0xff] %vm4797_vm0, %v7092_v21  ;;  %7133 = vst [vmem:[%s8722_s3 + $0x18] sm:$0xff] %v11130_v34 }
 0x665   : > { %7134 = vst [vmem:[%s8722_s3 + $0x20] sm:$0xff] %v7094_v56  ;;  %7135 = vst.msk [vmem:[%s8722_s3 + $0x28] sm:$0xff] %vm4797_vm0, %v7095_v54 }
 0x666   : > { %7136 = vst [vmem:[%s8722_s3 + $0x30] sm:$0xff] %v7096_v32  ;;  %7137 = vst [vmem:[%s8722_s3 + $0x38] sm:$0xff] %v7097_v5 }
 0x667   : > { %7138 = vst.msk [vmem:[%s8722_s3 + $0x40] sm:$0xff] %vm4797_vm0, %v7098_v47  ;;  %7139 = vst [vmem:[%s8722_s3 + $0x48] sm:$0xff] %v7099_v13 }
 0x668   : > { %7140 = vst [vmem:[%s8722_s3 + $0x50] sm:$0xff] %v7100_v36  ;;  %7141 = vst.msk [vmem:[%s8722_s3 + $0x58] sm:$0xff] %vm4797_vm0, %v7101_v12 }
 0x669 PF: > { %s8152_s11 = smul.u32 1536, %s8456_s12  ;;  %s7156_s29 = sshll.u32 %s8722_s3, 4  ;;  %s11174_s29 = int_to_ptr.vmem [resolvable:$true] %s7156_s29 }
 0x66a   : > { %s11464_s16 = sld [smem:[#allocation63_spill]]  ;;  %s11465_s24 = sand.u32 1, %s8432_s28  }
 0x66b   : > { %s11178_s10 = scalar_lea.sflag [#allocation6], %s11465_s24  ;;  %s8344_s14 = scalar_lea.vmem %s11174_s29, 1536 }
 0x66c   : > { %p8345_p6 = scmp.ne.s32.totalorder %s11174_s29, %s8344_s14  ;;  %s8494_s12 = smov [#allocation9]  }
 0x66d   : > { %s8348_s3 = sshll.u32 %s8494_s12, 4  ;;  %s8349_s3 = int_to_ptr.vmem [resolvable:$false] %s8348_s3 }
 0x66e   : > { %p8346_p3 = pnand %p8345_p6, %p8630_p12  ;;  %s8350_s21 = scalar_lea.vmem %s8349_s3, 3072 }
 0x66f   : > { %p8351_p9 = scmp.lt.s32.totalorder %s11174_s29, %s8349_s3  ;;  %p8352_p10 = scmp.lt.s32.totalorder %s8350_s21, %s8344_s14 }
 0x670   : > { %s11172_s22 = scalar_lea.hbm %s11464_s16, %s8152_s11  ;;  %p8347_p7 = pneg %p8346_p3 }
 0x671   : > { %p8353_p11 = por %p8352_p10, %p8351_p9 }
 0x673   : > { %p8354_p13 = pnand %p8353_p11, %p8347_p7 }
 0x675   : > { %8357 = shalt.err (!%p8354_p13)
}
 0x676   : > { %s8358_s20 = scalar_lea.hbm %s11172_s22, 1536  ;;  %s8362_s18 = scalar_lea.hbm %s11464_s16, 3072 }
 0x677   : > { %p8359_p0 = scmp.ne.s32.totalorder %s11172_s22, %s8358_s20  ;;  %p8363_p8 = scmp.lt.s32.totalorder %s11172_s22, %s11464_s16 }
 0x678   : > { %p8364_p1 = scmp.lt.s32.totalorder %s8362_s18, %s8358_s20 }
 0x679   : > { %p8360_p4 = pnand %p8359_p0, %p8630_p12 }
 0x67a   : > { %p8365_p6 = por %p8364_p1, %p8363_p8 }
 0x67b   : > { %p8361_p5 = pneg %p8360_p4 }
 0x67d   : > { %p8366_p3 = pnand %p8365_p6, %p8361_p5 }
 0x67f   : > { %8369 = shalt.err (!%p8366_p3)
}
 0x680   : > { %s8495_s17 = smov 384   ;;  %s8496_s19 = smov 24  }
 0x681   : > { %8157 = dma.vmem_to_hbm [thread:$0]  (%p8630_p12), %s11174_s29, 1536, %s11172_s22, %s11178_s10, %s8495_s17, %s8495_s17, %s8496_s19  }
 0x682 PF: > { %s11466_s11 = sld [smem:[#allocation13_spill]]  ;;  %p8171_p7 = scmp.ge.s32.totalorder %s8468_s15, 2 }
 0x684   : > { %p8167_p9 = pnand %p8171_p7, %p8640_p2 }
 0x686   : > { %p8168_p10 = pneg %p8167_p9 }
 0x688   : > { %s7171_s25 = sand.u32 1, %s11466_s11  }
 0x689   : > { %s7172_s24 = scalar_lea.sflag [#allocation6], %s7171_s25 }
 0x68a   : > { %8423 = dma.done.wait (%p8168_p10), %s7172_s24, 1536  }
 0x68b   : > { %8425 = vsyncadd (%p8168_p10), %s7172_s24, 4294965760  ;;  %s27_s15 = sadd.s32 1, %s8468_s15   ;;  %s11468_s14 = sld [smem:[#allocation14_spill]] }
 0x68c   : > { %p24_p11 = scmp.ge.s32.totalorder %s27_s15, 6   ;;  %s11469_s29 = sld [smem:[#allocation21_spill]] }
 0x68d   : > { %s11470_s22 = sld [smem:[#allocation15_spill]]  ;;  %s11476_s27 = smov %s8432_s28 }
 0x68e   : > { %s11471_s10 = sld [smem:[#allocation20_spill]]  ;;  %s11478_s30 = smov %s8444_s9 }
 0x68f   : > { %s11472_s11 = sld [smem:[#allocation16_spill]] }
 0x690   : > { %s11473_s12 = sld [smem:[#allocation17_spill]] }
 0x691   : > { %s11474_s13 = sld [smem:[#allocation18_spill]]  ;;  %s11477_s28 = smov %s11468_s14 }
 0x692   : > { %s11475_s3 = sld [smem:[#allocation19_spill]] }
 0x693   : > { %s11479_s9 = smov %s11470_s22 }
 0x694   :  { %26 = sbr.rel (!%p24_p11) target bundleno = 14 (0xe), region = 151 }
 0x698   : > { %s11480_s14 = smov %s11475_s3 }
 0x699   :  { %7177 = vsyncpa [#allocation5], 1 }
 0x69a   :  { %7179 = vsyncpa [#allocation5 + $0x1], 1 }
 0x69b   :  { %7180 = vsyncpa [#allocation8], 1 }
 0x69c   :  { %7182 = vsyncpa [#allocation8 + $0x1], 1 }
 0x69d   :  { %7183 = vsyncpa [#allocation6], 1 }
 0x69e   :  { %7185 = vsyncpa [#allocation6 + $0x1], 1 }

</bundles_post_ra>
